<compile_context>
chip_gen: v6e
topology: v6e:2x2x1
jax: 0.10.0
libtpu: 0.0.40
codegen_flags: <defaults>
</compile_context>

<pallas_src>
import functools

import numpy as np
import jax
import jax.numpy as jnp
from jax.experimental import pallas as pl
from jax.experimental.pallas import tpu as pltpu


# ----------------------------------------------------------------------------
# Exact GELU usable inside Mosaic kernels
# ----------------------------------------------------------------------------
_INV_SQRT2 = 0.7071067811865476


def _gelu_erf(x):
    return 0.5 * x * (1.0 + jax.lax.erf(x * _INV_SQRT2))


def _gelu_erf_series(x):
    # Abramowitz & Stegun 7.1.26 rational approximation of erf,
    # |error| <= 1.5e-7 (float32 level) -> numerically matches torch F.gelu.
    z = x * _INV_SQRT2
    a = jnp.abs(z)
    t = 1.0 / (1.0 + 0.3275911 * a)
    poly = t * (0.254829592 + t * (-0.284496736 + t * (1.421413741
             + t * (-1.453152027 + t * 1.061405429))))
    e = 1.0 - poly * jnp.exp(-a * a)
    return 0.5 * x * (1.0 + jnp.where(z >= 0, e, -e))


def _probe_erf_in_pallas():
    # lax.erf has no guaranteed Mosaic lowering on every jaxlib; probe once.
    def k(x_ref, o_ref):
        o_ref[...] = jax.lax.erf(x_ref[...])
    try:
        y = pl.pallas_call(
            k, out_shape=jax.ShapeDtypeStruct((8, 128), jnp.float32)
        )(jnp.zeros((8, 128), jnp.float32))
        jax.block_until_ready(y)
        return True
    except Exception:
        return False


_ERF_IN_KERNEL = _probe_erf_in_pallas()


def _gelu(x):
    # TODO(synk): if lax.erf fails to lower in Mosaic we fall back to a
    # <=1.5e-7-accurate erf series (still the exact-GELU definition, not tanh).
    return _gelu_erf(x) if _ERF_IN_KERNEL else _gelu_erf_series(x)


# ----------------------------------------------------------------------------
# Row-tiling helpers
# ----------------------------------------------------------------------------
def _round_up(a, b):
    return (a + b - 1) // b * b


def _row_tile(M, target=512):
    """Row tile: multiple of 8, capped, and >= 2 grid blocks whenever M > 8."""
    if M <= 8:
        return M
    if M >= 2 * target:
        return target
    return min(_round_up((M + 1) // 2, 8), _round_up(M, 8))


def _pad_rows(x2d, Mp):
    M = x2d.shape[0]
    return x2d if Mp == M else jnp.pad(x2d, ((0, Mp - M), (0, 0)))


# ----------------------------------------------------------------------------
# Pallas kernels
# ----------------------------------------------------------------------------
def _linear_kernel(x_ref, w_ref, o_ref, *, act):
    y = jnp.dot(x_ref[...], w_ref[...], preferred_element_type=jnp.float32)
    o_ref[...] = _gelu(y) if act else y


def _linear_bias_kernel(x_ref, w_ref, b_ref, o_ref, *, act):
    y = jnp.dot(x_ref[...], w_ref[...], preferred_element_type=jnp.float32)
    y = y + b_ref[...]
    o_ref[...] = _gelu(y) if act else y


def pallas_linear(x2d, w_io, b=None, act=False):
    """y = [GELU](x2d @ w_io [+ b]);  x2d: [M, Cin] f32, w_io: [Cin, Cout] f32."""
    M, Cin = x2d.shape
    Cout = w_io.shape[1]
    TM = _row_tile(M)
    Mp = _round_up(M, TM)
    xp = _pad_rows(x2d, Mp)
    grid = (Mp // TM,)
    x_spec = pl.BlockSpec((TM, Cin), lambda i: (i, 0))
    w_spec = pl.BlockSpec((Cin, Cout), lambda i: (0, 0))
    o_spec = pl.BlockSpec((TM, Cout), lambda i: (i, 0))
    out_shape = jax.ShapeDtypeStruct((Mp, Cout), jnp.float32)
    params = pltpu.CompilerParams(dimension_semantics=("parallel",))
    if b is None:
        out = pl.pallas_call(
            functools.partial(_linear_kernel, act=act),
            out_shape=out_shape, grid=grid,
            in_specs=[x_spec, w_spec], out_specs=o_spec,
            compiler_params=params,
        )(xp, w_io)
    else:
        b_spec = pl.BlockSpec((1, Cout), lambda i: (0, 0))
        out = pl.pallas_call(
            functools.partial(_linear_bias_kernel, act=act),
            out_shape=out_shape, grid=grid,
            in_specs=[x_spec, w_spec, b_spec], out_specs=o_spec,
            compiler_params=params,
        )(xp, w_io, b.reshape(1, Cout))
    return out[:M] if Mp != M else out


def _head_kernel(x_ref, w3_ref, b3_ref, w4_ref, b4_ref, o_ref):
    h = jnp.dot(x_ref[...], w3_ref[...], preferred_element_type=jnp.float32)
    h = _gelu(h + b3_ref[...])
    o_ref[...] = (
        jnp.dot(h, w4_ref[...], preferred_element_type=jnp.float32) + b4_ref[...]
    )


def pallas_head(x2d, w3, b3, w4, b4):
    """Fused linear3 -> exact GELU -> linear4 (the [M,128] hidden never hits HBM)."""
    M, Cin = x2d.shape
    H = w3.shape[1]
    Co = w4.shape[1]
    TM = _row_tile(M)
    Mp = _round_up(M, TM)
    xp = _pad_rows(x2d, Mp)
    out = pl.pallas_call(
        _head_kernel,
        out_shape=jax.ShapeDtypeStruct((Mp, Co), jnp.float32),
        grid=(Mp // TM,),
        in_specs=[pl.BlockSpec((TM, Cin), lambda i: (i, 0)),
                  pl.BlockSpec((Cin, H), lambda i: (0, 0)),
                  pl.BlockSpec((1, H), lambda i: (0, 0)),
                  pl.BlockSpec((H, Co), lambda i: (0, 0)),
                  pl.BlockSpec((1, Co), lambda i: (0, 0))],
        out_specs=pl.BlockSpec((TM, Co), lambda i: (i, 0)),
        compiler_params=pltpu.CompilerParams(dimension_semantics=("parallel",)),
    )(xp, w3, b3.reshape(1, H), w4, b4.reshape(1, Co))
    return out[:M] if Mp != M else out


def _add_gelu_kernel(a_ref, b_ref, o_ref):
    o_ref[...] = _gelu(a_ref[...] + b_ref[...])


def pallas_add_gelu(a2d, b2d):
    """Fused residual add + exact GELU on [M, C] slabs."""
    M, C = a2d.shape
    TM = _row_tile(M)
    Mp = _round_up(M, TM)
    ap = _pad_rows(a2d, Mp)
    bp = _pad_rows(b2d, Mp)
    spec = pl.BlockSpec((TM, C), lambda i: (i, 0))
    out = pl.pallas_call(
        _add_gelu_kernel,
        out_shape=jax.ShapeDtypeStruct((Mp, C), jnp.float32),
        grid=(Mp // TM,),
        in_specs=[spec, spec],
        out_specs=spec,
        compiler_params=pltpu.CompilerParams(dimension_semantics=("parallel",)),
    )(ap, bp)
    return out[:M] if Mp != M else out


def _spectral_kernel(xr_ref, xi_ref, wr_ref, wi_ref, yr_ref, yi_ref):
    # Batched complex channel mix over a block of retained Fourier modes:
    #   y[k, b, o] = sum_i x[k, b, i] * w[k, i, o]   (complex)
    # 3-multiply (Karatsuba) form: 25% fewer MXU ops than the naive 4-dot form.
    xr = xr_ref[...]
    xi = xi_ref[...]
    wr = wr_ref[...]
    wi = wi_ref[...]
    t1 = jnp.einsum('kbi,kio->kbo', xr, wr, preferred_element_type=jnp.float32)
    t2 = jnp.einsum('kbi,kio->kbo', xi, wi, preferred_element_type=jnp.float32)
    t3 = jnp.einsum('kbi,kio->kbo', xr + xi, wr + wi,
                    preferred_element_type=jnp.float32)
    yr_ref[...] = t1 - t2
    yi_ref[...] = t3 - t1 - t2


def pallas_spectral_mix(x_re, x_im, w_re, w_im):
    """x_*: [K, B, W], w_*: [K, W, W]  (K = retained modes).  K-blocked grid."""
    K, B, W = x_re.shape
    nblk = 2 if (K % 2 == 0 and K >= 2) else 1   # >= 2 blocks -> both TCs on v7x
    Kb = K // nblk
    x_spec = pl.BlockSpec((Kb, B, W), lambda k: (k, 0, 0))
    w_spec = pl.BlockSpec((Kb, W, W), lambda k: (k, 0, 0))
    out = jax.ShapeDtypeStruct((K, B, W), jnp.float32)
    return pl.pallas_call(
        _spectral_kernel,
        out_shape=(out, out),
        grid=(nblk,),
        in_specs=[x_spec, x_spec, w_spec, w_spec],
        out_specs=(x_spec, x_spec),
        compiler_params=pltpu.CompilerParams(dimension_semantics=("parallel",)),
    )(x_re, x_im, w_re, w_im)


# ----------------------------------------------------------------------------
# Model glue (plain JAX only for FFTs and tiny spectral-domain reshapes)
# ----------------------------------------------------------------------------
def fno_block_forward(x, blk, modes):
    """One DistributedFNOBlock (single partition).  x: [B, X, T, W] channels-last."""
    m0, m1 = modes
    Bz, X, T, W = x.shape
    assert 2 * m0 <= X, "FNO block assumes 2*m0 <= X (prefix/suffix modes overlap)"
    assert m1 <= T // 2 + 1, "FNO block assumes m1 <= T//2 + 1"
    M = Bz * X * T

    # residual branch: width -> width channel mix (no bias, no activation)
    y0 = pallas_linear(x.reshape(M, W), blk["lin_w"], b=None, act=False)

    # TODO(synk): FFTs have no Pallas equivalent; computed with jnp.fft (XLA).
    xf = jnp.fft.rfft(x, axis=2)                 # [B, X, Tr, W] complex64
    Tr = xf.shape[2]
    xf = xf[:, :, :m1, :]                        # keep first m1 time modes
    xf = jnp.fft.fft(xf, axis=1)                 # [B, X, m1, W]
    xk = jnp.concatenate([xf[:, :m0], xf[:, -m0:]], axis=1)   # [B, 2*m0, m1, W]

    # spectral channel mixing (Pallas, complex as re/im, all modes in 2 steps)
    K = 2 * m0 * m1
    xk = jnp.transpose(xk, (1, 2, 0, 3)).reshape(K, Bz, W)
    yr, yi = pallas_spectral_mix(jnp.real(xk), jnp.imag(xk),
                                 blk["spec_re"], blk["spec_im"])
    yk = jax.lax.complex(yr, yi).reshape(2 * m0, m1, Bz, W)
    yk = jnp.transpose(yk, (2, 0, 1, 3))         # [B, 2*m0, m1, W]

    # zero-pad spatial modes, inverse FFT along X
    pad_x = X - 2 * m0
    if pad_x >= 1:
        yk = jnp.concatenate(
            [yk[:, :m0], jnp.zeros((Bz, pad_x, m1, W), yk.dtype), yk[:, m0:]],
            axis=1)
    yk = jnp.fft.ifft(yk, axis=1)                # [B, X, m1, W]

    # zero-pad time modes, inverse rFFT along T (n=T keeps odd T consistent)
    pad_t = Tr - m1
    if pad_t >= 1:
        yk = jnp.concatenate(
            [yk, jnp.zeros((Bz, X, pad_t, W), yk.dtype)], axis=2)
    y = jnp.fft.irfft(yk, n=T, axis=2)           # [B, X, T, W] float32

    # fused residual-add + exact GELU
    out = pallas_add_gelu(y0, y.astype(jnp.float32).reshape(M, W))
    return out.reshape(Bz, X, T, W)


def dfno_forward(params, x, modes):
    """x: [B, Cin, X, Tin] (torch layout).  Returns [B, 1, X, out_timesteps]."""
    Bz, Cin, X, Tin = x.shape
    Tout = params["lin1_w"].shape[1]
    W = params["lin2_w"].shape[1]

    # linear1 (+bias+GELU fused) over the trailing time dim — no transpose needed
    h = pallas_linear(x.reshape(-1, Tin), params["lin1_w"], params["lin1_b"],
                      act=True)
    h = h.reshape(Bz, Cin, X, Tout)

    # single layout change to channels-last for the whole trunk
    h = jnp.transpose(h, (0, 2, 3, 1))           # [B, X, Tout, Cin]
    M = Bz * X * Tout

    # linear2 (+bias+GELU fused): channel mix Cin -> width
    h = pallas_linear(h.reshape(M, Cin), params["lin2_w"], params["lin2_b"],
                      act=True)
    h = h.reshape(Bz, X, Tout, W)

    for blk in params["blocks"]:
        h = fno_block_forward(h, blk, modes)

    # fused tail: linear3 -> GELU -> linear4
    y = pallas_head(h.reshape(M, W), params["lin3_w"], params["lin3_b"],
                    params["lin4_w"], params["lin4_b"])
    y = y.reshape(Bz, X, Tout, 1)
    return jnp.transpose(y, (0, 3, 1, 2))        # back to torch layout [B, 1, X, T]


# ----------------------------------------------------------------------------
# Deterministic parameter init (kernel-ready layouts precomputed once here)
# ----------------------------------------------------------------------------
def init_params(key, in_shape, out_timesteps, width, modes, num_blocks):
    _, Cin, _, Tin = in_shape
    m0, m1 = modes
    ks = jax.random.split(key, 4 + num_blocks)

    def kaiming_uniform(k, out_f, in_f):
        bound = 1.0 / np.sqrt(in_f)
        return jax.random.uniform(k, (out_f, in_f), jnp.float32, -bound, bound)

    params = {
        # linear weights stored kernel-ready as [in, out]; biases as [out]
        "lin1_w": kaiming_uniform(ks[0], out_timesteps, Tin).T,
        "lin1_b": jnp.zeros((out_timesteps,), jnp.float32),
        "lin2_w": kaiming_uniform(ks[1], width, Cin).T,
        "lin2_b": jnp.zeros((width,), jnp.float32),
        "lin3_w": kaiming_uniform(ks[2], 128, width).T,
        "lin3_b": jnp.zeros((128,), jnp.float32),
        "lin4_w": kaiming_uniform(ks[3], 1, 128).T,
        "lin4_b": jnp.zeros((1,), jnp.float32),
        "blocks": [],
    }
    scale = 1.0 / (width * width)
    K = 2 * m0 * m1

    def to_k(w_pair):
        # [W_in, W_out, m0, m1] x2 -> [K, W_in, W_out] (kx-major mode ordering)
        w = jnp.concatenate(w_pair, axis=2)          # [W, W, 2*m0, m1]
        return jnp.transpose(w, (2, 3, 0, 1)).reshape(K, width, width)

    for bi in range(num_blocks):
        bk = jax.random.split(ks[4 + bi], 5)
        w_re = [scale * jax.random.uniform(bk[1], (width, width, m0, m1), jnp.float32),
                scale * jax.random.uniform(bk[2], (width, width, m0, m1), jnp.float32)]
        w_im = [scale * jax.random.uniform(bk[3], (width, width, m0, m1), jnp.float32),
                scale * jax.random.uniform(bk[4], (width, width, m0, m1), jnp.float32)]
        params["blocks"].append({
            "lin_w": kaiming_uniform(bk[0], width, width).T,
            "spec_re": to_k(w_re),
            "spec_im": to_k(w_im),
        })
    return params


# ----------------------------------------------------------------------------
if __name__ == "__main__":
    # Small shapes: P_x.dim = 4 -> tensor layout [B, C, X, T]
    B, Cin, X, Tin = 2, 3, 16, 6
    out_timesteps = 8
    width = 16
    modes = (4, 3)        # modes for spatial dim (X) and time dim (T)
    num_blocks = 2
    in_shape = (B, Cin, X, Tin)

    key = jax.random.PRNGKey(0)
    kp, kx = jax.random.split(key)
    params = init_params(kp, in_shape, out_timesteps, width, modes, num_blocks)
    x = jax.random.normal(kx, in_shape, jnp.float32)

    fwd = jax.jit(functools.partial(dfno_forward, modes=modes))
    y = fwd(params, x)
    y = jax.block_until_ready(y)

    assert y.shape == (B, 1, X, out_timesteps), y.shape
    assert y.dtype == jnp.float32, y.dtype
    assert bool(jnp.all(jnp.isfinite(y)))
    print("KERNEL_OK")
</pallas_src>

<mosaic_0001>
module attributes {stable_mosaic.version = 11 : i64} {
  func.func @k(%arg0: memref<8x128xf32, #tpu.memory_space<vmem>>, %arg1: memref<8x128xf32, #tpu.memory_space<vmem>>) attributes {dimension_semantics = [], scalar_prefetch = 0 : i64, scratch_operands = 0 : i64, tpu.core_type = #tpu.core_type<tc>} {
    %c0 = arith.constant 0 : index
    %c0_0 = arith.constant 0 : index
    %0 = vector.load %arg0[%c0, %c0_0] : memref<8x128xf32, #tpu.memory_space<vmem>>, vector<8x128xf32>
    %1 = math.erf %0 : vector<8x128xf32>
    %c0_1 = arith.constant 0 : index
    %c0_2 = arith.constant 0 : index
    %2 = vector.load %arg1[%c0_1, %c0_2] : memref<8x128xf32, #tpu.memory_space<vmem>>, vector<8x128xf32>
    tpu.vector_store %arg1[%c0_1, %c0_2], %1 {strides = array<i32>} : memref<8x128xf32, #tpu.memory_space<vmem>>, vector<8x128xf32>,
    return
  }
}

module attributes {stable_mosaic.version = 11 : i64} {
  func.func @_linear_bias_kernel(%arg0: i32, %arg1: memref<128x3xf32, #tpu.memory_space<vmem>>, %arg2: memref<3x16xf32, #tpu.memory_space<vmem>>, %arg3: memref<1x16xf32, #tpu.memory_space<vmem>>, %arg4: memref<128x16xf32, #tpu.memory_space<vmem>>) attributes {dimension_semantics = [#tpu.dimension_semantics<parallel>], iteration_bounds = array<i64: 2>, scalar_prefetch = 0 : i64, scratch_operands = 0 : i64, tpu.core_type = #tpu.core_type<tc>, window_params = [{transform_indices = @transform_0, window_bounds = array<i64: 128, 3>}, {pipeline_mode = #tpu.pipeline_mode<synchronous>, transform_indices = @transform_1, window_bounds = array<i64: 3, 16>}, {pipeline_mode = #tpu.pipeline_mode<synchronous>, transform_indices = @transform_2, window_bounds = array<i64: 1, 16>}, {transform_indices = @transform_3, window_bounds = array<i64: 128, 16>}]} {
    %c0 = arith.constant 0 : index
    %c0_0 = arith.constant 0 : index
    %0 = vector.load %arg1[%c0, %c0_0] : memref<128x3xf32, #tpu.memory_space<vmem>>, vector<128x3xf32>
    %c0_1 = arith.constant 0 : index
    %c0_2 = arith.constant 0 : index
    %1 = vector.load %arg2[%c0_1, %c0_2] : memref<3x16xf32, #tpu.memory_space<vmem>>, vector<3x16xf32>
    %cst = arith.constant dense<0.000000e+00> : vector<128x16xf32>
    %2 = tpu.matmul %0, %1, %cst {dimension_numbers = #tpu.dot_dimension_numbers<[1], [0], [0], [1], [0, 0, 1, 1], [], []>} : vector<128x3xf32>, vector<3x16xf32>, vector<128x16xf32> -> vector<128x16xf32>
    %c0_3 = arith.constant 0 : index
    %c0_4 = arith.constant 0 : index
    %3 = vector.load %arg3[%c0_3, %c0_4] : memref<1x16xf32, #tpu.memory_space<vmem>>, vector<1x16xf32>
    %4 = vector.broadcast %3 : vector<1x16xf32> to vector<128x16xf32>
    %5 = arith.addf %2, %4 : vector<128x16xf32>
    %cst_5 = arith.constant 0.707106769 : f32
    %6 = vector.broadcast %cst_5 : f32 to vector<128x16xf32>
    %7 = arith.mulf %5, %6 : vector<128x16xf32>
    %8 = math.absf %7 : vector<128x16xf32>
    %cst_6 = arith.constant 0.327591091 : f32
    %9 = vector.broadcast %cst_6 : f32 to vector<128x16xf32>
    %10 = arith.mulf %9, %8 : vector<128x16xf32>
    %cst_7 = arith.constant 1.000000e+00 : f32
    %11 = vector.broadcast %cst_7 : f32 to vector<128x16xf32>
    %12 = arith.addf %11, %10 : vector<128x16xf32>
    %cst_8 = arith.constant 1.000000e+00 : f32
    %13 = vector.broadcast %cst_8 : f32 to vector<128x16xf32>
    %14 = arith.divf %13, %12 : vector<128x16xf32>
    %cst_9 = arith.constant 1.06140542 : f32
    %15 = vector.broadcast %cst_9 : f32 to vector<128x16xf32>
    %16 = arith.mulf %14, %15 : vector<128x16xf32>
    %cst_10 = arith.constant -1.45315206 : f32
    %17 = vector.broadcast %cst_10 : f32 to vector<128x16xf32>
    %18 = arith.addf %17, %16 : vector<128x16xf32>
    %19 = arith.mulf %14, %18 : vector<128x16xf32>
    %cst_11 = arith.constant 1.42141378 : f32
    %20 = vector.broadcast %cst_11 : f32 to vector<128x16xf32>
    %21 = arith.addf %20, %19 : vector<128x16xf32>
    %22 = arith.mulf %14, %21 : vector<128x16xf32>
    %cst_12 = arith.constant -0.284496725 : f32
    %23 = vector.broadcast %cst_12 : f32 to vector<128x16xf32>
    %24 = arith.addf %23, %22 : vector<128x16xf32>
    %25 = arith.mulf %14, %24 : vector<128x16xf32>
    %cst_13 = arith.constant 0.254829586 : f32
    %26 = vector.broadcast %cst_13 : f32 to vector<128x16xf32>
    %27 = arith.addf %26, %25 : vector<128x16xf32>
    %28 = arith.mulf %14, %27 : vector<128x16xf32>
    %cst_14 = arith.constant 0.000000e+00 : f32
    %29 = vector.broadcast %cst_14 : f32 to vector<128x16xf32>
    %30 = arith.subf %29, %8 : vector<128x16xf32>
    %31 = arith.mulf %30, %8 : vector<128x16xf32>
    %32 = math.exp %31 : vector<128x16xf32>
    %33 = arith.mulf %28, %32 : vector<128x16xf32>
    %cst_15 = arith.constant 1.000000e+00 : f32
    %34 = vector.broadcast %cst_15 : f32 to vector<128x16xf32>
    %35 = arith.subf %34, %33 : vector<128x16xf32>
    %cst_16 = arith.constant 5.000000e-01 : f32
    %36 = vector.broadcast %cst_16 : f32 to vector<128x16xf32>
    %37 = arith.mulf %36, %5 : vector<128x16xf32>
    %cst_17 = arith.constant 0.000000e+00 : f32
    %38 = vector.broadcast %cst_17 : f32 to vector<128x16xf32>
    %39 = arith.cmpf oge, %7, %38 : vector<128x16xf32>
    %cst_18 = arith.constant 0.000000e+00 : f32
    %40 = vector.broadcast %cst_18 : f32 to vector<128x16xf32>
    %41 = arith.subf %40, %35 : vector<128x16xf32>
    %42 = arith.select %39, %35, %41 : vector<128x16xi1>, vector<128x16xf32>
    %cst_19 = arith.constant 1.000000e+00 : f32
    %43 = vector.broadcast %cst_19 : f32 to vector<128x16xf32>
    %44 = arith.addf %43, %42 : vector<128x16xf32>
    %45 = arith.mulf %37, %44 : vector<128x16xf32>
    %c0_20 = arith.constant 0 : index
    %c0_21 = arith.constant 0 : index
    %46 = vector.load %arg4[%c0_20, %c0_21] : memref<128x16xf32, #tpu.memory_space<vmem>>, vector<128x16xf32>
    tpu.vector_store %arg4[%c0_20, %c0_21], %45 {strides = array<i32>} : memref<128x16xf32, #tpu.memory_space<vmem>>, vector<128x16xf32>,
    return
  }
  func.func @transform_0(%arg0: i32) -> (i32, i32) {
    %c0_i32 = arith.constant 0 : i32
    %c0_i32_0 = arith.constant 0 : i32
    return %arg0, %c0_i32 : i32, i32
  }
  func.func @transform_1(%arg0: i32) -> (i32, i32) {
    %c0_i32 = arith.constant 0 : i32
    %c0_i32_0 = arith.constant 0 : i32
    %c0_i32_1 = arith.constant 0 : i32
    return %c0_i32, %c0_i32_0 : i32, i32
  }
  func.func @transform_2(%arg0: i32) -> (i32, i32) {
    %c0_i32 = arith.constant 0 : i32
    %c0_i32_0 = arith.constant 0 : i32
    %c0_i32_1 = arith.constant 0 : i32
    return %c0_i32, %c0_i32_0 : i32, i32
  }
  func.func @transform_3(%arg0: i32) -> (i32, i32) {
    %c0_i32 = arith.constant 0 : i32
    %c0_i32_0 = arith.constant 0 : i32
    return %arg0, %c0_i32 : i32, i32
  }
}

module attributes {stable_mosaic.version = 11 : i64} {
  func.func @_linear_bias_kernel(%arg0: i32, %arg1: memref<48x6xf32, #tpu.memory_space<vmem>>, %arg2: memref<6x8xf32, #tpu.memory_space<vmem>>, %arg3: memref<1x8xf32, #tpu.memory_space<vmem>>, %arg4: memref<48x8xf32, #tpu.memory_space<vmem>>) attributes {dimension_semantics = [#tpu.dimension_semantics<parallel>], iteration_bounds = array<i64: 2>, scalar_prefetch = 0 : i64, scratch_operands = 0 : i64, tpu.core_type = #tpu.core_type<tc>, window_params = [{transform_indices = @transform_0, window_bounds = array<i64: 48, 6>}, {pipeline_mode = #tpu.pipeline_mode<synchronous>, transform_indices = @transform_1, window_bounds = array<i64: 6, 8>}, {pipeline_mode = #tpu.pipeline_mode<synchronous>, transform_indices = @transform_2, window_bounds = array<i64: 1, 8>}, {transform_indices = @transform_3, window_bounds = array<i64: 48, 8>}]} {
    %c0 = arith.constant 0 : index
    %c0_0 = arith.constant 0 : index
    %0 = vector.load %arg1[%c0, %c0_0] : memref<48x6xf32, #tpu.memory_space<vmem>>, vector<48x6xf32>
    %c0_1 = arith.constant 0 : index
    %c0_2 = arith.constant 0 : index
    %1 = vector.load %arg2[%c0_1, %c0_2] : memref<6x8xf32, #tpu.memory_space<vmem>>, vector<6x8xf32>
    %cst = arith.constant dense<0.000000e+00> : vector<48x8xf32>
    %2 = tpu.matmul %0, %1, %cst {dimension_numbers = #tpu.dot_dimension_numbers<[1], [0], [0], [1], [0, 0, 1, 1], [], []>} : vector<48x6xf32>, vector<6x8xf32>, vector<48x8xf32> -> vector<48x8xf32>
    %c0_3 = arith.constant 0 : index
    %c0_4 = arith.constant 0 : index
    %3 = vector.load %arg3[%c0_3, %c0_4] : memref<1x8xf32, #tpu.memory_space<vmem>>, vector<1x8xf32>
    %4 = vector.broadcast %3 : vector<1x8xf32> to vector<48x8xf32>
    %5 = arith.addf %2, %4 : vector<48x8xf32>
    %cst_5 = arith.constant 0.707106769 : f32
    %6 = vector.broadcast %cst_5 : f32 to vector<48x8xf32>
    %7 = arith.mulf %5, %6 : vector<48x8xf32>
    %8 = math.absf %7 : vector<48x8xf32>
    %cst_6 = arith.constant 0.327591091 : f32
    %9 = vector.broadcast %cst_6 : f32 to vector<48x8xf32>
    %10 = arith.mulf %9, %8 : vector<48x8xf32>
    %cst_7 = arith.constant 1.000000e+00 : f32
    %11 = vector.broadcast %cst_7 : f32 to vector<48x8xf32>
    %12 = arith.addf %11, %10 : vector<48x8xf32>
    %cst_8 = arith.constant 1.000000e+00 : f32
    %13 = vector.broadcast %cst_8 : f32 to vector<48x8xf32>
    %14 = arith.divf %13, %12 : vector<48x8xf32>
    %cst_9 = arith.constant 1.06140542 : f32
    %15 = vector.broadcast %cst_9 : f32 to vector<48x8xf32>
    %16 = arith.mulf %14, %15 : vector<48x8xf32>
    %cst_10 = arith.constant -1.45315206 : f32
    %17 = vector.broadcast %cst_10 : f32 to vector<48x8xf32>
    %18 = arith.addf %17, %16 : vector<48x8xf32>
    %19 = arith.mulf %14, %18 : vector<48x8xf32>
    %cst_11 = arith.constant 1.42141378 : f32
    %20 = vector.broadcast %cst_11 : f32 to vector<48x8xf32>
    %21 = arith.addf %20, %19 : vector<48x8xf32>
    %22 = arith.mulf %14, %21 : vector<48x8xf32>
    %cst_12 = arith.constant -0.284496725 : f32
    %23 = vector.broadcast %cst_12 : f32 to vector<48x8xf32>
    %24 = arith.addf %23, %22 : vector<48x8xf32>
    %25 = arith.mulf %14, %24 : vector<48x8xf32>
    %cst_13 = arith.constant 0.254829586 : f32
    %26 = vector.broadcast %cst_13 : f32 to vector<48x8xf32>
    %27 = arith.addf %26, %25 : vector<48x8xf32>
    %28 = arith.mulf %14, %27 : vector<48x8xf32>
    %cst_14 = arith.constant 0.000000e+00 : f32
    %29 = vector.broadcast %cst_14 : f32 to vector<48x8xf32>
    %30 = arith.subf %29, %8 : vector<48x8xf32>
    %31 = arith.mulf %30, %8 : vector<48x8xf32>
    %32 = math.exp %31 : vector<48x8xf32>
    %33 = arith.mulf %28, %32 : vector<48x8xf32>
    %cst_15 = arith.constant 1.000000e+00 : f32
    %34 = vector.broadcast %cst_15 : f32 to vector<48x8xf32>
    %35 = arith.subf %34, %33 : vector<48x8xf32>
    %cst_16 = arith.constant 5.000000e-01 : f32
    %36 = vector.broadcast %cst_16 : f32 to vector<48x8xf32>
    %37 = arith.mulf %36, %5 : vector<48x8xf32>
    %cst_17 = arith.constant 0.000000e+00 : f32
    %38 = vector.broadcast %cst_17 : f32 to vector<48x8xf32>
    %39 = arith.cmpf oge, %7, %38 : vector<48x8xf32>
    %cst_18 = arith.constant 0.000000e+00 : f32
    %40 = vector.broadcast %cst_18 : f32 to vector<48x8xf32>
    %41 = arith.subf %40, %35 : vector<48x8xf32>
    %42 = arith.select %39, %35, %41 : vector<48x8xi1>, vector<48x8xf32>
    %cst_19 = arith.constant 1.000000e+00 : f32
    %43 = vector.broadcast %cst_19 : f32 to vector<48x8xf32>
    %44 = arith.addf %43, %42 : vector<48x8xf32>
    %45 = arith.mulf %37, %44 : vector<48x8xf32>
    %c0_20 = arith.constant 0 : index
    %c0_21 = arith.constant 0 : index
    %46 = vector.load %arg4[%c0_20, %c0_21] : memref<48x8xf32, #tpu.memory_space<vmem>>, vector<48x8xf32>
    tpu.vector_store %arg4[%c0_20, %c0_21], %45 {strides = array<i32>} : memref<48x8xf32, #tpu.memory_space<vmem>>, vector<48x8xf32>,
    return
  }
  func.func @transform_0(%arg0: i32) -> (i32, i32) {
    %c0_i32 = arith.constant 0 : i32
    %c0_i32_0 = arith.constant 0 : i32
    return %arg0, %c0_i32 : i32, i32
  }
  func.func @transform_1(%arg0: i32) -> (i32, i32) {
    %c0_i32 = arith.constant 0 : i32
    %c0_i32_0 = arith.constant 0 : i32
    %c0_i32_1 = arith.constant 0 : i32
    return %c0_i32, %c0_i32_0 : i32, i32
  }
  func.func @transform_2(%arg0: i32) -> (i32, i32) {
    %c0_i32 = arith.constant 0 : i32
    %c0_i32_0 = arith.constant 0 : i32
    %c0_i32_1 = arith.constant 0 : i32
    return %c0_i32, %c0_i32_0 : i32, i32
  }
  func.func @transform_3(%arg0: i32) -> (i32, i32) {
    %c0_i32 = arith.constant 0 : i32
    %c0_i32_0 = arith.constant 0 : i32
    return %arg0, %c0_i32 : i32, i32
  }
}

module attributes {stable_mosaic.version = 11 : i64} {
  func.func @_spectral_kernel(%arg0: i32, %arg1: memref<12x2x16xf32, #tpu.memory_space<vmem>>, %arg2: memref<12x2x16xf32, #tpu.memory_space<vmem>>, %arg3: memref<12x16x16xf32, #tpu.memory_space<vmem>>, %arg4: memref<12x16x16xf32, #tpu.memory_space<vmem>>, %arg5: memref<12x2x16xf32, #tpu.memory_space<vmem>>, %arg6: memref<12x2x16xf32, #tpu.memory_space<vmem>>) attributes {dimension_semantics = [#tpu.dimension_semantics<parallel>], iteration_bounds = array<i64: 2>, scalar_prefetch = 0 : i64, scratch_operands = 0 : i64, tpu.core_type = #tpu.core_type<tc>, window_params = [{transform_indices = @transform_0, window_bounds = array<i64: 12, 2, 16>}, {transform_indices = @transform_1, window_bounds = array<i64: 12, 2, 16>}, {transform_indices = @transform_2, window_bounds = array<i64: 12, 16, 16>}, {transform_indices = @transform_3, window_bounds = array<i64: 12, 16, 16>}, {transform_indices = @transform_4, window_bounds = array<i64: 12, 2, 16>}, {transform_indices = @transform_5, window_bounds = array<i64: 12, 2, 16>}]} {
    %c0 = arith.constant 0 : index
    %c0_0 = arith.constant 0 : index
    %c0_1 = arith.constant 0 : index
    %0 = vector.load %arg1[%c0, %c0_0, %c0_1] : memref<12x2x16xf32, #tpu.memory_space<vmem>>, vector<12x2x16xf32>
    %c0_2 = arith.constant 0 : index
    %c0_3 = arith.constant 0 : index
    %c0_4 = arith.constant 0 : index
    %1 = vector.load %arg2[%c0_2, %c0_3, %c0_4] : memref<12x2x16xf32, #tpu.memory_space<vmem>>, vector<12x2x16xf32>
    %c0_5 = arith.constant 0 : index
    %c0_6 = arith.constant 0 : index
    %c0_7 = arith.constant 0 : index
    %2 = vector.load %arg3[%c0_5, %c0_6, %c0_7] : memref<12x16x16xf32, #tpu.memory_space<vmem>>, vector<12x16x16xf32>
    %c0_8 = arith.constant 0 : index
    %c0_9 = arith.constant 0 : index
    %c0_10 = arith.constant 0 : index
    %3 = vector.load %arg4[%c0_8, %c0_9, %c0_10] : memref<12x16x16xf32, #tpu.memory_space<vmem>>, vector<12x16x16xf32>
    "tpu.trace_start"() <{level = 10 : i32, message = "kbi,kio->kbo"}> : () -> ()
    %cst = arith.constant dense<0.000000e+00> : vector<12x2x16xf32>
    %4 = tpu.matmul %0, %2, %cst {dimension_numbers = #tpu.dot_dimension_numbers<[2], [1], [1], [2], [0, 0, 0, 1, 1, 2], [0], [0]>} : vector<12x2x16xf32>, vector<12x16x16xf32>, vector<12x2x16xf32> -> vector<12x2x16xf32>
    %cst_11 = arith.constant dense<0.000000e+00> : vector<12x2x16xf32>
    %5 = tpu.matmul %1, %3, %cst_11 {dimension_numbers = #tpu.dot_dimension_numbers<[2], [1], [1], [2], [0, 0, 0, 1, 1, 2], [0], [0]>} : vector<12x2x16xf32>, vector<12x16x16xf32>, vector<12x2x16xf32> -> vector<12x2x16xf32>
    "tpu.trace_stop"() : () -> ()
    %6 = arith.addf %0, %1 : vector<12x2x16xf32>
    %7 = arith.addf %2, %3 : vector<12x16x16xf32>
    "tpu.trace_start"() <{level = 10 : i32, message = "kbi,kio->kbo"}> : () -> ()
    %cst_12 = arith.constant dense<0.000000e+00> : vector<12x2x16xf32>
    %8 = tpu.matmul %6, %7, %cst_12 {dimension_numbers = #tpu.dot_dimension_numbers<[2], [1], [1], [2], [0, 0, 0, 1, 1, 2], [0], [0]>} : vector<12x2x16xf32>, vector<12x16x16xf32>, vector<12x2x16xf32> -> vector<12x2x16xf32>
    "tpu.trace_stop"() : () -> ()
    %9 = arith.subf %4, %5 : vector<12x2x16xf32>
    %c0_13 = arith.constant 0 : index
    %c0_14 = arith.constant 0 : index
    %c0_15 = arith.constant 0 : index
    %10 = vector.load %arg5[%c0_13, %c0_14, %c0_15] : memref<12x2x16xf32, #tpu.memory_space<vmem>>, vector<12x2x16xf32>
    tpu.vector_store %arg5[%c0_13, %c0_14, %c0_15], %9 {strides = array<i32>} : memref<12x2x16xf32, #tpu.memory_space<vmem>>, vector<12x2x16xf32>,
    %11 = arith.subf %8, %4 : vector<12x2x16xf32>
    %12 = arith.subf %11, %5 : vector<12x2x16xf32>
    %c0_16 = arith.constant 0 : index
    %c0_17 = arith.constant 0 : index
    %c0_18 = arith.constant 0 : index
    %13 = vector.load %arg6[%c0_16, %c0_17, %c0_18] : memref<12x2x16xf32, #tpu.memory_space<vmem>>, vector<12x2x16xf32>
    tpu.vector_store %arg6[%c0_16, %c0_17, %c0_18], %12 {strides = array<i32>} : memref<12x2x16xf32, #tpu.memory_space<vmem>>, vector<12x2x16xf32>,
    return
  }
  func.func @transform_0(%arg0: i32) -> (i32, i32, i32) {
    %c0_i32 = arith.constant 0 : i32
    %c0_i32_0 = arith.constant 0 : i32
    %c0_i32_1 = arith.constant 0 : i32
    return %arg0, %c0_i32, %c0_i32_0 : i32, i32, i32
  }
  func.func @transform_1(%arg0: i32) -> (i32, i32, i32) {
    %c0_i32 = arith.constant 0 : i32
    %c0_i32_0 = arith.constant 0 : i32
    %c0_i32_1 = arith.constant 0 : i32
    return %arg0, %c0_i32, %c0_i32_0 : i32, i32, i32
  }
  func.func @transform_2(%arg0: i32) -> (i32, i32, i32) {
    %c0_i32 = arith.constant 0 : i32
    %c0_i32_0 = arith.constant 0 : i32
    %c0_i32_1 = arith.constant 0 : i32
    return %arg0, %c0_i32, %c0_i32_0 : i32, i32, i32
  }
  func.func @transform_3(%arg0: i32) -> (i32, i32, i32) {
    %c0_i32 = arith.constant 0 : i32
    %c0_i32_0 = arith.constant 0 : i32
    %c0_i32_1 = arith.constant 0 : i32
    return %arg0, %c0_i32, %c0_i32_0 : i32, i32, i32
  }
  func.func @transform_4(%arg0: i32) -> (i32, i32, i32) {
    %c0_i32 = arith.constant 0 : i32
    %c0_i32_0 = arith.constant 0 : i32
    %c0_i32_1 = arith.constant 0 : i32
    return %arg0, %c0_i32, %c0_i32_0 : i32, i32, i32
  }
  func.func @transform_5(%arg0: i32) -> (i32, i32, i32) {
    %c0_i32 = arith.constant 0 : i32
    %c0_i32_0 = arith.constant 0 : i32
    %c0_i32_1 = arith.constant 0 : i32
    return %arg0, %c0_i32, %c0_i32_0 : i32, i32, i32
  }
}

module attributes {stable_mosaic.version = 11 : i64} {
  func.func @_add_gelu_kernel(%arg0: i32, %arg1: memref<128x16xf32, #tpu.memory_space<vmem>>, %arg2: memref<128x16xf32, #tpu.memory_space<vmem>>, %arg3: memref<128x16xf32, #tpu.memory_space<vmem>>) attributes {dimension_semantics = [#tpu.dimension_semantics<parallel>], iteration_bounds = array<i64: 2>, scalar_prefetch = 0 : i64, scratch_operands = 0 : i64, tpu.core_type = #tpu.core_type<tc>, window_params = [{transform_indices = @transform_0, window_bounds = array<i64: 128, 16>}, {transform_indices = @transform_1, window_bounds = array<i64: 128, 16>}, {transform_indices = @transform_2, window_bounds = array<i64: 128, 16>}]} {
    %c0 = arith.constant 0 : index
    %c0_0 = arith.constant 0 : index
    %0 = vector.load %arg1[%c0, %c0_0] : memref<128x16xf32, #tpu.memory_space<vmem>>, vector<128x16xf32>
    %c0_1 = arith.constant 0 : index
    %c0_2 = arith.constant 0 : index
    %1 = vector.load %arg2[%c0_1, %c0_2] : memref<128x16xf32, #tpu.memory_space<vmem>>, vector<128x16xf32>
    %2 = arith.addf %0, %1 : vector<128x16xf32>
    %cst = arith.constant 0.707106769 : f32
    %3 = vector.broadcast %cst : f32 to vector<128x16xf32>
    %4 = arith.mulf %2, %3 : vector<128x16xf32>
    %5 = math.absf %4 : vector<128x16xf32>
    %cst_3 = arith.constant 0.327591091 : f32
    %6 = vector.broadcast %cst_3 : f32 to vector<128x16xf32>
    %7 = arith.mulf %6, %5 : vector<128x16xf32>
    %cst_4 = arith.constant 1.000000e+00 : f32
    %8 = vector.broadcast %cst_4 : f32 to vector<128x16xf32>
    %9 = arith.addf %8, %7 : vector<128x16xf32>
    %cst_5 = arith.constant 1.000000e+00 : f32
    %10 = vector.broadcast %cst_5 : f32 to vector<128x16xf32>
    %11 = arith.divf %10, %9 : vector<128x16xf32>
    %cst_6 = arith.constant 1.06140542 : f32
    %12 = vector.broadcast %cst_6 : f32 to vector<128x16xf32>
    %13 = arith.mulf %11, %12 : vector<128x16xf32>
    %cst_7 = arith.constant -1.45315206 : f32
    %14 = vector.broadcast %cst_7 : f32 to vector<128x16xf32>
    %15 = arith.addf %14, %13 : vector<128x16xf32>
    %16 = arith.mulf %11, %15 : vector<128x16xf32>
    %cst_8 = arith.constant 1.42141378 : f32
    %17 = vector.broadcast %cst_8 : f32 to vector<128x16xf32>
    %18 = arith.addf %17, %16 : vector<128x16xf32>
    %19 = arith.mulf %11, %18 : vector<128x16xf32>
    %cst_9 = arith.constant -0.284496725 : f32
    %20 = vector.broadcast %cst_9 : f32 to vector<128x16xf32>
    %21 = arith.addf %20, %19 : vector<128x16xf32>
    %22 = arith.mulf %11, %21 : vector<128x16xf32>
    %cst_10 = arith.constant 0.254829586 : f32
    %23 = vector.broadcast %cst_10 : f32 to vector<128x16xf32>
    %24 = arith.addf %23, %22 : vector<128x16xf32>
    %25 = arith.mulf %11, %24 : vector<128x16xf32>
    %cst_11 = arith.constant 0.000000e+00 : f32
    %26 = vector.broadcast %cst_11 : f32 to vector<128x16xf32>
    %27 = arith.subf %26, %5 : vector<128x16xf32>
    %28 = arith.mulf %27, %5 : vector<128x16xf32>
    %29 = math.exp %28 : vector<128x16xf32>
    %30 = arith.mulf %25, %29 : vector<128x16xf32>
    %cst_12 = arith.constant 1.000000e+00 : f32
    %31 = vector.broadcast %cst_12 : f32 to vector<128x16xf32>
    %32 = arith.subf %31, %30 : vector<128x16xf32>
    %cst_13 = arith.constant 5.000000e-01 : f32
    %33 = vector.broadcast %cst_13 : f32 to vector<128x16xf32>
    %34 = arith.mulf %33, %2 : vector<128x16xf32>
    %cst_14 = arith.constant 0.000000e+00 : f32
    %35 = vector.broadcast %cst_14 : f32 to vector<128x16xf32>
    %36 = arith.cmpf oge, %4, %35 : vector<128x16xf32>
    %cst_15 = arith.constant 0.000000e+00 : f32
    %37 = vector.broadcast %cst_15 : f32 to vector<128x16xf32>
    %38 = arith.subf %37, %32 : vector<128x16xf32>
    %39 = arith.select %36, %32, %38 : vector<128x16xi1>, vector<128x16xf32>
    %cst_16 = arith.constant 1.000000e+00 : f32
    %40 = vector.broadcast %cst_16 : f32 to vector<128x16xf32>
    %41 = arith.addf %40, %39 : vector<128x16xf32>
    %42 = arith.mulf %34, %41 : vector<128x16xf32>
    %c0_17 = arith.constant 0 : index
    %c0_18 = arith.constant 0 : index
    %43 = vector.load %arg3[%c0_17, %c0_18] : memref<128x16xf32, #tpu.memory_space<vmem>>, vector<128x16xf32>
    tpu.vector_store %arg3[%c0_17, %c0_18], %42 {strides = array<i32>} : memref<128x16xf32, #tpu.memory_space<vmem>>, vector<128x16xf32>,
    return
  }
  func.func @transform_0(%arg0: i32) -> (i32, i32) {
    %c0_i32 = arith.constant 0 : i32
    %c0_i32_0 = arith.constant 0 : i32
    return %arg0, %c0_i32 : i32, i32
  }
  func.func @transform_1(%arg0: i32) -> (i32, i32) {
    %c0_i32 = arith.constant 0 : i32
    %c0_i32_0 = arith.constant 0 : i32
    return %arg0, %c0_i32 : i32, i32
  }
  func.func @transform_2(%arg0: i32) -> (i32, i32) {
    %c0_i32 = arith.constant 0 : i32
    %c0_i32_0 = arith.constant 0 : i32
    return %arg0, %c0_i32 : i32, i32
  }
}

module attributes {stable_mosaic.version = 11 : i64} {
  func.func @_linear_kernel(%arg0: i32, %arg1: memref<128x16xf32, #tpu.memory_space<vmem>>, %arg2: memref<16x16xf32, #tpu.memory_space<vmem>>, %arg3: memref<128x16xf32, #tpu.memory_space<vmem>>) attributes {dimension_semantics = [#tpu.dimension_semantics<parallel>], iteration_bounds = array<i64: 2>, scalar_prefetch = 0 : i64, scratch_operands = 0 : i64, tpu.core_type = #tpu.core_type<tc>, window_params = [{transform_indices = @transform_0, window_bounds = array<i64: 128, 16>}, {pipeline_mode = #tpu.pipeline_mode<synchronous>, transform_indices = @transform_1, window_bounds = array<i64: 16, 16>}, {transform_indices = @transform_2, window_bounds = array<i64: 128, 16>}]} {
    %c0 = arith.constant 0 : index
    %c0_0 = arith.constant 0 : index
    %0 = vector.load %arg1[%c0, %c0_0] : memref<128x16xf32, #tpu.memory_space<vmem>>, vector<128x16xf32>
    %c0_1 = arith.constant 0 : index
    %c0_2 = arith.constant 0 : index
    %1 = vector.load %arg2[%c0_1, %c0_2] : memref<16x16xf32, #tpu.memory_space<vmem>>, vector<16x16xf32>
    %cst = arith.constant dense<0.000000e+00> : vector<128x16xf32>
    %2 = tpu.matmul %0, %1, %cst {dimension_numbers = #tpu.dot_dimension_numbers<[1], [0], [0], [1], [0, 0, 1, 1], [], []>} : vector<128x16xf32>, vector<16x16xf32>, vector<128x16xf32> -> vector<128x16xf32>
    %c0_3 = arith.constant 0 : index
    %c0_4 = arith.constant 0 : index
    %3 = vector.load %arg3[%c0_3, %c0_4] : memref<128x16xf32, #tpu.memory_space<vmem>>, vector<128x16xf32>
    tpu.vector_store %arg3[%c0_3, %c0_4], %2 {strides = array<i32>} : memref<128x16xf32, #tpu.memory_space<vmem>>, vector<128x16xf32>,
    return
  }
  func.func @transform_0(%arg0: i32) -> (i32, i32) {
    %c0_i32 = arith.constant 0 : i32
    %c0_i32_0 = arith.constant 0 : i32
    return %arg0, %c0_i32 : i32, i32
  }
  func.func @transform_1(%arg0: i32) -> (i32, i32) {
    %c0_i32 = arith.constant 0 : i32
    %c0_i32_0 = arith.constant 0 : i32
    %c0_i32_1 = arith.constant 0 : i32
    return %c0_i32, %c0_i32_0 : i32, i32
  }
  func.func @transform_2(%arg0: i32) -> (i32, i32) {
    %c0_i32 = arith.constant 0 : i32
    %c0_i32_0 = arith.constant 0 : i32
    return %arg0, %c0_i32 : i32, i32
  }
}

module attributes {stable_mosaic.version = 11 : i64} {
  func.func @_head_kernel(%arg0: i32, %arg1: memref<128x16xf32, #tpu.memory_space<vmem>>, %arg2: memref<16x128xf32, #tpu.memory_space<vmem>>, %arg3: memref<1x128xf32, #tpu.memory_space<vmem>>, %arg4: memref<128x1xf32, #tpu.memory_space<vmem>>, %arg5: memref<1x1xf32, #tpu.memory_space<vmem>>, %arg6: memref<128x1xf32, #tpu.memory_space<vmem>>) attributes {dimension_semantics = [#tpu.dimension_semantics<parallel>], iteration_bounds = array<i64: 2>, scalar_prefetch = 0 : i64, scratch_operands = 0 : i64, tpu.core_type = #tpu.core_type<tc>, window_params = [{transform_indices = @transform_0, window_bounds = array<i64: 128, 16>}, {pipeline_mode = #tpu.pipeline_mode<synchronous>, transform_indices = @transform_1, window_bounds = array<i64: 16, 128>}, {pipeline_mode = #tpu.pipeline_mode<synchronous>, transform_indices = @transform_2, window_bounds = array<i64: 1, 128>}, {pipeline_mode = #tpu.pipeline_mode<synchronous>, transform_indices = @transform_3, window_bounds = array<i64: 128, 1>}, {pipeline_mode = #tpu.pipeline_mode<synchronous>, transform_indices = @transform_4, window_bounds = array<i64: 1, 1>}, {transform_indices = @transform_5, window_bounds = array<i64: 128, 1>}]} {
    %c0 = arith.constant 0 : index
    %c0_0 = arith.constant 0 : index
    %0 = vector.load %arg1[%c0, %c0_0] : memref<128x16xf32, #tpu.memory_space<vmem>>, vector<128x16xf32>
    %c0_1 = arith.constant 0 : index
    %c0_2 = arith.constant 0 : index
    %1 = vector.load %arg2[%c0_1, %c0_2] : memref<16x128xf32, #tpu.memory_space<vmem>>, vector<16x128xf32>
    %cst = arith.constant dense<0.000000e+00> : vector<128x128xf32>
    %2 = tpu.matmul %0, %1, %cst {dimension_numbers = #tpu.dot_dimension_numbers<[1], [0], [0], [1], [0, 0, 1, 1], [], []>} : vector<128x16xf32>, vector<16x128xf32>, vector<128x128xf32> -> vector<128x128xf32>
    %c0_3 = arith.constant 0 : index
    %c0_4 = arith.constant 0 : index
    %3 = vector.load %arg3[%c0_3, %c0_4] : memref<1x128xf32, #tpu.memory_space<vmem>>, vector<1x128xf32>
    %4 = vector.broadcast %3 : vector<1x128xf32> to vector<128x128xf32>
    %5 = arith.addf %2, %4 : vector<128x128xf32>
    %cst_5 = arith.constant 0.707106769 : f32
    %6 = vector.broadcast %cst_5 : f32 to vector<128x128xf32>
    %7 = arith.mulf %5, %6 : vector<128x128xf32>
    %8 = math.absf %7 : vector<128x128xf32>
    %cst_6 = arith.constant 0.327591091 : f32
    %9 = vector.broadcast %cst_6 : f32 to vector<128x128xf32>
    %10 = arith.mulf %9, %8 : vector<128x128xf32>
    %cst_7 = arith.constant 1.000000e+00 : f32
    %11 = vector.broadcast %cst_7 : f32 to vector<128x128xf32>
    %12 = arith.addf %11, %10 : vector<128x128xf32>
    %cst_8 = arith.constant 1.000000e+00 : f32
    %13 = vector.broadcast %cst_8 : f32 to vector<128x128xf32>
    %14 = arith.divf %13, %12 : vector<128x128xf32>
    %cst_9 = arith.constant 1.06140542 : f32
    %15 = vector.broadcast %cst_9 : f32 to vector<128x128xf32>
    %16 = arith.mulf %14, %15 : vector<128x128xf32>
    %cst_10 = arith.constant -1.45315206 : f32
    %17 = vector.broadcast %cst_10 : f32 to vector<128x128xf32>
    %18 = arith.addf %17, %16 : vector<128x128xf32>
    %19 = arith.mulf %14, %18 : vector<128x128xf32>
    %cst_11 = arith.constant 1.42141378 : f32
    %20 = vector.broadcast %cst_11 : f32 to vector<128x128xf32>
    %21 = arith.addf %20, %19 : vector<128x128xf32>
    %22 = arith.mulf %14, %21 : vector<128x128xf32>
    %cst_12 = arith.constant -0.284496725 : f32
    %23 = vector.broadcast %cst_12 : f32 to vector<128x128xf32>
    %24 = arith.addf %23, %22 : vector<128x128xf32>
    %25 = arith.mulf %14, %24 : vector<128x128xf32>
    %cst_13 = arith.constant 0.254829586 : f32
    %26 = vector.broadcast %cst_13 : f32 to vector<128x128xf32>
    %27 = arith.addf %26, %25 : vector<128x128xf32>
    %28 = arith.mulf %14, %27 : vector<128x128xf32>
    %cst_14 = arith.constant 0.000000e+00 : f32
    %29 = vector.broadcast %cst_14 : f32 to vector<128x128xf32>
    %30 = arith.subf %29, %8 : vector<128x128xf32>
    %31 = arith.mulf %30, %8 : vector<128x128xf32>
    %32 = math.exp %31 : vector<128x128xf32>
    %33 = arith.mulf %28, %32 : vector<128x128xf32>
    %cst_15 = arith.constant 1.000000e+00 : f32
    %34 = vector.broadcast %cst_15 : f32 to vector<128x128xf32>
    %35 = arith.subf %34, %33 : vector<128x128xf32>
    %cst_16 = arith.constant 5.000000e-01 : f32
    %36 = vector.broadcast %cst_16 : f32 to vector<128x128xf32>
    %37 = arith.mulf %36, %5 : vector<128x128xf32>
    %cst_17 = arith.constant 0.000000e+00 : f32
    %38 = vector.broadcast %cst_17 : f32 to vector<128x128xf32>
    %39 = arith.cmpf oge, %7, %38 : vector<128x128xf32>
    %cst_18 = arith.constant 0.000000e+00 : f32
    %40 = vector.broadcast %cst_18 : f32 to vector<128x128xf32>
    %41 = arith.subf %40, %35 : vector<128x128xf32>
    %42 = arith.select %39, %35, %41 : vector<128x128xi1>, vector<128x128xf32>
    %cst_19 = arith.constant 1.000000e+00 : f32
    %43 = vector.broadcast %cst_19 : f32 to vector<128x128xf32>
    %44 = arith.addf %43, %42 : vector<128x128xf32>
    %45 = arith.mulf %37, %44 : vector<128x128xf32>
    %c0_20 = arith.constant 0 : index
    %c0_21 = arith.constant 0 : index
    %46 = vector.load %arg4[%c0_20, %c0_21] : memref<128x1xf32, #tpu.memory_space<vmem>>, vector<128x1xf32>
    %cst_22 = arith.constant dense<0.000000e+00> : vector<128x1xf32>
    %47 = tpu.matmul %45, %46, %cst_22 {dimension_numbers = #tpu.dot_dimension_numbers<[1], [0], [0], [1], [0, 0, 1, 1], [], []>} : vector<128x128xf32>, vector<128x1xf32>, vector<128x1xf32> -> vector<128x1xf32>
    %c0_23 = arith.constant 0 : index
    %c0_24 = arith.constant 0 : index
    %48 = vector.load %arg5[%c0_23, %c0_24] : memref<1x1xf32, #tpu.memory_space<vmem>>, vector<1x1xf32>
    %49 = vector.broadcast %48 : vector<1x1xf32> to vector<128x1xf32>
    %50 = arith.addf %47, %49 : vector<128x1xf32>
    %c0_25 = arith.constant 0 : index
    %c0_26 = arith.constant 0 : index
    %51 = vector.load %arg6[%c0_25, %c0_26] : memref<128x1xf32, #tpu.memory_space<vmem>>, vector<128x1xf32>
    tpu.vector_store %arg6[%c0_25, %c0_26], %50 {strides = array<i32>} : memref<128x1xf32, #tpu.memory_space<vmem>>, vector<128x1xf32>,
    return
  }
  func.func @transform_0(%arg0: i32) -> (i32, i32) {
    %c0_i32 = arith.constant 0 : i32
    %c0_i32_0 = arith.constant 0 : i32
    return %arg0, %c0_i32 : i32, i32
  }
  func.func @transform_1(%arg0: i32) -> (i32, i32) {
    %c0_i32 = arith.constant 0 : i32
    %c0_i32_0 = arith.constant 0 : i32
    %c0_i32_1 = arith.constant 0 : i32
    return %c0_i32, %c0_i32_0 : i32, i32
  }
  func.func @transform_2(%arg0: i32) -> (i32, i32) {
    %c0_i32 = arith.constant 0 : i32
    %c0_i32_0 = arith.constant 0 : i32
    %c0_i32_1 = arith.constant 0 : i32
    return %c0_i32, %c0_i32_0 : i32, i32
  }
  func.func @transform_3(%arg0: i32) -> (i32, i32) {
    %c0_i32 = arith.constant 0 : i32
    %c0_i32_0 = arith.constant 0 : i32
    %c0_i32_1 = arith.constant 0 : i32
    return %c0_i32, %c0_i32_0 : i32, i32
  }
  func.func @transform_4(%arg0: i32) -> (i32, i32) {
    %c0_i32 = arith.constant 0 : i32
    %c0_i32_0 = arith.constant 0 : i32
    %c0_i32_1 = arith.constant 0 : i32
    return %c0_i32, %c0_i32_0 : i32, i32
  }
  func.func @transform_5(%arg0: i32) -> (i32, i32) {
    %c0_i32 = arith.constant 0 : i32
    %c0_i32_0 = arith.constant 0 : i32
    return %arg0, %c0_i32 : i32, i32
  }
}

</mosaic_0001>

<bundles_post_ra>
// kernel: tpu_custom_call.1
= control target key start
LH: loop header
LB: loop body
LE: loop exit
PB: predicated region body
PF: predicated region fallthrough
CT: control target
= control target key end

     0   :  { %6 = vsyncpa [#allocation3], 0  ;;  %s105_s0 = inlined_call_operand.hbm [shape: f32[8,128], index: 0, kind: input, shape index: {}]   ;;  %s106_s1 = inlined_call_operand.hbm [shape: f32[8,128], index: 1, kind: output, shape index: {}]  }
   0x1   :  { %7 = vsyncpa [#allocation4], 0  ;;  %s87_s6 = smov [#allocation2]  }
   0x2   :  { %s14_s7 = sshll.u32 %s87_s6, 4  ;;  %s15_s7 = int_to_ptr.vmem [resolvable:$true] %s14_s7 }
   0x3   :  { %s51_s8 = scalar_lea.vmem %s15_s7, 128  ;;  %p56_p1 = scmp.lt.s32.totalorder %s15_s7, %s15_s7 }
   0x4   :  { %p52_p0 = scmp.ne.s32.totalorder %s15_s7, %s51_s8  ;;  %p57_p2 = scmp.lt.s32.totalorder %s51_s8, %s51_s8 }
   0x6   :  { %p58_p3 = por %p57_p2, %p56_p1 }
   0x8   :  { %p59_p4 = pnand %p58_p3, %p52_p0 }
   0xa   :  { %62 = shalt.err (!%p59_p4)
}
   0xb   :  { %17 = dma.hbm_to_vmem [thread:$0]  %s105_s0, 128, %s15_s7, [#allocation3]  }
   0xc   :  { %83 = dma.done.wait [#allocation3], 128  }
   0xd   :  { %84 = vsyncadd [#allocation3], 4294967168  ;;  %v21_v0 = vld [vmem:[#allocation2] sm:$0xff]  ;;  %s88_s11 = smov [#allocation5]  }
   0xe   :  { %41 = verf.f32 %v21_v0  ;;  %s30_s12 = sshll.u32 %s88_s11, 4  ;;  %s31_s12 = int_to_ptr.vmem [resolvable:$true] %s30_s12 }
   0xf   :  { %s63_s13 = scalar_lea.vmem %s31_s12, 128  ;;  %p68_p6 = scmp.lt.s32.totalorder %s31_s12, %s31_s12 }
  0x10   :  { %p64_p5 = scmp.ne.s32.totalorder %s31_s12, %s63_s13  ;;  %p69_p7 = scmp.lt.s32.totalorder %s63_s13, %s63_s13 }
  0x12   :  { %p70_p8 = por %p69_p7, %p68_p6 }
  0x14   :  { %p71_p9 = pnand %p70_p8, %p64_p5 }
  0x1b   :  { %v42_v1 = vpop.eup %41 }
  0x1c   :  { %23 = vst [vmem:[#allocation5] sm:$0xff] %v42_v1 }
  0x1d   :  { %74 = shalt.err (!%p71_p9)
}
  0x1e   :  { %33 = dma.vmem_to_hbm [thread:$0]  %s31_s12, 128, %s106_s1, [#allocation4]  }
  0x1f   :  { %85 = dma.done.wait [#allocation4], 128  }
  0x20   :  { %86 = vsyncadd [#allocation4], 4294967168 }
  0x21   :  { %37 = vsyncpa [#allocation3], 1 }
  0x22   :  { %38 = vsyncpa [#allocation4], 1 }

// kernel: dfno_forward.9
= control target key start
LH: loop header
LB: loop body
LE: loop exit
PB: predicated region body
PF: predicated region fallthrough
CT: control target
= control target key end

     0   :  { %s628_s12 = smov 0   ;;  %s741_s0 = inlined_call_operand.vmem [shape: f32[96,6], index: 0, kind: input, shape index: {}]   ;;  %s742_s1 = inlined_call_operand.vmem [shape: f32[6,8], index: 1, kind: input, shape index: {}]   ;;  %s743_s2 = inlined_call_operand.vmem [shape: f32[1,8], index: 2, kind: input, shape index: {}]   ;;  %s744_s3 = inlined_call_operand.vmem [shape: f32[96,8], index: 3, kind: output, shape index: {}]  }
   0x1 LB: > { %s531_s13 = sadd.s32 4294967295, %s606_s12   ;;  %p535_p0 = scmp.ge.s32.totalorder %s606_s12, 1  ;;  %s606_s12 = sphi %s628_s12, %s13_s12  }
   0x2   : > { %p138_p1 = scmp.lt.s32.totalorder %s606_s12, 3 }
   0x4   : > { %p139_p2 = pnand %p535_p0, %p138_p1 }
   0x5   : > { %s162_s16 = smul.u32 (!%p139_p2), 6, %s531_s13 }
   0x6   : > { %142 = sbr.rel (%p139_p2) target bundleno = 269 (0x10d), region = 32 }
   0x7   : > { %p163_p3 = scmp.lt.s32.totalorder (!%p139_p2), %s162_s16, 11 }
   0xb   : > { %v180_v0 = vld [vmem:[%s742_s1] sm:$0x3f]  ;;  %vm207_vm0 = vcmask 1045504   ;;  %s746_s16 = smov (!%p163_p3, %s162_s16), 11  ;;  %vm188_vm1 = vcmask 48128   ;;  %vm468_vm2 = vcmask 64512  }
   0xc   : > { %555 = vmatprep.subr.msk.mxu0 %vm207_vm0, %v180_v0  ;;  %566 = vmatprep.subr.msk.mxu1 %vm207_vm0, %v180_v0  ;;  %s536_s17 = sshll.u32 %s746_s16, 3  ;;  %v538_v7 = vld [vmem:[%s743_s2] ss:$0 sm:$0xff] }
   0xd   : > { %556 = vmatpush3.msk.msra.mxu0 %vm207_vm0, %v180_v0  ;;  %567 = vmatpush3.msk.msra.mxu1 %vm207_vm0, %v180_v0  ;;  %s166_s20 = scalar_lea.vmem %s741_s0, %s536_s17  ;;  %s714_s25 = scalar_lea.vmem %s744_s3, %s536_s17 }
   0xe   : > { %v174_v1 = vld [vmem:[%s166_s20] sm:$0xff]  ;;  %v176_v2 = vld [vmem:[%s166_s20 + $0x10] sm:$0xff]  ;;  %v175_v3 = vld [vmem:[%s166_s20 + $0x8] sm:$0xff] }
   0xf   : > { %557 = vmatprep.mubr.msk.f32.mxu0 %vm188_vm1, %v174_v1  ;;  %560 = vmatprep.mubr.msk.f32.mxu1 %vm188_vm1, %v176_v2  ;;  %v177_v4 = vld [vmem:[%s166_s20 + $0x18] sm:$0xff]  ;;  %v178_v5 = vld [vmem:[%s166_s20 + $0x20] sm:$0xff]  ;;  %v179_v6 = vld [vmem:[%s166_s20 + $0x28] sm:$0xff] }
  0x10   : > { %558 = vmatmul.mubr.msk.f32.vlgmr.msra.gmra.mxu0 %vm188_vm1, %v175_v3  ;;  %561 = vmatmul.mubr.msk.f32.vlgmr.msra.gmra.mxu1 %vm188_vm1, %v177_v4 }
  0x11   : > { %563 = vmatprep.mubr.msk.f32.mxu1 %vm188_vm1, %v178_v5 }
  0x14   : > { %564 = vmatmul.mubr.msk.f32.gmra.mxu1 %vm188_vm1, %v179_v6 }
  0xd0   : > { %v559_v8 = vpop.f32.mrf.mxu0  ;;  %v562_v9 = vpop.f32.mrf.mxu1 }
  0xd1   : > { %v650_v10 = vadd.f32 %v559_v8, %v538_v7  ;;  %v652_v11 = vadd.f32 %v562_v9, %v538_v7 }
  0xd2   : > { %v277_v12 = vpop.f32.mrf.mxu0  ;;  %v287_v13 = vpop.f32.mrf.mxu1 }
  0xd3   : > { %v655_v14 = vmul.f32 0.70710677, %v650_v10  ;;  %v658_v15 = vmul.f32 0.70710677, %v652_v11  ;;  %v660_v16 = vadd.f32 %v538_v7, %v277_v12  ;;  %v662_v17 = vadd.f32 %v538_v7, %v287_v13 }
  0xd4   : > { %v565_v24 = vpop.f32.mrf.mxu1 }
  0xd5   : > { %v313_v18 = vand.u32 2147483647, %v655_v14  ;;  %v315_v19 = vand.u32 2147483647, %v658_v15  ;;  %v667_v20 = vmul.f32 0.70710677, %v660_v16  ;;  %v674_v31 = vadd.f32 %v565_v24, %v538_v7 }
  0xd6   : > { %v670_v21 = vmul.f32 0.70710677, %v662_v17  ;;  %v297_v32 = vpop.f32.mrf.mxu1  ;;  %vm439_vm3 = vcmp.ge.f32.partialorder %v655_v14, 0.0  ;;  %vm441_vm4 = vcmp.ge.f32.partialorder %v658_v15, 0.0 }
  0xd7   : > { %v319_v22 = vmul.f32 0.3275911, %v313_v18  ;;  %v321_v23 = vmul.f32 0.3275911, %v315_v19  ;;  %v312_v25 = vand.u32 2147483647, %v667_v20  ;;  %v679_v36 = vadd.f32 %v538_v7, %v297_v32 }
  0xd8   : > { %v314_v26 = vand.u32 2147483647, %v670_v21  ;;  %v677_v35 = vmul.f32 0.70710677, %v674_v31  ;;  %v397_v38 = vsub.f32 0.0, %v313_v18  ;;  %v399_v40 = vsub.f32 0.0, %v315_v19 }
  0xd9   : > { %v325_v27 = vadd.f32 1.0, %v319_v22  ;;  %v327_v28 = vadd.f32 1.0, %v321_v23  ;;  %v318_v29 = vmul.f32 0.3275911, %v312_v25  ;;  %v683_v39 = vmul.f32 0.70710677, %v679_v36 }
  0xda   : > { %v320_v30 = vmul.f32 0.3275911, %v314_v26  ;;  %v317_v37 = vand.u32 2147483647, %v677_v35  ;;  %v403_v44 = vmul.f32 %v397_v38, %v313_v18  ;;  %v405_v46 = vmul.f32 %v399_v40, %v315_v19 }
  0xdb   : > { %576 = vrcp.f32 %v325_v27  ;;  %v324_v33 = vadd.f32 1.0, %v318_v29  ;;  %v316_v42 = vand.u32 2147483647, %v683_v39  ;;  %v396_v47 = vsub.f32 0.0, %v312_v25 }
  0xdc   : > { %578 = vrcp.f32 %v327_v28  ;;  %v326_v34 = vadd.f32 1.0, %v320_v30  ;;  %v323_v41 = vmul.f32 0.3275911, %v317_v37  ;;  %v398_v48 = vsub.f32 0.0, %v314_v26 }
  0xdd   : > { %580 = vrcp.f32 %v324_v33  ;;  %v322_v45 = vmul.f32 0.3275911, %v316_v42  ;;  %v410_v51 = vmul.f32 1.442695, %v403_v44  ;;  %v414_v54 = vmul.f32 1.442695, %v405_v46 }
  0xde   : > { %582 = vrcp.f32 %v326_v34  ;;  %v329_v43 = vadd.f32 1.0, %v323_v41  ;;  %v402_v55 = vmul.f32 %v396_v47, %v312_v25  ;;  %v404_v57 = vmul.f32 %v398_v48, %v314_v26 }
  0xdf   : > { %v328_v49 = vadd.f32 1.0, %v322_v45  ;;  %v401_v58 = vsub.f32 0.0, %v317_v37  ;;  %v400_v5 = vsub.f32 0.0, %v316_v42  ;;  %vm438_vm5 = vcmp.ge.f32.partialorder %v667_v20, 0.0 }
  0xe0   : > { %584 = vrcp.f32 %v329_v43  ;;  %v408_v0 = vmul.f32 1.442695, %v402_v55  ;;  %v412_v3 = vmul.f32 1.442695, %v404_v57  ;;  %vm440_vm6 = vcmp.ge.f32.partialorder %v670_v21, 0.0 }
  0xe1   : > { %586 = vrcp.f32 %v328_v49  ;;  %v407_v4 = vmul.f32 %v401_v58, %v317_v37  ;;  %v406_v24 = vmul.f32 %v400_v5, %v316_v42  ;;  %vm443_vm7 = vcmp.ge.f32.partialorder %v677_v35, 0.0 }
  0xe2   : > { %588 = vpow2.f32 %v410_v51  ;;  %vm442_vm8 = vcmp.ge.f32.partialorder %v683_v39, 0.0 }
  0xe3   : > { %590 = vpow2.f32 %v414_v54  ;;  %v418_v23 = vmul.f32 1.442695, %v407_v4  ;;  %v416_v41 = vmul.f32 1.442695, %v406_v24 }
  0xe4   : > { %592 = vpow2.f32 %v408_v0 }
  0xe5   : > { %594 = vpow2.f32 %v412_v3 }
  0xe6   : > { %596 = vpow2.f32 %v418_v23 }
  0xe7   : > { %598 = vpow2.f32 %v416_v41 }
  0xe8   : > { %v577_v50 = vpop.eup %576 }
  0xe9   : > { %v579_v52 = vpop.eup %578  ;;  %v343_v53 = vmul.f32 1.0614054, %v577_v50 }
  0xea   : > { %v345_v56 = vmul.f32 1.0614054, %v579_v52  ;;  %v581_v60 = vpop.eup %580 }
  0xeb   : > { %v349_v59 = vadd.f32 -1.4531521, %v343_v53  ;;  %v342_v63 = vmul.f32 1.0614054, %v581_v60  ;;  %v686_v1 = vpop.eup %582 }
  0xec   : > { %v351_v61 = vadd.f32 -1.4531521, %v345_v56  ;;  %v344_v8 = vmul.f32 1.0614054, %v686_v1 }
  0xed   : > { %v355_v62 = vmul.f32 %v577_v50, %v349_v59  ;;  %v348_v7 = vadd.f32 -1.4531521, %v342_v63  ;;  %v689_v19 = vpop.eup %584 }
  0xee   : > { %v357_v2 = vmul.f32 %v579_v52, %v351_v61  ;;  %v350_v18 = vadd.f32 -1.4531521, %v344_v8  ;;  %v347_v28 = vmul.f32 1.0614054, %v689_v19  ;;  %v693_v30 = vpop.eup %586 }
  0xef   : > { %v361_v6 = vadd.f32 1.4214138, %v355_v62  ;;  %v354_v13 = vmul.f32 %v581_v60, %v348_v7  ;;  %v346_v40 = vmul.f32 1.0614054, %v693_v30  ;;  %v589_v48 = vpop.eup %588 }
  0xf0   : > { %v363_v9 = vadd.f32 1.4214138, %v357_v2  ;;  %v356_v27 = vmul.f32 %v686_v1, %v350_v18  ;;  %v353_v37 = vadd.f32 -1.4531521, %v347_v28  ;;  %v591_v55 = vpop.eup %590 }
  0xf1   : > { %v367_v12 = vmul.f32 %v577_v50, %v361_v6  ;;  %v360_v26 = vadd.f32 1.4214138, %v354_v13  ;;  %v352_v47 = vadd.f32 -1.4531521, %v346_v40  ;;  %v593_v5 = vpop.eup %592  ;;  %v433_v6 = vmul.f32 0.5, %v650_v10 }
  0xf2   : > { %v369_v22 = vmul.f32 %v579_v52, %v363_v9  ;;  %v362_v34 = vadd.f32 1.4214138, %v356_v27  ;;  %v359_v45 = vmul.f32 %v689_v19, %v353_v37  ;;  %v595_v8 = vpop.eup %594  ;;  %v435_v27 = vmul.f32 0.5, %v652_v11 }
  0xf3   : > { %v373_v25 = vadd.f32 -0.28449672, %v367_v12  ;;  %v366_v33 = vmul.f32 %v581_v60, %v360_v26  ;;  %v358_v57 = vmul.f32 %v693_v30, %v352_v47  ;;  %v434_v47 = vmul.f32 0.5, %v662_v17 }
  0xf4   : > { %v375_v29 = vadd.f32 -0.28449672, %v369_v22  ;;  %v368_v44 = vmul.f32 %v686_v1, %v362_v34  ;;  %v365_v54 = vadd.f32 1.4214138, %v359_v45 }
  0xf5   : > { %v379_v32 = vmul.f32 %v577_v50, %v373_v25  ;;  %v372_v42 = vadd.f32 -0.28449672, %v366_v33  ;;  %v364_v0 = vadd.f32 1.4214138, %v358_v57  ;;  %v436_v57 = vmul.f32 0.5, %v679_v36 }
  0xf6   : > { %v381_v38 = vmul.f32 %v579_v52, %v375_v29  ;;  %v374_v53 = vadd.f32 -0.28449672, %v368_v44  ;;  %v371_v62 = vmul.f32 %v689_v19, %v365_v54 }
  0xf7   : > { %v385_v43 = vadd.f32 0.2548296, %v379_v32  ;;  %v378_v51 = vmul.f32 %v581_v60, %v372_v42  ;;  %v370_v7 = vmul.f32 %v693_v30, %v364_v0  ;;  %v597_v32 = vpop.eup %596 }
  0xf8   : > { %v387_v46 = vadd.f32 0.2548296, %v381_v38  ;;  %v380_v61 = vmul.f32 %v686_v1, %v374_v53  ;;  %v437_v53 = vmul.f32 0.5, %v674_v31 }
  0xf9   : > { %v391_v49 = vmul.f32 %v577_v50, %v385_v43  ;;  %v384_v59 = vadd.f32 0.2548296, %v378_v51  ;;  %v377_v50 = vadd.f32 -0.28449672, %v371_v62  ;;  %v376_v22 = vadd.f32 -0.28449672, %v370_v7 }
  0xfa   : > { %v393_v56 = vmul.f32 %v579_v52, %v387_v46  ;;  %v386_v4 = vadd.f32 0.2548296, %v380_v61  ;;  %v432_v43 = vmul.f32 0.5, %v660_v16 }
  0xfb   : > { %v421_v58 = vmul.f32 %v589_v48, %v391_v49  ;;  %v390_v3 = vmul.f32 %v581_v60, %v384_v59  ;;  %v383_v18 = vmul.f32 %v689_v19, %v377_v50  ;;  %v382_v29 = vmul.f32 %v693_v30, %v376_v22 }
  0xfc   : > { %v423_v63 = vmul.f32 %v591_v55, %v393_v56  ;;  %v392_v13 = vmul.f32 %v686_v1, %v386_v4 }
  0xfd   : > { %v427_v2 = vsub.f32 1.0, %v421_v58  ;;  %v420_v12 = vmul.f32 %v593_v5, %v390_v3  ;;  %v389_v25 = vadd.f32 0.2548296, %v383_v18  ;;  %v388_v11 = vadd.f32 0.2548296, %v382_v29 }
  0xfe   : > { %v429_v52 = vsub.f32 1.0, %v423_v63  ;;  %v422_v24 = vmul.f32 %v595_v8, %v392_v13 }
  0xff   : > { %v445_v9 = vsub.f32 0.0, %v427_v2  ;;  %v426_v10 = vsub.f32 1.0, %v420_v12  ;;  %v395_v33 = vmul.f32 %v689_v19, %v389_v25  ;;  %v394_v44 = vmul.f32 %v693_v30, %v388_v11  ;;  %v599_v19 = vpop.eup %598 }
 0x100   : > { %v447_v60 = vsub.f32 0.0, %v429_v52  ;;  %v428_v1 = vsub.f32 1.0, %v422_v24 }
 0x101   : > { %v451_v23 = vsel %vm439_vm3, %v427_v2, %v445_v9  ;;  %v444_v15 = vsub.f32 0.0, %v426_v10  ;;  %v425_v41 = vmul.f32 %v597_v32, %v395_v33  ;;  %v424_v49 = vmul.f32 %v599_v19, %v394_v44 }
 0x102   : > { %v457_v26 = vadd.f32 1.0, %v451_v23  ;;  %v453_v28 = vsel %vm441_vm4, %v429_v52, %v447_v60  ;;  %v446_v40 = vsub.f32 0.0, %v428_v1 }
 0x103   : > { %v459_v14 = vadd.f32 1.0, %v453_v28  ;;  %v450_v38 = vsel %vm438_vm5, %v426_v10, %v444_v15  ;;  %v431_v45 = vsub.f32 1.0, %v425_v41  ;;  %v430_v21 = vsub.f32 1.0, %v424_v49 }
 0x104   : > { %v463_v34 = vmul.f32 %v457_v26, %v433_v6  ;;  %v456_v42 = vadd.f32 1.0, %v450_v38  ;;  %v452_v20 = vsel %vm440_vm6, %v428_v1, %v446_v40 }
 0x105   : > { %v465_v37 = vmul.f32 %v459_v14, %v435_v27  ;;  %v458_v48 = vadd.f32 1.0, %v452_v20  ;;  %v449_v51 = vsub.f32 0.0, %v431_v45  ;;  %v448_v55 = vsub.f32 0.0, %v430_v21 }
 0x106   : > { %470 = vst.msk [vmem:[%s714_s25 + $0x8] sm:$0xff] %vm468_vm2, %v463_v34  ;;  %v462_v46 = vmul.f32 %v456_v42, %v432_v43 }
 0x107   : > { %472 = vst.msk [vmem:[%s714_s25 + $0x18] sm:$0xff] %vm468_vm2, %v465_v37  ;;  %v464_v16 = vmul.f32 %v458_v48, %v434_v47  ;;  %v455_v30 = vsel %vm443_vm7, %v431_v45, %v449_v51  ;;  %v454_v56 = vsel %vm442_vm8, %v430_v21, %v448_v55 }
 0x108   : > { %469 = vst.msk [vmem:[%s714_s25] sm:$0xff] %vm468_vm2, %v462_v46  ;;  %v461_v54 = vadd.f32 1.0, %v455_v30  ;;  %v460_v58 = vadd.f32 1.0, %v454_v56 }
 0x109   : > { %471 = vst.msk [vmem:[%s714_s25 + $0x10] sm:$0xff] %vm468_vm2, %v464_v16 }
 0x10a   : > { %v467_v17 = vmul.f32 %v461_v54, %v437_v53  ;;  %v466_v59 = vmul.f32 %v460_v58, %v436_v57 }
 0x10c   : > { %474 = vst.msk [vmem:[%s714_s25 + $0x28] sm:$0xff] %vm468_vm2, %v467_v17  ;;  %473 = vst.msk [vmem:[%s714_s25 + $0x20] sm:$0xff] %vm468_vm2, %v466_v59 }
 0x10d PF: > { %s13_s12 = sadd.s32 1, %s606_s12  }
 0x10e   : > { %p10_p4 = scmp.ge.s32.totalorder %s13_s12, 4  }
 0x110   :  { %12 = sbr.rel (!%p10_p4) target bundleno = 1 (0x1), region = 62 }

// kernel: dfno_forward.10
= control target key start
LH: loop header
LB: loop body
LE: loop exit
PB: predicated region body
PF: predicated region fallthrough
CT: control target
= control target key end

     0   :  { %s1075_s12 = smov 0   ;;  %s1429_s0 = inlined_call_operand.vmem [shape: f32[256,3], index: 0, kind: input, shape index: {}]   ;;  %s1430_s1 = inlined_call_operand.vmem [shape: f32[3,16], index: 1, kind: input, shape index: {}]   ;;  %s1431_s2 = inlined_call_operand.vmem [shape: f32[1,16], index: 2, kind: input, shape index: {}]   ;;  %s1432_s3 = inlined_call_operand.vmem [shape: f32[256,16], index: 3, kind: output, shape index: {}]  }
   0x1 LB: > { %s901_s13 = sadd.s32 4294967295, %s1053_s12   ;;  %p905_p0 = scmp.ge.s32.totalorder %s1053_s12, 1  ;;  %s1053_s12 = sphi %s1075_s12, %s13_s12  }
   0x2   : > { %p138_p1 = scmp.lt.s32.totalorder %s1053_s12, 3 }
   0x4   : > { %p139_p2 = pnand %p905_p0, %p138_p1 }
   0x5   : > { %s906_s16 = sshll.u32 (!%p139_p2), %s901_s13, 4 }
   0x6   : > { %142 = sbr.rel (%p139_p2) target bundleno = 337 (0x151), region = 32  ;;  %p163_p3 = scmp.lt.s32.totalorder (!%p139_p2), %s906_s16, 31 }
   0xb   : > { %v190_v0 = vld [vmem:[%s1430_s1] sm:$0x7]  ;;  %vm247_vm0 = vcmask 1042432   ;;  %s1434_s16 = smov (!%p163_p3, %s906_s16), 31  ;;  %vm198_vm1 = vcmask 23552   ;;  %vm828_vm4 = vcmask 130048  }
   0xc   : > { %947 = vmatprep.subr.msk.mxu0 %vm247_vm0, %v190_v0  ;;  %973 = vmatprep.subr.msk.mxu1 %vm247_vm0, %v190_v0  ;;  %s907_s17 = sshll.u32 %s1434_s16, 3  ;;  %v1113_v17 = vld [vmem:[%s1431_s2] ss:$0 sm:$0xff] }
   0xd   : > { %948 = vmatpush3.msk.msra.mxu0 %vm247_vm0, %v190_v0  ;;  %974 = vmatpush3.msk.msra.mxu1 %vm247_vm0, %v190_v0  ;;  %s166_s20 = scalar_lea.vmem %s1429_s0, %s907_s17  ;;  %s1281_s25 = scalar_lea.vmem %s1432_s3, %s907_s17 }
   0xe   : > { %v174_v1 = vld [vmem:[%s166_s20] sm:$0xff]  ;;  %v175_v3 = vld [vmem:[%s166_s20 + $0x8] sm:$0xff]  ;;  %v176_v5 = vld [vmem:[%s166_s20 + $0x10] sm:$0xff] }
   0xf   : > { %v182_v2 = vld [vmem:[%s166_s20 + $0x40] sm:$0xff]  ;;  %949 = vmatprep.mubr.msk.f32.mxu0 %vm198_vm1, %v174_v1  ;;  %v183_v4 = vld [vmem:[%s166_s20 + $0x48] sm:$0xff]  ;;  %v184_v6 = vld [vmem:[%s166_s20 + $0x50] sm:$0xff] }
  0x10   : > { %961 = vmatprep.mubr.msk.f32.mxu1 %vm198_vm1, %v182_v2  ;;  %950 = vmatmul.mubr.msk.f32.vlgmr.msra.gmra.mxu0 %vm198_vm1, %v175_v3  ;;  %v177_v7 = vld [vmem:[%s166_s20 + $0x18] sm:$0xff]  ;;  %v178_v9 = vld [vmem:[%s166_s20 + $0x20] sm:$0xff]  ;;  %v179_v11 = vld [vmem:[%s166_s20 + $0x28] sm:$0xff] }
  0x11   : > { %962 = vmatmul.mubr.msk.f32.vlgmr.msra.gmra.mxu1 %vm198_vm1, %v183_v4  ;;  %952 = vmatprep.mubr.msk.f32.mxu0 %vm198_vm1, %v176_v5  ;;  %v185_v8 = vld [vmem:[%s166_s20 + $0x58] sm:$0xff]  ;;  %v186_v10 = vld [vmem:[%s166_s20 + $0x60] sm:$0xff]  ;;  %v187_v12 = vld [vmem:[%s166_s20 + $0x68] sm:$0xff] }
  0x12   : > { %964 = vmatprep.mubr.msk.f32.mxu1 %vm198_vm1, %v184_v6  ;;  %v180_v13 = vld [vmem:[%s166_s20 + $0x30] sm:$0xff]  ;;  %v181_v15 = vld [vmem:[%s166_s20 + $0x38] sm:$0xff] }
  0x13   : > { %v188_v14 = vld [vmem:[%s166_s20 + $0x70] sm:$0xff]  ;;  %v189_v16 = vld [vmem:[%s166_s20 + $0x78] sm:$0xff] }
  0x14   : > { %953 = vmatmul.mubr.msk.f32.gmra.mxu0 %vm198_vm1, %v177_v7 }
  0x15   : > { %965 = vmatmul.mubr.msk.f32.gmra.mxu1 %vm198_vm1, %v185_v8  ;;  %955 = vmatprep.mubr.msk.f32.mxu0 %vm198_vm1, %v178_v9 }
  0x16   : > { %967 = vmatprep.mubr.msk.f32.mxu1 %vm198_vm1, %v186_v10 }
  0x18   : > { %956 = vmatmul.mubr.msk.f32.gmra.mxu0 %vm198_vm1, %v179_v11 }
  0x19   : > { %968 = vmatmul.mubr.msk.f32.gmra.mxu1 %vm198_vm1, %v187_v12  ;;  %958 = vmatprep.mubr.msk.f32.mxu0 %vm198_vm1, %v180_v13 }
  0x1a   : > { %970 = vmatprep.mubr.msk.f32.mxu1 %vm198_vm1, %v188_v14 }
  0x1c   : > { %959 = vmatmul.mubr.msk.f32.gmra.mxu0 %vm198_vm1, %v181_v15 }
  0x1d   : > { %971 = vmatmul.mubr.msk.f32.gmra.mxu1 %vm198_vm1, %v189_v16 }
  0xd0   : > { %v951_v18 = vpop.f32.mrf.mxu0 }
  0xd1   : > { %v963_v19 = vpop.f32.mrf.mxu1  ;;  %v323_v20 = vadd.f32 %v951_v18, %v1113_v17 }
  0xd2   : > { %v1117_v21 = vadd.f32 %v963_v19, %v1113_v17  ;;  %v317_v22 = vpop.f32.mrf.mxu0 }
  0xd3   : > { %v357_v23 = vpop.f32.mrf.mxu1  ;;  %v1119_v24 = vmul.f32 0.70710677, %v323_v20  ;;  %v318_v26 = vadd.f32 %v1113_v17, %v317_v22  ;;  %v1150_v0 = vmul.f32 0.5, %v323_v20 }
  0xd4   : > { %v1122_v25 = vmul.f32 0.70710677, %v1117_v21  ;;  %v1126_v27 = vadd.f32 %v1113_v17, %v357_v23  ;;  %v954_v36 = vpop.f32.mrf.mxu0  ;;  %v1158_v14 = vmul.f32 0.5, %v1117_v21 }
  0xd5   : > { %v413_v28 = vand.u32 2147483647, %v1119_v24  ;;  %v1130_v30 = vmul.f32 0.70710677, %v318_v26  ;;  %v333_v47 = vadd.f32 %v954_v36, %v1113_v17  ;;  %v966_v48 = vpop.f32.mrf.mxu1  ;;  %v1160_v15 = vmul.f32 0.5, %v318_v26 }
  0xd6   : > { %v421_v29 = vand.u32 2147483647, %v1122_v25  ;;  %v1133_v31 = vmul.f32 0.70710677, %v1126_v27  ;;  %v327_v49 = vpop.f32.mrf.mxu0  ;;  %v373_v57 = vadd.f32 %v966_v48, %v1113_v17  ;;  %v1172_v26 = vmul.f32 0.5, %v1126_v27 }
  0xd7   : > { %v429_v32 = vmul.f32 0.3275911, %v413_v28  ;;  %v637_v33 = vsub.f32 0.0, %v413_v28  ;;  %v412_v37 = vand.u32 2147483647, %v1130_v30  ;;  %v1142_v58 = vadd.f32 %v1113_v17, %v327_v49  ;;  %v367_v63 = vpop.f32.mrf.mxu1 }
  0xd8   : > { %v437_v34 = vmul.f32 0.3275911, %v421_v29  ;;  %v645_v35 = vsub.f32 0.0, %v421_v29  ;;  %v420_v38 = vand.u32 2147483647, %v1133_v31  ;;  %v1155_v8 = vadd.f32 %v1113_v17, %v367_v63  ;;  %v957_v13 = vpop.f32.mrf.mxu0 }
  0xd9   : > { %v445_v39 = vadd.f32 1.0, %v429_v32  ;;  %v653_v40 = vmul.f32 %v637_v33, %v413_v28  ;;  %v428_v43 = vmul.f32 0.3275911, %v412_v37  ;;  %v636_v44 = vsub.f32 0.0, %v412_v37  ;;  %v969_v32 = vpop.f32.mrf.mxu1 }
  0xda   : > { %v453_v41 = vadd.f32 1.0, %v437_v34  ;;  %v661_v42 = vmul.f32 %v645_v35, %v421_v29  ;;  %v436_v45 = vmul.f32 0.3275911, %v420_v38  ;;  %v644_v46 = vsub.f32 0.0, %v420_v38 }
  0xdb   : > { %983 = vrcp.f32 %v445_v39  ;;  %v670_v50 = vmul.f32 1.442695, %v653_v40  ;;  %v444_v51 = vadd.f32 1.0, %v428_v43  ;;  %v652_v52 = vmul.f32 %v636_v44, %v412_v37 }
  0xdc   : > { %985 = vrcp.f32 %v453_v41  ;;  %v452_v53 = vadd.f32 1.0, %v436_v45  ;;  %v1138_v54 = vmul.f32 0.70710677, %v333_v47  ;;  %v686_v55 = vmul.f32 1.442695, %v661_v42 }
  0xdd   : > { %v660_v56 = vmul.f32 %v644_v46, %v420_v38  ;;  %987 = vrcp.f32 %v444_v51  ;;  %v668_v59 = vmul.f32 1.442695, %v652_v52  ;;  %v1145_v61 = vmul.f32 0.70710677, %v373_v57 }
  0xde   : > { %v415_v60 = vand.u32 2147483647, %v1138_v54  ;;  %989 = vpow2.f32 %v670_v50  ;;  %v1148_v62 = vmul.f32 0.70710677, %v1142_v58  ;;  %v1163_v16 = vmul.f32 0.70710677, %v1155_v8 }
  0xdf   : > { %991 = vrcp.f32 %v452_v53  ;;  %v684_v3 = vmul.f32 1.442695, %v660_v56  ;;  %v423_v4 = vand.u32 2147483647, %v1145_v61  ;;  %v1167_v29 = vadd.f32 %v957_v13, %v1113_v17 }
  0xe0   : > { %v431_v1 = vmul.f32 0.3275911, %v415_v60  ;;  %v639_v2 = vsub.f32 0.0, %v415_v60  ;;  %993 = vpow2.f32 %v686_v55  ;;  %v414_v5 = vand.u32 2147483647, %v1148_v62 }
  0xe1   : > { %995 = vpow2.f32 %v668_v59  ;;  %v439_v9 = vmul.f32 0.3275911, %v423_v4  ;;  %v647_v10 = vsub.f32 0.0, %v423_v4  ;;  %v422_v28 = vand.u32 2147483647, %v1163_v16 }
  0xe2   : > { %v447_v6 = vadd.f32 1.0, %v431_v1  ;;  %v655_v7 = vmul.f32 %v639_v2, %v415_v60  ;;  %v430_v11 = vmul.f32 0.3275911, %v414_v5  ;;  %v638_v12 = vsub.f32 0.0, %v414_v5 }
  0xe3   : > { %v455_v19 = vadd.f32 1.0, %v439_v9  ;;  %v663_v20 = vmul.f32 %v647_v10, %v423_v4  ;;  %v1174_v33 = vmul.f32 0.5, %v333_v47  ;;  %v438_v37 = vmul.f32 0.3275911, %v422_v28 }
  0xe4   : > { %997 = vrcp.f32 %v447_v6  ;;  %v674_v18 = vmul.f32 1.442695, %v655_v7  ;;  %v446_v22 = vadd.f32 1.0, %v430_v11  ;;  %v654_v23 = vmul.f32 %v638_v12, %v414_v5 }
  0xe5   : > { %999 = vpow2.f32 %v684_v3  ;;  %v690_v34 = vmul.f32 1.442695, %v663_v20  ;;  %v646_v38 = vsub.f32 0.0, %v422_v28  ;;  %v1181_v40 = vmul.f32 0.70710677, %v1167_v29 }
  0xe6   : > { %1001 = vrcp.f32 %v455_v19  ;;  %v1184_v27 = vadd.f32 %v969_v32, %v1113_v17  ;;  %v672_v42 = vmul.f32 1.442695, %v654_v23  ;;  %v454_v43 = vadd.f32 1.0, %v438_v37 }
  0xe7   : > { %1003 = vrcp.f32 %v446_v22  ;;  %v662_v44 = vmul.f32 %v646_v38, %v422_v28  ;;  %v1188_v47 = vmul.f32 0.5, %v373_v57  ;;  %v417_v48 = vand.u32 2147483647, %v1181_v40 }
  0xe8   : > { %v1169_v21 = vpop.eup %983  ;;  %1005 = vpow2.f32 %v674_v18  ;;  %v1199_v60 = vmul.f32 0.70710677, %v1184_v27  ;;  %vm749_vm2 = vcmp.ge.f32.partialorder %v1119_v24, 0.0  ;;  %vm757_vm3 = vcmp.ge.f32.partialorder %v1122_v25, 0.0 }
  0xe9   : > { %v1176_v35 = vpop.eup %985  ;;  %v493_v36 = vmul.f32 1.0614054, %v1169_v21  ;;  %1007 = vpow2.f32 %v690_v34  ;;  %v688_v52 = vmul.f32 1.442695, %v662_v44  ;;  %v433_v56 = vmul.f32 0.3275911, %v417_v48  ;;  %v337_v44 = vpop.f32.mrf.mxu0 }
  0xea   : > { %v501_v39 = vmul.f32 1.0614054, %v1176_v35  ;;  %v1186_v45 = vpop.eup %987  ;;  %1009 = vrcp.f32 %v454_v43  ;;  %v641_v59 = vsub.f32 0.0, %v417_v48  ;;  %v425_v7 = vand.u32 2147483647, %v1199_v60 }
  0xeb   : > { %v509_v41 = vadd.f32 -1.4531521, %v493_v36  ;;  %v1191_v49 = vpop.eup %989  ;;  %v492_v51 = vmul.f32 1.0614054, %v1186_v45  ;;  %1011 = vpow2.f32 %v672_v42  ;;  %v449_v5 = vadd.f32 1.0, %v433_v56 }
  0xec   : > { %v517_v46 = vadd.f32 -1.4531521, %v501_v39  ;;  %v1195_v53 = vpop.eup %991  ;;  %v657_v6 = vmul.f32 %v641_v59, %v417_v48  ;;  %1013 = vpow2.f32 %v688_v52  ;;  %v441_v19 = vmul.f32 0.3275911, %v425_v7 }
  0xed   : > { %v525_v50 = vmul.f32 %v1169_v21, %v509_v41  ;;  %v1201_v57 = vpop.eup %993  ;;  %v508_v1 = vadd.f32 -1.4531521, %v492_v51  ;;  %v500_v2 = vmul.f32 1.0614054, %v1195_v53  ;;  %1015 = vrcp.f32 %v449_v5 }
  0xee   : > { %v533_v55 = vmul.f32 %v1176_v35, %v517_v46  ;;  %v1204_v3 = vpop.eup %995  ;;  %v678_v18 = vmul.f32 1.442695, %v657_v6  ;;  %v457_v36 = vadd.f32 1.0, %v441_v19  ;;  %v649_v37 = vsub.f32 0.0, %v425_v7 }
  0xef   : > { %v541_v63 = vadd.f32 1.4214138, %v525_v50  ;;  %v524_v10 = vmul.f32 %v1186_v45, %v508_v1  ;;  %v516_v11 = vadd.f32 -1.4531521, %v500_v2  ;;  %v1231_v5 = vadd.f32 %v1113_v17, %v337_v44 }
  0xf0   : > { %v549_v4 = vadd.f32 1.4214138, %v533_v55  ;;  %1017 = vpow2.f32 %v678_v18  ;;  %v665_v51 = vmul.f32 %v649_v37, %v425_v7  ;;  %vm748_vm5 = vcmp.ge.f32.partialorder %v1130_v30, 0.0 }
  0xf1   : > { %v557_v9 = vmul.f32 %v1169_v21, %v541_v63  ;;  %v1209_v12 = vpop.eup %997  ;;  %v540_v22 = vadd.f32 1.4214138, %v524_v10  ;;  %v532_v23 = vmul.f32 %v1195_v53, %v516_v11  ;;  %1019 = vrcp.f32 %v457_v36 }
  0xf2   : > { %v565_v13 = vmul.f32 %v1176_v35, %v549_v4  ;;  %v495_v28 = vmul.f32 1.0614054, %v1209_v12  ;;  %v1214_v32 = vpop.eup %999  ;;  %vm756_vm6 = vcmp.ge.f32.partialorder %v1133_v31, 0.0  ;;  %vm751_vm7 = vcmp.ge.f32.partialorder %v1138_v54, 0.0 }
  0xf3   : > { %v573_v20 = vadd.f32 -0.28449672, %v557_v9  ;;  %v1216_v38 = vpop.eup %1001  ;;  %v556_v41 = vmul.f32 %v1186_v45, %v540_v22  ;;  %v548_v42 = vadd.f32 1.4214138, %v532_v23  ;;  %v1242_v22 = vmul.f32 1.442695, %v665_v51 }
  0xf4   : > { %v581_v34 = vadd.f32 -0.28449672, %v565_v13  ;;  %v511_v43 = vadd.f32 -1.4531521, %v495_v28  ;;  %v1220_v46 = vpop.eup %1003  ;;  %v503_v50 = vmul.f32 1.0614054, %v1216_v38 }
  0xf5   : > { %v589_v39 = vmul.f32 %v1169_v21, %v573_v20  ;;  %v1224_v52 = vpop.eup %1005  ;;  %v572_v56 = vadd.f32 -0.28449672, %v556_v41  ;;  %v564_v59 = vmul.f32 %v1195_v53, %v548_v42  ;;  %v494_v4 = vmul.f32 1.0614054, %v1220_v46 }
  0xf6   : > { %v597_v48 = vmul.f32 %v1176_v35, %v581_v34  ;;  %v527_v63 = vmul.f32 %v1209_v12, %v511_v43  ;;  %v519_v2 = vadd.f32 -1.4531521, %v503_v50  ;;  %v1233_v6 = vpop.eup %1007  ;;  %vm759_vm8 = vcmp.ge.f32.partialorder %v1145_v61, 0.0 }
  0xf7   : > { %v605_v55 = vadd.f32 0.2548296, %v589_v39  ;;  %v588_v9 = vmul.f32 %v1186_v45, %v572_v56  ;;  %v580_v10 = vadd.f32 -0.28449672, %v564_v59  ;;  %v1238_v13 = vpop.eup %1009  ;;  %v510_v20 = vadd.f32 -1.4531521, %v494_v4 }
  0xf8   : > { %v613_v1 = vadd.f32 0.2548296, %v597_v48  ;;  %v543_v11 = vadd.f32 1.4214138, %v527_v63  ;;  %v535_v19 = vmul.f32 %v1216_v38, %v519_v2  ;;  %v1247_v36 = vpop.eup %1011  ;;  %v502_v41 = vmul.f32 1.0614054, %v1238_v13 }
  0xf9   : > { %v621_v7 = vmul.f32 %v1169_v21, %v605_v55  ;;  %v604_v28 = vadd.f32 0.2548296, %v588_v9  ;;  %v596_v21 = vmul.f32 %v1195_v53, %v580_v10  ;;  %v526_v39 = vmul.f32 %v1220_v46, %v510_v20  ;;  %v1254_v48 = vpop.eup %1013 }
  0xfa   : > { %v629_v18 = vmul.f32 %v1176_v35, %v613_v1  ;;  %v559_v34 = vmul.f32 %v1209_v12, %v543_v11  ;;  %v551_v35 = vadd.f32 1.4214138, %v535_v19  ;;  %v518_v55 = vadd.f32 -1.4531521, %v502_v41  ;;  %v1258_v56 = vpop.eup %1015 }
  0xfb   : > { %v701_v23 = vmul.f32 %v1191_v49, %v621_v7  ;;  %v620_v49 = vmul.f32 %v1186_v45, %v604_v28  ;;  %v612_v43 = vadd.f32 0.2548296, %v596_v21  ;;  %vm750_vm9 = vcmp.ge.f32.partialorder %v1148_v62, 0.0 }
  0xfc   : > { %v709_v37 = vmul.f32 %v1201_v57, %v629_v18  ;;  %v575_v44 = vadd.f32 -0.28449672, %v559_v34  ;;  %v567_v51 = vmul.f32 %v1216_v38, %v551_v35  ;;  %v542_v57 = vadd.f32 1.4214138, %v526_v39 }
  0xfd   : > { %v717_v42 = vsub.f32 1.0, %v701_v23  ;;  %v700_v63 = vmul.f32 %v1204_v3, %v620_v49  ;;  %v628_v1 = vmul.f32 %v1195_v53, %v612_v43  ;;  %v534_v9 = vmul.f32 %v1238_v13, %v518_v55  ;;  %v1265_v10 = vpop.eup %1017 }
  0xfe   : > { %v725_v50 = vsub.f32 1.0, %v709_v37  ;;  %v591_v45 = vmul.f32 %v1209_v12, %v575_v44  ;;  %v583_v4 = vadd.f32 -0.28449672, %v567_v51  ;;  %v558_v7 = vmul.f32 %v1220_v46, %v542_v57  ;;  %v1274_v21 = vpop.eup %1019 }
  0xff   : > { %v765_v59 = vsub.f32 0.0, %v717_v42  ;;  %v716_v18 = vsub.f32 1.0, %v700_v63  ;;  %v708_v19 = vmul.f32 %v1214_v32, %v628_v1  ;;  %v550_v41 = vadd.f32 1.4214138, %v534_v9 }
 0x100   : > { %v773_v2 = vsub.f32 0.0, %v725_v50  ;;  %v607_v3 = vadd.f32 0.2548296, %v591_v45  ;;  %v599_v23 = vmul.f32 %v1216_v38, %v583_v4  ;;  %v574_v28 = vadd.f32 -0.28449672, %v558_v7 }
 0x101   : > { %v781_v11 = vsel %vm749_vm2, %v717_v42, %v765_v59  ;;  %v764_v32 = vsub.f32 0.0, %v716_v18  ;;  %v724_v34 = vsub.f32 1.0, %v708_v19  ;;  %v566_v51 = vmul.f32 %v1238_v13, %v550_v41 }
 0x102   : > { %v797_v20 = vadd.f32 1.0, %v781_v11  ;;  %v789_v53 = vsel %vm757_vm3, %v725_v50, %v773_v2  ;;  %v623_v25 = vmul.f32 %v1209_v12, %v607_v3  ;;  %v615_v35 = vadd.f32 0.2548296, %v599_v23 }
 0x103   : > { %v805_v24 = vadd.f32 1.0, %v789_v53  ;;  %v590_v39 = vmul.f32 %v1220_v46, %v574_v28  ;;  %v780_v49 = vsel %vm748_vm5, %v716_v18, %v764_v32  ;;  %v772_v43 = vsub.f32 0.0, %v724_v34 }
 0x104   : > { %v813_v37 = vmul.f32 %v797_v20, %v1150_v0  ;;  %v703_v44 = vmul.f32 %v1224_v52, %v623_v25  ;;  %v796_v50 = vadd.f32 1.0, %v780_v49  ;;  %v631_v12 = vmul.f32 %v1216_v38, %v615_v35 }
 0x105   : > { %v821_v42 = vmul.f32 %v805_v24, %v1158_v14  ;;  %v606_v0 = vadd.f32 0.2548296, %v590_v39  ;;  %v788_v30 = vsel %vm756_vm6, %v724_v34, %v772_v43  ;;  %v497_v52 = vmul.f32 1.0614054, %v1258_v56 }
 0x106   : > { %830 = vst.msk [vmem:[%s1281_s25 + $0x8] sm:$0xff] %vm828_vm4, %v813_v37  ;;  %v719_v14 = vsub.f32 1.0, %v703_v44  ;;  %v505_v57 = vmul.f32 1.0614054, %v1274_v21  ;;  %v812_v55 = vmul.f32 %v796_v50, %v1160_v15  ;;  %v804_v59 = vadd.f32 1.0, %v788_v30  ;;  %v377_v15 = vpop.f32.mrf.mxu1 }
 0x107   : > { %838 = vst.msk [vmem:[%s1281_s25 + $0x48] sm:$0xff] %vm828_vm4, %v821_v42  ;;  %v711_v38 = vmul.f32 %v1233_v6, %v631_v12  ;;  %v622_v63 = vmul.f32 %v1220_v46, %v606_v0  ;;  %v582_v45 = vadd.f32 -0.28449672, %v566_v51  ;;  %v513_v2 = vadd.f32 -1.4531521, %v497_v52  ;;  %v960_v0 = vpop.f32.mrf.mxu0 }
 0x108   : > { %v767_v1 = vsub.f32 0.0, %v719_v14  ;;  %1021 = vpow2.f32 %v1242_v22  ;;  %829 = vst.msk [vmem:[%s1281_s25] sm:$0xff] %vm828_vm4, %v812_v55  ;;  %v820_v31 = vmul.f32 %v804_v59, %v1172_v26  ;;  %v521_v9 = vadd.f32 -1.4531521, %v505_v57  ;;  %v972_v51 = vpop.f32.mrf.mxu1 }
 0x109   : > { %v727_v4 = vsub.f32 1.0, %v711_v38  ;;  %v702_v7 = vmul.f32 %v1247_v36, %v622_v63  ;;  %v598_v11 = vmul.f32 %v1238_v13, %v582_v45  ;;  %v529_v46 = vmul.f32 %v1258_v56, %v513_v2 }
 0x10a   : > { %v783_v6 = vsel %vm751_vm7, %v719_v14, %v767_v1  ;;  %v1315_v18 = vmul.f32 0.70710677, %v1231_v5  ;;  %837 = vst.msk [vmem:[%s1281_s25 + $0x40] sm:$0xff] %vm828_vm4, %v820_v31  ;;  %v537_v36 = vmul.f32 %v1274_v21, %v521_v9  ;;  %v1324_v53 = vadd.f32 %v1113_v17, %v377_v15 }
 0x10b   : > { %v799_v22 = vadd.f32 1.0, %v783_v6  ;;  %v775_v26 = vsub.f32 0.0, %v727_v4  ;;  %v718_v19 = vsub.f32 1.0, %v702_v7  ;;  %v614_v3 = vadd.f32 0.2548296, %v598_v11 }
 0x10c   : > { %v545_v20 = vadd.f32 1.4214138, %v529_v46  ;;  %v1321_v54 = vand.u32 2147483647, %v1315_v18  ;;  %v553_v32 = vadd.f32 1.4214138, %v537_v36  ;;  %v1352_v55 = vadd.f32 %v960_v0, %v1113_v17 }
 0x10d   : > { %v815_v23 = vmul.f32 %v799_v22, %v1174_v33  ;;  %v791_v28 = vsel %vm759_vm8, %v727_v4, %v775_v26  ;;  %v766_v24 = vsub.f32 0.0, %v718_v19  ;;  %v630_v25 = vmul.f32 %v1238_v13, %v614_v3  ;;  %v347_v26 = vpop.f32.mrf.mxu0 }
 0x10e   : > { %v807_v34 = vadd.f32 1.0, %v791_v28  ;;  %v561_v37 = vmul.f32 %v1258_v56, %v545_v20  ;;  %v432_v35 = vmul.f32 0.3275911, %v1321_v54  ;;  %v734_v39 = vmul.f32 0.5, %v1142_v58 }
 0x10f   : > { %832 = vst.msk [vmem:[%s1281_s25 + $0x18] sm:$0xff] %vm828_vm4, %v815_v23  ;;  %v782_v33 = vsel %vm750_vm9, %v718_v19, %v766_v24  ;;  %v569_v61 = vmul.f32 %v1274_v21, %v553_v32  ;;  %v710_v49 = vmul.f32 %v1254_v48, %v630_v25  ;;  %v1344_v62 = vmul.f32 0.70710677, %v1324_v53 }
 0x110   : > { %v823_v41 = vmul.f32 %v807_v34, %v1188_v47  ;;  %v798_v42 = vadd.f32 1.0, %v782_v33  ;;  %v577_v13 = vadd.f32 -0.28449672, %v561_v37  ;;  %v448_v44 = vadd.f32 1.0, %v432_v35 }
 0x111   : > { %v585_v43 = vadd.f32 -0.28449672, %v569_v61  ;;  %v726_v12 = vsub.f32 1.0, %v710_v49  ;;  %v424_v14 = vand.u32 2147483647, %v1344_v62  ;;  %vm758_vm10 = vcmp.ge.f32.partialorder %v1163_v16, 0.0 }
 0x112   : > { %840 = vst.msk [vmem:[%s1281_s25 + $0x58] sm:$0xff] %vm828_vm4, %v823_v41  ;;  %v814_v50 = vmul.f32 %v798_v42, %v734_v39  ;;  %v593_v58 = vmul.f32 %v1258_v56, %v577_v13  ;;  %1023 = vrcp.f32 %v448_v44  ;;  %v1355_v59 = vadd.f32 %v972_v51, %v1113_v17  ;;  %v387_v39 = vpop.f32.mrf.mxu1 }
 0x113   : > { %v601_v30 = vmul.f32 %v1274_v21, %v585_v43  ;;  %v774_v47 = vsub.f32 0.0, %v726_v12  ;;  %v440_v1 = vmul.f32 0.3275911, %v424_v14  ;;  %v742_v45 = vmul.f32 0.5, %v1155_v8 }
 0x114   : > { %831 = vst.msk [vmem:[%s1281_s25 + $0x10] sm:$0xff] %vm828_vm4, %v814_v50  ;;  %v609_v48 = vadd.f32 0.2548296, %v593_v58  ;;  %v1361_v4 = vmul.f32 0.70710677, %v1352_v55  ;;  %vm753_vm11 = vcmp.ge.f32.partialorder %v1181_v40, 0.0  ;;  %v1377_v32 = vadd.f32 %v1113_v17, %v347_v26 }
 0x115   : > { %v1022_v52 = vpop.eup %1021  ;;  %v617_v57 = vadd.f32 0.2548296, %v601_v30  ;;  %v790_v38 = vsel %vm758_vm10, %v726_v12, %v774_v47  ;;  %v456_v7 = vadd.f32 1.0, %v440_v1  ;;  %v1365_v9 = vmul.f32 0.70710677, %v1355_v59 }
 0x116   : > { %v625_v63 = vmul.f32 %v1258_v56, %v609_v48  ;;  %v806_v2 = vadd.f32 1.0, %v790_v38  ;;  %v640_v56 = vsub.f32 0.0, %v1321_v54  ;;  %v419_v11 = vand.u32 2147483647, %v1361_v4 }
 0x117   : > { %v633_v31 = vmul.f32 %v1274_v21, %v617_v57  ;;  %1025 = vrcp.f32 %v456_v7  ;;  %v427_v8 = vand.u32 2147483647, %v1365_v9  ;;  %vm761_vm12 = vcmp.ge.f32.partialorder %v1199_v60, 0.0 }
 0x118   : > { %v705_v16 = vmul.f32 %v1265_v10, %v625_v63  ;;  %v822_v15 = vmul.f32 %v806_v2, %v742_v45  ;;  %v435_v22 = vmul.f32 0.3275911, %v419_v11  ;;  %v737_v10 = vmul.f32 0.5, %v1167_v29 }
 0x119   : > { %v713_v6 = vmul.f32 %v1022_v52, %v633_v31  ;;  %v443_v36 = vmul.f32 0.3275911, %v427_v8  ;;  %v656_v20 = vmul.f32 %v640_v56, %v1321_v54  ;;  %v745_v25 = vmul.f32 0.5, %v1184_v27 }
 0x11a   : > { %v721_v46 = vsub.f32 1.0, %v705_v16  ;;  %839 = vst.msk [vmem:[%s1281_s25 + $0x50] sm:$0xff] %vm828_vm4, %v822_v15  ;;  %v451_v23 = vadd.f32 1.0, %v435_v22  ;;  %v648_v35 = vsub.f32 0.0, %v424_v14  ;;  %v1381_v54 = vmul.f32 0.70710677, %v1377_v32 }
 0x11b   : > { %v729_v21 = vsub.f32 1.0, %v713_v6  ;;  %v459_v24 = vadd.f32 1.0, %v443_v36  ;;  %v676_v61 = vmul.f32 1.442695, %v656_v20  ;;  %v1387_v49 = vadd.f32 %v1113_v17, %v387_v39 }
 0x11c   : > { %v769_v19 = vsub.f32 0.0, %v721_v46  ;;  %1027 = vrcp.f32 %v451_v23  ;;  %v418_v42 = vand.u32 2147483647, %v1381_v54  ;;  %v664_v13 = vmul.f32 %v648_v35, %v424_v14 }
 0x11d   : > { %v777_v3 = vsub.f32 0.0, %v729_v21  ;;  %1029 = vrcp.f32 %v459_v24  ;;  %v643_v43 = vsub.f32 0.0, %v419_v11  ;;  %v1392_v12 = vmul.f32 0.70710677, %v1387_v49 }
 0x11e   : > { %v785_v28 = vsel %vm753_vm11, %v721_v46, %v769_v19  ;;  %v434_v44 = vmul.f32 0.3275911, %v418_v42  ;;  %1031 = vpow2.f32 %v676_v61  ;;  %v651_v58 = vsub.f32 0.0, %v427_v8 }
 0x11f   : > { %v801_v34 = vadd.f32 1.0, %v785_v28  ;;  %v793_v29 = vsel %vm761_vm12, %v729_v21, %v777_v3  ;;  %v1024_v37 = vpop.eup %1023  ;;  %v426_v47 = vand.u32 2147483647, %v1392_v12  ;;  %v692_v52 = vmul.f32 1.442695, %v664_v13 }
 0x120   : > { %v809_v40 = vadd.f32 1.0, %v793_v29  ;;  %v496_v33 = vmul.f32 1.0614054, %v1024_v37  ;;  %v450_v0 = vadd.f32 1.0, %v434_v44  ;;  %v659_v17 = vmul.f32 %v643_v43, %v419_v11 }
 0x121   : > { %v817_v60 = vmul.f32 %v801_v34, %v737_v10  ;;  %v442_v38 = vmul.f32 0.3275911, %v426_v47  ;;  %v667_v63 = vmul.f32 %v651_v58, %v427_v8  ;;  %v642_v56 = vsub.f32 0.0, %v418_v42 }
 0x122   : > { %v825_v41 = vmul.f32 %v809_v40, %v745_v25  ;;  %v512_v27 = vadd.f32 -1.4531521, %v496_v33  ;;  %1033 = vrcp.f32 %v450_v0  ;;  %v682_v16 = vmul.f32 1.442695, %v659_v17 }
 0x123   : > { %834 = vst.msk [vmem:[%s1281_s25 + $0x28] sm:$0xff] %vm828_vm4, %v817_v60  ;;  %v458_v45 = vadd.f32 1.0, %v442_v38  ;;  %1035 = vpow2.f32 %v692_v52  ;;  %v698_v22 = vmul.f32 1.442695, %v667_v63  ;;  %v658_v3 = vmul.f32 %v642_v56, %v418_v42 }
 0x124   : > { %842 = vst.msk [vmem:[%s1281_s25 + $0x68] sm:$0xff] %vm828_vm4, %v825_v41  ;;  %v528_v50 = vmul.f32 %v1024_v37, %v512_v27  ;;  %v1026_v51 = vpop.eup %1025  ;;  %v650_v25 = vsub.f32 0.0, %v426_v47  ;;  %vm752_vm13 = vcmp.ge.f32.partialorder %v1315_v18, 0.0  ;;  %v736_v0 = vmul.f32 0.5, %v1231_v5 }
 0x125   : > { %v504_v48 = vmul.f32 1.0614054, %v1026_v51  ;;  %1037 = vrcp.f32 %v458_v45  ;;  %v680_v33 = vmul.f32 1.442695, %v658_v3  ;;  %vm760_vm14 = vcmp.ge.f32.partialorder %v1344_v62, 0.0 }
 0x126   : > { %v544_v30 = vadd.f32 1.4214138, %v528_v50  ;;  %1039 = vpow2.f32 %v682_v16  ;;  %v666_v13 = vmul.f32 %v650_v25, %v426_v47  ;;  %vm755_vm15 = vcmp.ge.f32.partialorder %v1361_v4, 0.0 }
 0x127   : > { %v520_v14 = vadd.f32 -1.4531521, %v504_v48  ;;  %1041 = vpow2.f32 %v698_v22  ;;  %vm763_vm0 = vcmp.ge.f32.partialorder %v1365_v9, 0.0  ;;  %vm754_vm1 = vcmp.ge.f32.partialorder %v1381_v54, 0.0 }
 0x128   : > { %v560_v57 = vmul.f32 %v1024_v37, %v544_v30  ;;  %1043 = vpow2.f32 %v680_v33  ;;  %vm762_vm2 = vcmp.ge.f32.partialorder %v1392_v12, 0.0 }
 0x129   : > { %v1028_v2 = vpop.eup %1027  ;;  %v536_v31 = vmul.f32 %v1026_v51, %v520_v14 }
 0x12a   : > { %v576_v1 = vadd.f32 -0.28449672, %v560_v57  ;;  %v1030_v7 = vpop.eup %1029  ;;  %v499_v6 = vmul.f32 1.0614054, %v1028_v2 }
 0x12b   : > { %v552_v46 = vadd.f32 1.4214138, %v536_v31  ;;  %v507_v21 = vmul.f32 1.0614054, %v1030_v7  ;;  %v1032_v20 = vpop.eup %1031 }
 0x12c   : > { %v592_v15 = vmul.f32 %v1024_v37, %v576_v1  ;;  %v515_v26 = vadd.f32 -1.4531521, %v499_v6  ;;  %v696_v1 = vmul.f32 1.442695, %v666_v13 }
 0x12d   : > { %v568_v10 = vmul.f32 %v1026_v51, %v552_v46  ;;  %v523_v19 = vadd.f32 -1.4531521, %v507_v21 }
 0x12e   : > { %v608_v11 = vadd.f32 0.2548296, %v592_v15  ;;  %v531_v8 = vmul.f32 %v1028_v2, %v515_v26  ;;  %1045 = vpow2.f32 %v696_v1 }
 0x12f   : > { %v584_v23 = vadd.f32 -0.28449672, %v568_v10  ;;  %v539_v28 = vmul.f32 %v1030_v7, %v523_v19  ;;  %v1395_v35 = vpop.eup %1033 }
 0x130   : > { %v624_v36 = vmul.f32 %v1024_v37, %v608_v11  ;;  %v547_v34 = vadd.f32 1.4214138, %v531_v8  ;;  %v498_v37 = vmul.f32 1.0614054, %v1395_v35  ;;  %v1036_v58 = vpop.eup %1035 }
 0x131   : > { %v600_v29 = vmul.f32 %v1026_v51, %v584_v23  ;;  %v555_v40 = vadd.f32 1.4214138, %v539_v28 }
 0x132   : > { %v704_v24 = vmul.f32 %v1032_v20, %v624_v36  ;;  %v563_v60 = vmul.f32 %v1028_v2, %v547_v34  ;;  %v514_v50 = vadd.f32 -1.4531521, %v498_v37  ;;  %v1038_v52 = vpop.eup %1037 }
 0x133   : > { %v616_v61 = vadd.f32 0.2548296, %v600_v29  ;;  %v571_v41 = vmul.f32 %v1030_v7, %v555_v40  ;;  %v506_v47 = vmul.f32 1.0614054, %v1038_v52  ;;  %v1040_v5 = vpop.eup %1039  ;;  %v739_v40 = vmul.f32 0.5, %v1352_v55 }
 0x134   : > { %v720_v39 = vsub.f32 1.0, %v704_v24  ;;  %v579_v42 = vadd.f32 -0.28449672, %v563_v60  ;;  %v530_v14 = vmul.f32 %v1395_v35, %v514_v50  ;;  %v1042_v21 = vpop.eup %1041  ;;  %v738_v50 = vmul.f32 0.5, %v1377_v32 }
 0x135   : > { %v632_v43 = vmul.f32 %v1026_v51, %v616_v61  ;;  %v587_v44 = vadd.f32 -0.28449672, %v571_v41  ;;  %v522_v15 = vadd.f32 -1.4531521, %v506_v47  ;;  %v1044_v29 = vpop.eup %1043  ;;  %v747_v61 = vmul.f32 0.5, %v1355_v59 }
 0x136   : > { %v768_v27 = vsub.f32 0.0, %v720_v39  ;;  %v595_v48 = vmul.f32 %v1028_v2, %v579_v42  ;;  %v546_v31 = vadd.f32 1.4214138, %v530_v14 }
 0x137   : > { %v712_v57 = vmul.f32 %v1036_v58, %v632_v43  ;;  %v603_v38 = vmul.f32 %v1030_v7, %v587_v44  ;;  %v538_v11 = vmul.f32 %v1038_v52, %v522_v15 }
 0x138   : > { %v784_v30 = vsel %vm752_vm13, %v720_v39, %v768_v27  ;;  %v611_v63 = vadd.f32 0.2548296, %v595_v48  ;;  %v562_v46 = vmul.f32 %v1395_v35, %v546_v31 }
 0x139   : > { %v800_v17 = vadd.f32 1.0, %v784_v30  ;;  %v728_v51 = vsub.f32 1.0, %v712_v57  ;;  %v619_v45 = vadd.f32 0.2548296, %v603_v38  ;;  %v554_v3 = vadd.f32 1.4214138, %v538_v11 }
 0x13a   : > { %v627_v16 = vmul.f32 %v1028_v2, %v611_v63  ;;  %v578_v19 = vadd.f32 -0.28449672, %v562_v46  ;;  %v744_v2 = vmul.f32 0.5, %v1324_v53 }
 0x13b   : > { %v816_v18 = vmul.f32 %v800_v17, %v736_v0  ;;  %v776_v6 = vsub.f32 0.0, %v728_v51  ;;  %v635_v56 = vmul.f32 %v1030_v7, %v619_v45  ;;  %v570_v24 = vmul.f32 %v1038_v52, %v554_v3  ;;  %v1046_v55 = vpop.eup %1045 }
 0x13c   : > { %v707_v22 = vmul.f32 %v1040_v5, %v627_v16  ;;  %v594_v7 = vmul.f32 %v1395_v35, %v578_v19 }
 0x13d   : > { %833 = vst.msk [vmem:[%s1281_s25 + $0x20] sm:$0xff] %vm828_vm4, %v816_v18  ;;  %v792_v26 = vsel %vm760_vm14, %v728_v51, %v776_v6  ;;  %v715_v10 = vmul.f32 %v1042_v21, %v635_v56  ;;  %v586_v53 = vadd.f32 -0.28449672, %v570_v24 }
 0x13e   : > { %v808_v36 = vadd.f32 1.0, %v792_v26  ;;  %v723_v8 = vsub.f32 1.0, %v707_v22  ;;  %v610_v34 = vadd.f32 0.2548296, %v594_v7 }
 0x13f   : > { %v731_v20 = vsub.f32 1.0, %v715_v10  ;;  %v602_v41 = vmul.f32 %v1038_v52, %v586_v53 }
 0x140   : > { %v824_v23 = vmul.f32 %v808_v36, %v744_v2  ;;  %v771_v28 = vsub.f32 0.0, %v723_v8  ;;  %v626_v33 = vmul.f32 %v1395_v35, %v610_v34 }
 0x141   : > { %v779_v62 = vsub.f32 0.0, %v731_v20  ;;  %v618_v13 = vadd.f32 0.2548296, %v602_v41 }
 0x142   : > { %841 = vst.msk [vmem:[%s1281_s25 + $0x60] sm:$0xff] %vm828_vm4, %v824_v23  ;;  %v787_v25 = vsel %vm755_vm15, %v723_v8, %v771_v28  ;;  %v706_v27 = vmul.f32 %v1044_v29, %v626_v33 }
 0x143   : > { %v803_v39 = vadd.f32 1.0, %v787_v25  ;;  %v795_v60 = vsel %vm763_vm0, %v731_v20, %v779_v62  ;;  %v634_v43 = vmul.f32 %v1038_v52, %v618_v13  ;;  %v746_v52 = vmul.f32 0.5, %v1387_v49 }
 0x144   : > { %v811_v4 = vadd.f32 1.0, %v795_v60  ;;  %v722_v9 = vsub.f32 1.0, %v706_v27 }
 0x145   : > { %v819_v37 = vmul.f32 %v803_v39, %v739_v40  ;;  %v714_v35 = vmul.f32 %v1046_v55, %v634_v43 }
 0x146   : > { %v827_v42 = vmul.f32 %v811_v4, %v747_v61  ;;  %v770_v44 = vsub.f32 0.0, %v722_v9 }
 0x147   : > { %836 = vst.msk [vmem:[%s1281_s25 + $0x38] sm:$0xff] %vm828_vm4, %v819_v37  ;;  %v730_v0 = vsub.f32 1.0, %v714_v35 }
 0x148   : > { %844 = vst.msk [vmem:[%s1281_s25 + $0x78] sm:$0xff] %vm828_vm4, %v827_v42  ;;  %v786_v59 = vsel %vm754_vm1, %v722_v9, %v770_v44 }
 0x149   : > { %v802_v58 = vadd.f32 1.0, %v786_v59  ;;  %v778_v48 = vsub.f32 0.0, %v730_v0 }
 0x14b   : > { %v818_v30 = vmul.f32 %v802_v58, %v738_v50  ;;  %v794_v17 = vsel %vm762_vm2, %v730_v0, %v778_v48 }
 0x14c   : > { %v810_v57 = vadd.f32 1.0, %v794_v17 }
 0x14d   : > { %835 = vst.msk [vmem:[%s1281_s25 + $0x30] sm:$0xff] %vm828_vm4, %v818_v30 }
 0x14e   : > { %v826_v38 = vmul.f32 %v810_v57, %v746_v52 }
 0x150   : > { %843 = vst.msk [vmem:[%s1281_s25 + $0x70] sm:$0xff] %vm828_vm4, %v826_v38 }
 0x151 PF: > { %s13_s12 = sadd.s32 1, %s1053_s12  }
 0x152   : > { %p10_p4 = scmp.ge.s32.totalorder %s13_s12, 4  }
 0x154   :  { %12 = sbr.rel (!%p10_p4) target bundleno = 1 (0x1), region = 62 }

// kernel: reverse.4
= control target key start
LH: loop header
LB: loop body
LE: loop exit
PB: predicated region body
PF: predicated region fallthrough
CT: control target
= control target key end

     0   :  { %s152_s0 = inlined_call_operand.vmem [shape: f32[2,16,16,3], index: 0, kind: input, shape index: {}]   ;;  %s153_s1 = inlined_call_operand.vmem [shape: f32[2,16,16,3], index: 1, kind: output, shape index: {}]  }
   0x1   :  { %v48_v0 = vld [vmem:[%s152_s0 + $0x20] sm:$0xff]  ;;  %v49_v1 = vld [vmem:[%s152_s0 + $0x50] sm:$0xff]  ;;  %v58_v6 = vld [vmem:[%s152_s0 + $0x28] sm:$0xff] }
   0x2   :  { %v51_v2 = vld [vmem:[%s152_s0 + $0x10] sm:$0xff]  ;;  %4 = vst [vmem:[%s153_s1] sm:$0xff] %v48_v0  ;;  %50 = vst [vmem:[%s153_s1 + $0x30] sm:$0xff] %v49_v1  ;;  %v53_v3 = vld [vmem:[%s152_s0 + $0x40] sm:$0xff] }
   0x3   :  { %52 = vst [vmem:[%s153_s1 + $0x10] sm:$0xff] %v51_v2  ;;  %v17_v4 = vld [vmem:[%s152_s0] sm:$0xff]  ;;  %v56_v5 = vld [vmem:[%s152_s0 + $0x30] sm:$0xff]  ;;  %54 = vst [vmem:[%s153_s1 + $0x40] sm:$0xff] %v53_v3 }
   0x4   :  { %55 = vst [vmem:[%s153_s1 + $0x20] sm:$0xff] %v17_v4  ;;  %57 = vst [vmem:[%s153_s1 + $0x50] sm:$0xff] %v56_v5  ;;  %v60_v7 = vld [vmem:[%s152_s0 + $0x58] sm:$0xff]  ;;  %v64_v9 = vld [vmem:[%s152_s0 + $0x48] sm:$0xff] }
   0x5   :  { %v62_v8 = vld [vmem:[%s152_s0 + $0x18] sm:$0xff]  ;;  %59 = vst [vmem:[%s153_s1 + $0x8] sm:$0xff] %v58_v6  ;;  %61 = vst [vmem:[%s153_s1 + $0x38] sm:$0xff] %v60_v7  ;;  %v66_v10 = vld [vmem:[%s152_s0 + $0x8] sm:$0xff] }
   0x6   :  { %63 = vst [vmem:[%s153_s1 + $0x18] sm:$0xff] %v62_v8  ;;  %v68_v11 = vld [vmem:[%s152_s0 + $0x38] sm:$0xff]  ;;  %65 = vst [vmem:[%s153_s1 + $0x48] sm:$0xff] %v64_v9 }
   0x7   :  { %67 = vst [vmem:[%s153_s1 + $0x28] sm:$0xff] %v66_v10  ;;  %69 = vst [vmem:[%s153_s1 + $0x58] sm:$0xff] %v68_v11 }

// kernel: dfno_forward.12
= control target key start
LH: loop header
LB: loop body
LE: loop exit
PB: predicated region body
PF: predicated region fallthrough
CT: control target
= control target key end

     0   :  { %s3701_s18 = smov 0   ;;  %s4408_s0 = inlined_call_operand.vmem [shape: f32[24,2,16], index: 0, kind: input, shape index: {}]   ;;  %s4409_s1 = inlined_call_operand.vmem [shape: f32[24,2,16], index: 1, kind: input, shape index: {}]   ;;  %s4410_s2 = inlined_call_operand.vmem [shape: f32[24,16,16], index: 2, kind: input, shape index: {}]   ;;  %s4411_s3 = inlined_call_operand.vmem [shape: f32[24,16,16], index: 3, kind: input, shape index: {}]   ;;  %s4412_s4 = inlined_call_operand.vmem [shape: f32[24,2,16], index: 4, kind: output, shape index: {0}]   ;;  %s4413_s5 = inlined_call_operand.vmem [shape: f32[24,2,16], index: 5, kind: output, shape index: {1}]  }
   0x1 LB: > { %s3238_s19 = sadd.s32 4294967295, %s3667_s18   ;;  %p3242_p0 = scmp.ge.s32.totalorder %s3667_s18, 1  ;;  %s3667_s18 = sphi %s3701_s18, %s16_s18  }
   0x2   : > { %p226_p1 = scmp.lt.s32.totalorder %s3667_s18, 3 }
   0x4   : > { %p227_p2 = pnand %p3242_p0, %p226_p1 }
   0x6   : > { %230 = sbr.rel (%p227_p2) target bundleno = 322 (0x142), region = 36 }
   0xb   : > { %s276_s20 = smul.u32 12, %s3238_s19  ;;  %v3669_v0 = vmov 0.0   ;;  %vm3670_vm0 = vmmov 0   ;;  %vm386_vm1 = vcmask 130048   ;;  %vm3063_vm2 = vcmask 123904  }
   0xc   : > { %3399 = vmatprep.subr.mxu0 %v3669_v0  ;;  %3406 = vmatprep.subr.mxu1 %v3669_v0 }
   0xd   : > { %p277_p3 = scmp.lt.s32.totalorder %s276_s20, 23  ;;  %3403 = vmatprep.mubr.msk.f32.mxu0 %vm3670_vm0, %v3669_v0  ;;  %3410 = vmatprep.mubr.msk.f32.mxu1 %vm3670_vm0, %v3669_v0 }
   0xf   : > { %s4451_s20 = smov (!%p277_p3, %s276_s20), 23 }
  0x10   : > { %s3289_s21 = sshll.u32 %s4451_s20, 4  ;;  %s3719_s22 = sshll.u32 %s4451_s20, 1 }
  0x11   : > { %s3726_s25 = scalar_lea.vmem %s4410_s2, %s3289_s21  ;;  %s3738_s28 = scalar_lea.vmem %s4408_s0, %s3719_s22 }
  0x12   : > { %v3729_v1 = vld [vmem:[%s3726_s25 + $0x8] sm:$0xff]  ;;  %v3732_v2 = vld [vmem:[%s3726_s25 + $0x18] sm:$0xff]  ;;  %v3743_v3 = vld [vmem:[%s3726_s25] sm:$0xff]  ;;  %s3914_s6 = scalar_lea.vmem %s4411_s3, %s3289_s21  ;;  %s3945_s9 = scalar_lea.vmem %s4409_s1, %s3719_s22 }
  0x13   : > { %3400 = vmatpush3.msra.mxu0 %v3729_v1  ;;  %3407 = vmatpush3.msra.mxu1 %v3732_v2  ;;  %v3748_v4 = vld [vmem:[%s3726_s25 + $0x10] sm:$0xff]  ;;  %v3751_v5 = vld [vmem:[%s3738_s28] sm:$0x3]  ;;  %v3756_v6 = vld [vmem:[%s3738_s28 + $0x2] sm:$0x3]  ;;  %s4309_s12 = scalar_lea.vmem %s4412_s4, %s3719_s22  ;;  %s4365_s15 = scalar_lea.vmem %s4413_s5, %s3719_s22 }
  0x14   : > { %3401 = vmatprep.subr.mxu0 %v3669_v0  ;;  %3408 = vmatprep.subr.mxu1 %v3669_v0  ;;  %v3763_v7 = vld [vmem:[%s3726_s25 + $0x28] sm:$0xff]  ;;  %v3766_v8 = vld [vmem:[%s3726_s25 + $0x38] sm:$0xff]  ;;  %v3771_v9 = vld [vmem:[%s3726_s25 + $0x20] sm:$0xff] }
  0x15   : > { %3402 = vmatpush3.msra.mxu0 %v3743_v3  ;;  %3409 = vmatpush3.msra.mxu1 %v3748_v4  ;;  %v3776_v10 = vld [vmem:[%s3726_s25 + $0x30] sm:$0xff]  ;;  %v3781_v11 = vld [vmem:[%s3738_s28 + $0x4] sm:$0x3]  ;;  %v3784_v12 = vld [vmem:[%s3738_s28 + $0x6] sm:$0x3] }
  0x16   : > { %3404 = vmatmul.mubr.msk.f32.vlgmr.msra.gmra.mxu0 %vm386_vm1, %v3751_v5  ;;  %3411 = vmatmul.mubr.msk.f32.vlgmr.msra.gmra.mxu1 %vm386_vm1, %v3756_v6  ;;  %v3793_v13 = vld [vmem:[%s3726_s25 + $0x48] sm:$0xff]  ;;  %v3796_v14 = vld [vmem:[%s3726_s25 + $0x58] sm:$0xff]  ;;  %v3805_v15 = vld [vmem:[%s3726_s25 + $0x40] sm:$0xff] }
  0x17   : > { %3413 = vmatprep.subr.mxu0 %v3669_v0  ;;  %3420 = vmatprep.subr.mxu1 %v3669_v0  ;;  %v3810_v16 = vld [vmem:[%s3726_s25 + $0x50] sm:$0xff]  ;;  %v3815_v17 = vld [vmem:[%s3738_s28 + $0x8] sm:$0x3]  ;;  %v3818_v18 = vld [vmem:[%s3738_s28 + $0xa] sm:$0x3] }
  0x18   : > { %3414 = vmatpush3.msra.mxu0 %v3763_v7  ;;  %3421 = vmatpush3.msra.mxu1 %v3766_v8  ;;  %v3827_v19 = vld [vmem:[%s3726_s25 + $0x68] sm:$0xff]  ;;  %v3830_v20 = vld [vmem:[%s3726_s25 + $0x78] sm:$0xff]  ;;  %v3839_v21 = vld [vmem:[%s3726_s25 + $0x60] sm:$0xff] }
  0x19   : > { %3415 = vmatprep.subr.mxu0 %v3669_v0  ;;  %3422 = vmatprep.subr.mxu1 %v3669_v0  ;;  %v3844_v22 = vld [vmem:[%s3726_s25 + $0x70] sm:$0xff]  ;;  %v3849_v23 = vld [vmem:[%s3738_s28 + $0xc] sm:$0x3]  ;;  %v3852_v24 = vld [vmem:[%s3738_s28 + $0xe] sm:$0x3] }
  0x1a   : > { %3416 = vmatpush3.msra.mxu0 %v3771_v9  ;;  %3417 = vmatprep.mubr.msk.f32.mxu0 %vm3670_vm0, %v3669_v0  ;;  %v3861_v25 = vld [vmem:[%s3726_s25 + $0x88] sm:$0xff]  ;;  %v3864_v26 = vld [vmem:[%s3726_s25 + $0x98] sm:$0xff]  ;;  %v3873_v27 = vld [vmem:[%s3726_s25 + $0x80] sm:$0xff] }
  0x1b   : > { %3423 = vmatpush3.msra.mxu1 %v3776_v10  ;;  %3424 = vmatprep.mubr.msk.f32.mxu1 %vm3670_vm0, %v3669_v0  ;;  %v3878_v28 = vld [vmem:[%s3726_s25 + $0x90] sm:$0xff]  ;;  %v3895_v31 = vld [vmem:[%s3726_s25 + $0xa8] sm:$0xff]  ;;  %v3898_v32 = vld [vmem:[%s3726_s25 + $0xb8] sm:$0xff] }
  0x1c   : > { %3418 = vmatmul.mubr.msk.f32.vlgmr.msra.gmra.mxu0 %vm386_vm1, %v3781_v11  ;;  %3425 = vmatmul.mubr.msk.f32.vlgmr.msra.gmra.mxu1 %vm386_vm1, %v3784_v12  ;;  %v3883_v29 = vld [vmem:[%s3738_s28 + $0x10] sm:$0x3]  ;;  %v3886_v30 = vld [vmem:[%s3738_s28 + $0x12] sm:$0x3]  ;;  %4428 = vst [vmem:[#allocation4_spill] sm:$0xff] %v3895_v31  ;;  %4429 = vst [vmem:[#allocation5_spill] sm:$0xff] %v3898_v32 }
  0x1d   : > { %3427 = vmatprep.subr.mxu0 %v3669_v0  ;;  %3434 = vmatprep.subr.mxu1 %v3669_v0  ;;  %4426 = vst [vmem:[#allocation2_spill] sm:$0xff] %v3883_v29  ;;  %4427 = vst [vmem:[#allocation3_spill] sm:$0xff] %v3886_v30  ;;  %v3907_v33 = vld [vmem:[%s3726_s25 + $0xa0] sm:$0xff]  ;;  %v3919_v34 = vld [vmem:[%s3726_s25 + $0xb0] sm:$0xff] }
  0x1e   : > { %3428 = vmatpush3.msra.mxu0 %v3793_v13  ;;  %3435 = vmatpush3.msra.mxu1 %v3796_v14  ;;  %4430 = vst [vmem:[#allocation6_spill] sm:$0xff] %v3907_v33  ;;  %4431 = vst [vmem:[#allocation7_spill] sm:$0xff] %v3919_v34  ;;  %v3924_v35 = vld [vmem:[%s3738_s28 + $0x14] sm:$0x3]  ;;  %v3927_v36 = vld [vmem:[%s3738_s28 + $0x16] sm:$0x3] }
  0x1f   : > { %3429 = vmatprep.subr.mxu0 %v3669_v0  ;;  %3436 = vmatprep.subr.mxu1 %v3669_v0  ;;  %4432 = vst [vmem:[#allocation8_spill] sm:$0xff] %v3924_v35  ;;  %4433 = vst [vmem:[#allocation9_spill] sm:$0xff] %v3927_v36  ;;  %v3933_v37 = vld [vmem:[%s3914_s6 + $0x8] sm:$0xff]  ;;  %v3936_v38 = vld [vmem:[%s3914_s6 + $0x18] sm:$0xff] }
  0x20   : > { %3430 = vmatpush3.msra.mxu0 %v3805_v15  ;;  %3431 = vmatprep.mubr.msk.f32.mxu0 %vm3670_vm0, %v3669_v0  ;;  %v3952_v39 = vld [vmem:[%s3914_s6] sm:$0xff]  ;;  %v3957_v40 = vld [vmem:[%s3914_s6 + $0x10] sm:$0xff]  ;;  %v3976_v43 = vld [vmem:[%s3914_s6 + $0x28] sm:$0xff] }
  0x21   : > { %3437 = vmatpush3.msra.mxu1 %v3810_v16  ;;  %3438 = vmatprep.mubr.msk.f32.mxu1 %vm3670_vm0, %v3669_v0  ;;  %v3962_v41 = vld [vmem:[%s3945_s9] sm:$0x3]  ;;  %v3965_v42 = vld [vmem:[%s3945_s9 + $0x2] sm:$0x3]  ;;  %v3979_v44 = vld [vmem:[%s3914_s6 + $0x38] sm:$0xff] }
  0x22   : > { %3432 = vmatmul.mubr.msk.f32.vlgmr.msra.gmra.mxu0 %vm386_vm1, %v3815_v17  ;;  %3439 = vmatmul.mubr.msk.f32.vlgmr.msra.gmra.mxu1 %vm386_vm1, %v3818_v18  ;;  %v3988_v45 = vld [vmem:[%s3914_s6 + $0x20] sm:$0xff]  ;;  %v3993_v46 = vld [vmem:[%s3914_s6 + $0x30] sm:$0xff]  ;;  %v4010_v49 = vld [vmem:[%s3914_s6 + $0x48] sm:$0xff] }
  0x23   : > { %3441 = vmatprep.subr.mxu0 %v3669_v0  ;;  %3448 = vmatprep.subr.mxu1 %v3669_v0  ;;  %v3998_v47 = vld [vmem:[%s3945_s9 + $0x4] sm:$0x3]  ;;  %v4001_v48 = vld [vmem:[%s3945_s9 + $0x6] sm:$0x3]  ;;  %v4013_v50 = vld [vmem:[%s3914_s6 + $0x58] sm:$0xff] }
  0x24   : > { %3442 = vmatpush3.msra.mxu0 %v3827_v19  ;;  %3449 = vmatpush3.msra.mxu1 %v3830_v20  ;;  %v4022_v51 = vld [vmem:[%s3914_s6 + $0x40] sm:$0xff]  ;;  %v4027_v52 = vld [vmem:[%s3914_s6 + $0x50] sm:$0xff]  ;;  %v4032_v53 = vld [vmem:[%s3945_s9 + $0x8] sm:$0x3] }
  0x25   : > { %3443 = vmatprep.subr.mxu0 %v3669_v0  ;;  %3450 = vmatprep.subr.mxu1 %v3669_v0  ;;  %v4035_v54 = vld [vmem:[%s3945_s9 + $0xa] sm:$0x3]  ;;  %v4047_v56 = vld [vmem:[%s3914_s6 + $0x78] sm:$0xff]  ;;  %v4056_v57 = vld [vmem:[%s3914_s6 + $0x60] sm:$0xff] }
  0x26   : > { %3444 = vmatpush3.msra.mxu0 %v3839_v21  ;;  %3445 = vmatprep.mubr.msk.f32.mxu0 %vm3670_vm0, %v3669_v0  ;;  %v4044_v55 = vld [vmem:[%s3914_s6 + $0x68] sm:$0xff]  ;;  %v4061_v58 = vld [vmem:[%s3914_s6 + $0x70] sm:$0xff]  ;;  %v4081_v62 = vld [vmem:[%s3914_s6 + $0x98] sm:$0xff] }
  0x27   : > { %3451 = vmatpush3.msra.mxu1 %v3844_v22  ;;  %3452 = vmatprep.mubr.msk.f32.mxu1 %vm3670_vm0, %v3669_v0  ;;  %v4066_v59 = vld [vmem:[%s3945_s9 + $0xc] sm:$0x3]  ;;  %v4069_v60 = vld [vmem:[%s3945_s9 + $0xe] sm:$0x3]  ;;  %v4090_v63 = vld [vmem:[%s3914_s6 + $0x80] sm:$0xff] }
  0x28   : > { %3446 = vmatmul.mubr.msk.f32.vlgmr.msra.gmra.mxu0 %vm386_vm1, %v3849_v23  ;;  %3453 = vmatmul.mubr.msk.f32.vlgmr.msra.gmra.mxu1 %vm386_vm1, %v3852_v24  ;;  %v4078_v61 = vld [vmem:[%s3914_s6 + $0x88] sm:$0xff] }
  0x29   : > { %3455 = vmatprep.subr.mxu0 %v3669_v0  ;;  %3462 = vmatprep.subr.mxu1 %v3669_v0 }
  0x2a   : > { %3456 = vmatpush3.msra.mxu0 %v3861_v25  ;;  %3463 = vmatpush3.msra.mxu1 %v3864_v26 }
  0x2b   : > { %3457 = vmatprep.subr.mxu0 %v3669_v0  ;;  %3464 = vmatprep.subr.mxu1 %v3669_v0 }
  0x2c   : > { %3458 = vmatpush3.msra.mxu0 %v3873_v27  ;;  %3459 = vmatprep.mubr.msk.f32.mxu0 %vm3670_vm0, %v3669_v0 }
  0x2d   : > { %3465 = vmatpush3.msra.mxu1 %v3878_v28  ;;  %3466 = vmatprep.mubr.msk.f32.mxu1 %vm3670_vm0, %v3669_v0 }
  0x2e   : > { %3460 = vmatmul.mubr.msk.f32.vlgmr.msra.gmra.mxu0 %vm386_vm1, %v3883_v29  ;;  %3467 = vmatmul.mubr.msk.f32.vlgmr.msra.gmra.mxu1 %vm386_vm1, %v3886_v30  ;;  %v4129_v30 = vld [vmem:[%s3914_s6 + $0xb0] sm:$0xff] }
  0x2f   : > { %3469 = vmatprep.subr.mxu0 %v3669_v0  ;;  %3476 = vmatprep.subr.mxu1 %v3669_v0  ;;  %v4137_v29 = vld [vmem:[%s3945_s9 + $0x16] sm:$0x3] }
  0x30   : > { %3470 = vmatpush3.msra.mxu0 %v3895_v31  ;;  %3477 = vmatpush3.msra.mxu1 %v3898_v32  ;;  %v4115_v32 = vld [vmem:[%s3914_s6 + $0xb8] sm:$0xff]  ;;  %v4124_v31 = vld [vmem:[%s3914_s6 + $0xa0] sm:$0xff] }
  0x31   : > { %3471 = vmatprep.subr.mxu0 %v3669_v0  ;;  %3478 = vmatprep.subr.mxu1 %v3669_v0  ;;  %4437 = vst [vmem:[#allocation13_spill] sm:$0xff] %v4115_v32 }
  0x32   : > { %3472 = vmatpush3.msra.mxu0 %v3907_v33  ;;  %3473 = vmatprep.mubr.msk.f32.mxu0 %vm3670_vm0, %v3669_v0  ;;  %v4112_v33 = vld [vmem:[%s3914_s6 + $0xa8] sm:$0xff] }
  0x33   : > { %3479 = vmatpush3.msra.mxu1 %v3919_v34  ;;  %3480 = vmatprep.mubr.msk.f32.mxu1 %vm3670_vm0, %v3669_v0  ;;  %v4103_v34 = vld [vmem:[%s3945_s9 + $0x12] sm:$0x3] }
  0x34   : > { %3474 = vmatmul.mubr.msk.f32.vlgmr.msra.gmra.mxu0 %vm386_vm1, %v3924_v35  ;;  %3481 = vmatmul.mubr.msk.f32.vlgmr.msra.gmra.mxu1 %vm386_vm1, %v3927_v36  ;;  %v4095_v36 = vld [vmem:[%s3914_s6 + $0x90] sm:$0xff]  ;;  %4436 = vst [vmem:[#allocation12_spill] sm:$0xff] %v4103_v34 }
  0x35   : > { %3483 = vmatprep.subr.mxu0 %v3669_v0  ;;  %3490 = vmatprep.subr.mxu1 %v3669_v0  ;;  %4434 = vst [vmem:[#allocation10_spill] sm:$0xff] %v4095_v36  ;;  %v4100_v35 = vld [vmem:[%s3945_s9 + $0x10] sm:$0x3] }
  0x36   : > { %3484 = vmatpush3.msra.mxu0 %v3933_v37  ;;  %3491 = vmatpush3.msra.mxu1 %v3936_v38  ;;  %4435 = vst [vmem:[#allocation11_spill] sm:$0xff] %v4100_v35 }
  0x37   : > { %3485 = vmatprep.subr.mxu0 %v3669_v0  ;;  %3492 = vmatprep.subr.mxu1 %v3669_v0 }
  0x38   : > { %3486 = vmatpush3.msra.mxu0 %v3952_v39  ;;  %3487 = vmatprep.mubr.msk.f32.mxu0 %vm3670_vm0, %v3669_v0 }
  0x39   : > { %3493 = vmatpush3.msra.mxu1 %v3957_v40  ;;  %3494 = vmatprep.mubr.msk.f32.mxu1 %vm3670_vm0, %v3669_v0 }
  0x3a   : > { %3488 = vmatmul.mubr.msk.f32.vlgmr.msra.gmra.mxu0 %vm386_vm1, %v3962_v41  ;;  %3495 = vmatmul.mubr.msk.f32.vlgmr.msra.gmra.mxu1 %vm386_vm1, %v3965_v42 }
  0x3b   : > { %3497 = vmatprep.subr.mxu0 %v3669_v0  ;;  %3504 = vmatprep.subr.mxu1 %v3669_v0 }
  0x3c   : > { %3498 = vmatpush3.msra.mxu0 %v3976_v43  ;;  %3505 = vmatpush3.msra.mxu1 %v3979_v44 }
  0x3d   : > { %3499 = vmatprep.subr.mxu0 %v3669_v0  ;;  %3506 = vmatprep.subr.mxu1 %v3669_v0 }
  0x3e   : > { %3500 = vmatpush3.msra.mxu0 %v3988_v45  ;;  %3501 = vmatprep.mubr.msk.f32.mxu0 %vm3670_vm0, %v3669_v0 }
  0x3f   : > { %3507 = vmatpush3.msra.mxu1 %v3993_v46  ;;  %3508 = vmatprep.mubr.msk.f32.mxu1 %vm3670_vm0, %v3669_v0 }
  0x40   : > { %3502 = vmatmul.mubr.msk.f32.vlgmr.msra.gmra.mxu0 %vm386_vm1, %v3998_v47  ;;  %3509 = vmatmul.mubr.msk.f32.vlgmr.msra.gmra.mxu1 %vm386_vm1, %v4001_v48 }
  0x41   : > { %3511 = vmatprep.subr.mxu0 %v3669_v0  ;;  %3518 = vmatprep.subr.mxu1 %v3669_v0 }
  0x42   : > { %3512 = vmatpush3.msra.mxu0 %v4010_v49  ;;  %3519 = vmatpush3.msra.mxu1 %v4013_v50 }
  0x43   : > { %3513 = vmatprep.subr.mxu0 %v3669_v0  ;;  %3520 = vmatprep.subr.mxu1 %v3669_v0 }
  0x44   : > { %3514 = vmatpush3.msra.mxu0 %v4022_v51  ;;  %3515 = vmatprep.mubr.msk.f32.mxu0 %vm3670_vm0, %v3669_v0 }
  0x45   : > { %3521 = vmatpush3.msra.mxu1 %v4027_v52  ;;  %3522 = vmatprep.mubr.msk.f32.mxu1 %vm3670_vm0, %v3669_v0 }
  0x46   : > { %3516 = vmatmul.mubr.msk.f32.vlgmr.msra.gmra.mxu0 %vm386_vm1, %v4032_v53  ;;  %3523 = vmatmul.mubr.msk.f32.vlgmr.msra.gmra.mxu1 %vm386_vm1, %v4035_v54 }
  0x47   : > { %3525 = vmatprep.subr.mxu0 %v3669_v0  ;;  %3532 = vmatprep.subr.mxu1 %v3669_v0 }
  0x48   : > { %3526 = vmatpush3.msra.mxu0 %v4044_v55  ;;  %3533 = vmatpush3.msra.mxu1 %v4047_v56 }
  0x49   : > { %3527 = vmatprep.subr.mxu0 %v3669_v0  ;;  %3534 = vmatprep.subr.mxu1 %v3669_v0 }
  0x4a   : > { %3528 = vmatpush3.msra.mxu0 %v4056_v57  ;;  %3529 = vmatprep.mubr.msk.f32.mxu0 %vm3670_vm0, %v3669_v0 }
  0x4b   : > { %3535 = vmatpush3.msra.mxu1 %v4061_v58  ;;  %3536 = vmatprep.mubr.msk.f32.mxu1 %vm3670_vm0, %v3669_v0 }
  0x4c   : > { %3530 = vmatmul.mubr.msk.f32.vlgmr.msra.gmra.mxu0 %vm386_vm1, %v4066_v59  ;;  %3537 = vmatmul.mubr.msk.f32.vlgmr.msra.gmra.mxu1 %vm386_vm1, %v4069_v60 }
  0x4d   : > { %3539 = vmatprep.subr.mxu0 %v3669_v0  ;;  %3546 = vmatprep.subr.mxu1 %v3669_v0 }
  0x4e   : > { %3540 = vmatpush3.msra.mxu0 %v4078_v61  ;;  %3547 = vmatpush3.msra.mxu1 %v4081_v62 }
  0x4f   : > { %3541 = vmatprep.subr.mxu0 %v3669_v0  ;;  %3548 = vmatprep.subr.mxu1 %v3669_v0 }
  0x50   : > { %3542 = vmatpush3.msra.mxu0 %v4090_v63  ;;  %3543 = vmatprep.mubr.msk.f32.mxu0 %vm3670_vm0, %v3669_v0 }
  0x51   : > { %3549 = vmatpush3.msra.mxu1 %v4095_v36  ;;  %3550 = vmatprep.mubr.msk.f32.mxu1 %vm3670_vm0, %v3669_v0  ;;  %v2154_v36 = vadd.f32 %v3936_v38, %v3732_v2  ;;  %v2139_v2 = vadd.f32 %v3962_v41, %v3751_v5  ;;  %v2155_v5 = vadd.f32 %v3988_v45, %v3771_v9  ;;  %v4442_v38 = vld [vmem:[#allocation12_spill] sm:$0xff]  ;;  %v4445_v41 = vld [vmem:[#allocation13_spill] sm:$0xff]  ;;  %v4447_v45 = vld [vmem:[#allocation7_spill] sm:$0xff] }
  0x52   : > { %3544 = vmatmul.mubr.msk.f32.vlgmr.msra.gmra.mxu0 %vm386_vm1, %v4100_v35  ;;  %3551 = vmatmul.mubr.msk.f32.vlgmr.msra.gmra.mxu1 %vm386_vm1, %v4103_v34  ;;  %v4134_v35 = vld [vmem:[%s3945_s9 + $0x14] sm:$0x3]  ;;  %v2152_v34 = vadd.f32 %v3933_v37, %v3729_v1  ;;  %v2153_v1 = vadd.f32 %v3957_v40, %v3748_v4  ;;  %v2140_v37 = vadd.f32 %v3965_v42, %v3756_v6 }
  0x53   : > { %3553 = vmatprep.subr.mxu0 %v3669_v0  ;;  %3560 = vmatprep.subr.mxu1 %v3669_v0  ;;  %v2158_v4 = vadd.f32 %v3979_v44, %v3766_v8  ;;  %v2157_v6 = vadd.f32 %v3993_v46, %v3776_v10  ;;  %v2142_v8 = vadd.f32 %v4001_v48, %v3784_v12  ;;  %v4448_v46 = vld [vmem:[#allocation8_spill] sm:$0xff]  ;;  %v4449_v48 = vld [vmem:[#allocation9_spill] sm:$0xff] }
  0x54   : > { %3554 = vmatpush3.msra.mxu0 %v4112_v33  ;;  %3561 = vmatpush3.msra.mxu1 %v4115_v32  ;;  %v2151_v32 = vadd.f32 %v3952_v39, %v3743_v3  ;;  %v2156_v3 = vadd.f32 %v3976_v43, %v3763_v7  ;;  %v2141_v7 = vadd.f32 %v3998_v47, %v3781_v11  ;;  %v4446_v43 = vld [vmem:[#allocation6_spill] sm:$0xff] }
  0x55   : > { %3555 = vmatprep.subr.mxu0 %v3669_v0  ;;  %3562 = vmatprep.subr.mxu1 %v3669_v0  ;;  %v2160_v9 = vadd.f32 %v4010_v49, %v3793_v13  ;;  %v2162_v10 = vadd.f32 %v4013_v50, %v3796_v14  ;;  %v2159_v11 = vadd.f32 %v4022_v51, %v3805_v15 }
  0x56   : > { %3556 = vmatpush3.msra.mxu0 %v4124_v31  ;;  %3557 = vmatprep.mubr.msk.f32.mxu0 %vm3670_vm0, %v3669_v0  ;;  %v2161_v12 = vadd.f32 %v4027_v52, %v3810_v16  ;;  %v2143_v13 = vadd.f32 %v4032_v53, %v3815_v17  ;;  %v2144_v14 = vadd.f32 %v4035_v54, %v3818_v18 }
  0x57   : > { %3563 = vmatpush3.msra.mxu1 %v4129_v30  ;;  %3564 = vmatprep.mubr.msk.f32.mxu1 %vm3670_vm0, %v3669_v0  ;;  %v2164_v15 = vadd.f32 %v4044_v55, %v3827_v19  ;;  %v2166_v16 = vadd.f32 %v4047_v56, %v3830_v20  ;;  %v2163_v17 = vadd.f32 %v4056_v57, %v3839_v21 }
  0x58   : > { %3558 = vmatmul.mubr.msk.f32.vlgmr.msra.gmra.mxu0 %vm386_vm1, %v4134_v35  ;;  %3565 = vmatmul.mubr.msk.f32.vlgmr.msra.gmra.mxu1 %vm386_vm1, %v4137_v29  ;;  %v2165_v18 = vadd.f32 %v4061_v58, %v3844_v22  ;;  %v2145_v19 = vadd.f32 %v4066_v59, %v3849_v23  ;;  %v2146_v20 = vadd.f32 %v4069_v60, %v3852_v24  ;;  %v4438_v24 = vld [vmem:[#allocation10_spill] sm:$0xff] }
  0x59   : > { %3567 = vmatprep.subr.mxu0 %v3669_v0  ;;  %3574 = vmatprep.subr.mxu1 %v3669_v0  ;;  %v2168_v21 = vadd.f32 %v4078_v61, %v3861_v25  ;;  %v2170_v22 = vadd.f32 %v4081_v62, %v3864_v26  ;;  %v2167_v23 = vadd.f32 %v4090_v63, %v3873_v27  ;;  %v4439_v26 = vld [vmem:[#allocation2_spill] sm:$0xff]  ;;  %v4443_v27 = vld [vmem:[#allocation4_spill] sm:$0xff] }
  0x5a   : > { %3568 = vmatpush3.msra.mxu0 %v2152_v34  ;;  %3575 = vmatpush3.msra.mxu1 %v2154_v36  ;;  %v2169_v25 = vadd.f32 %v4438_v24, %v3878_v28  ;;  %v4441_v36 = vld [vmem:[#allocation3_spill] sm:$0xff]  ;;  %v2172_v40 = vadd.f32 %v4112_v33, %v4443_v27  ;;  %v4444_v28 = vld [vmem:[#allocation5_spill] sm:$0xff]  ;;  %v2171_v44 = vadd.f32 %v4124_v31, %v4446_v43 }
  0x5b   : > { %3569 = vmatprep.subr.mxu0 %v3669_v0  ;;  %3576 = vmatprep.subr.mxu1 %v3669_v0  ;;  %v2148_v39 = vadd.f32 %v4442_v38, %v4441_v36  ;;  %v2174_v42 = vadd.f32 %v4445_v41, %v4444_v28  ;;  %v2173_v33 = vadd.f32 %v4129_v30, %v4447_v45 }
  0x5c   : > { %3570 = vmatpush3.msra.mxu0 %v2151_v32  ;;  %3571 = vmatprep.mubr.msk.f32.mxu0 %vm3670_vm0, %v3669_v0  ;;  %v4440_v32 = vld [vmem:[#allocation11_spill] sm:$0xff]  ;;  %v2149_v47 = vadd.f32 %v4134_v35, %v4448_v46  ;;  %v2150_v49 = vadd.f32 %v4137_v29, %v4449_v48 }
  0x5d   : > { %3577 = vmatpush3.msra.mxu1 %v2153_v1  ;;  %3578 = vmatprep.mubr.msk.f32.mxu1 %vm3670_vm0, %v3669_v0  ;;  %v2147_v34 = vadd.f32 %v4440_v32, %v4439_v26 }
  0x5e   : > { %3572 = vmatmul.mubr.msk.f32.vlgmr.msra.gmra.mxu0 %vm386_vm1, %v2139_v2  ;;  %3579 = vmatmul.mubr.msk.f32.vlgmr.msra.gmra.mxu1 %vm386_vm1, %v2140_v37 }
  0x5f   : > { %3581 = vmatprep.subr.mxu0 %v3669_v0  ;;  %3588 = vmatprep.subr.mxu1 %v3669_v0 }
  0x60   : > { %3582 = vmatpush3.msra.mxu0 %v2156_v3  ;;  %3589 = vmatpush3.msra.mxu1 %v2158_v4 }
  0x61   : > { %3583 = vmatprep.subr.mxu0 %v3669_v0  ;;  %3590 = vmatprep.subr.mxu1 %v3669_v0 }
  0x62   : > { %3584 = vmatpush3.msra.mxu0 %v2155_v5  ;;  %3585 = vmatprep.mubr.msk.f32.mxu0 %vm3670_vm0, %v3669_v0 }
  0x63   : > { %3591 = vmatpush3.msra.mxu1 %v2157_v6  ;;  %3592 = vmatprep.mubr.msk.f32.mxu1 %vm3670_vm0, %v3669_v0 }
  0x64   : > { %3586 = vmatmul.mubr.msk.f32.vlgmr.msra.gmra.mxu0 %vm386_vm1, %v2141_v7  ;;  %3593 = vmatmul.mubr.msk.f32.vlgmr.msra.gmra.mxu1 %vm386_vm1, %v2142_v8 }
  0x65   : > { %3595 = vmatprep.subr.mxu0 %v3669_v0  ;;  %3602 = vmatprep.subr.mxu1 %v3669_v0 }
  0x66   : > { %3596 = vmatpush3.msra.mxu0 %v2160_v9  ;;  %3603 = vmatpush3.msra.mxu1 %v2162_v10 }
  0x67   : > { %3597 = vmatprep.subr.mxu0 %v3669_v0  ;;  %3604 = vmatprep.subr.mxu1 %v3669_v0 }
  0x68   : > { %3598 = vmatpush3.msra.mxu0 %v2159_v11  ;;  %3599 = vmatprep.mubr.msk.f32.mxu0 %vm3670_vm0, %v3669_v0 }
  0x69   : > { %3605 = vmatpush3.msra.mxu1 %v2161_v12  ;;  %3606 = vmatprep.mubr.msk.f32.mxu1 %vm3670_vm0, %v3669_v0 }
  0x6a   : > { %3600 = vmatmul.mubr.msk.f32.vlgmr.msra.gmra.mxu0 %vm386_vm1, %v2143_v13  ;;  %3607 = vmatmul.mubr.msk.f32.vlgmr.msra.gmra.mxu1 %vm386_vm1, %v2144_v14 }
  0x6b   : > { %3609 = vmatprep.subr.mxu0 %v3669_v0  ;;  %3616 = vmatprep.subr.mxu1 %v3669_v0 }
  0x6c   : > { %3610 = vmatpush3.msra.mxu0 %v2164_v15  ;;  %3617 = vmatpush3.msra.mxu1 %v2166_v16 }
  0x6d   : > { %3611 = vmatprep.subr.mxu0 %v3669_v0  ;;  %3618 = vmatprep.subr.mxu1 %v3669_v0 }
  0x6e   : > { %3612 = vmatpush3.msra.mxu0 %v2163_v17  ;;  %3613 = vmatprep.mubr.msk.f32.mxu0 %vm3670_vm0, %v3669_v0 }
  0x6f   : > { %3619 = vmatpush3.msra.mxu1 %v2165_v18  ;;  %3620 = vmatprep.mubr.msk.f32.mxu1 %vm3670_vm0, %v3669_v0 }
  0x70   : > { %3614 = vmatmul.mubr.msk.f32.vlgmr.msra.gmra.mxu0 %vm386_vm1, %v2145_v19  ;;  %3621 = vmatmul.mubr.msk.f32.vlgmr.msra.gmra.mxu1 %vm386_vm1, %v2146_v20 }
  0x71   : > { %3623 = vmatprep.subr.mxu0 %v3669_v0  ;;  %3630 = vmatprep.subr.mxu1 %v3669_v0 }
  0x72   : > { %3624 = vmatpush3.msra.mxu0 %v2168_v21  ;;  %3631 = vmatpush3.msra.mxu1 %v2170_v22 }
  0x73   : > { %3625 = vmatprep.subr.mxu0 %v3669_v0  ;;  %3632 = vmatprep.subr.mxu1 %v3669_v0 }
  0x74   : > { %3626 = vmatpush3.msra.mxu0 %v2167_v23  ;;  %3627 = vmatprep.mubr.msk.f32.mxu0 %vm3670_vm0, %v3669_v0 }
  0x75   : > { %3633 = vmatpush3.msra.mxu1 %v2169_v25  ;;  %3634 = vmatprep.mubr.msk.f32.mxu1 %vm3670_vm0, %v3669_v0 }
  0x76   : > { %3628 = vmatmul.mubr.msk.f32.vlgmr.msra.gmra.mxu0 %vm386_vm1, %v2147_v34  ;;  %3635 = vmatmul.mubr.msk.f32.vlgmr.msra.gmra.mxu1 %vm386_vm1, %v2148_v39 }
  0x77   : > { %3637 = vmatprep.subr.mxu0 %v3669_v0  ;;  %3644 = vmatprep.subr.mxu1 %v3669_v0 }
  0x78   : > { %3638 = vmatpush3.msra.mxu0 %v2172_v40  ;;  %3645 = vmatpush3.msra.mxu1 %v2174_v42 }
  0x79   : > { %3639 = vmatprep.subr.mxu0 %v3669_v0  ;;  %3646 = vmatprep.subr.mxu1 %v3669_v0 }
  0x7a   : > { %3640 = vmatpush3.msra.mxu0 %v2171_v44  ;;  %3641 = vmatprep.mubr.msk.f32.mxu0 %vm3670_vm0, %v3669_v0 }
  0x7b   : > { %3647 = vmatpush3.msra.mxu1 %v2173_v33  ;;  %3648 = vmatprep.mubr.msk.f32.mxu1 %vm3670_vm0, %v3669_v0 }
  0x7c   : > { %3642 = vmatmul.mubr.msk.f32.vlgmr.msra.gmra.mxu0 %vm386_vm1, %v2149_v47  ;;  %3649 = vmatmul.mubr.msk.f32.vlgmr.msra.gmra.mxu1 %vm386_vm1, %v2150_v49 }
  0xd6   : > { %v4281_v30 = vpop.f32.mrf.mxu0  ;;  %v4283_v29 = vpop.f32.mrf.mxu1 }
  0xd8   : > { %v3405_v31 = vpop.f32.mrf.mxu0  ;;  %v3412_v35 = vpop.f32.mrf.mxu1 }
  0xdc   : > { %v4285_v50 = vpop.f32.mrf.mxu0  ;;  %v4287_v51 = vpop.f32.mrf.mxu1 }
  0xde   : > { %v3419_v52 = vpop.f32.mrf.mxu0  ;;  %v3426_v53 = vpop.f32.mrf.mxu1 }
  0xe2   : > { %v4289_v54 = vpop.f32.mrf.mxu0  ;;  %v4291_v0 = vpop.f32.mrf.mxu1 }
  0xe4   : > { %v3433_v55 = vpop.f32.mrf.mxu0  ;;  %v3440_v56 = vpop.f32.mrf.mxu1 }
  0xe8   : > { %v4293_v57 = vpop.f32.mrf.mxu0  ;;  %v4295_v58 = vpop.f32.mrf.mxu1 }
  0xea   : > { %v3447_v59 = vpop.f32.mrf.mxu0  ;;  %v3454_v60 = vpop.f32.mrf.mxu1 }
  0xee   : > { %v4297_v61 = vpop.f32.mrf.mxu0  ;;  %v4299_v62 = vpop.f32.mrf.mxu1 }
  0xf0   : > { %v3461_v63 = vpop.f32.mrf.mxu0  ;;  %v3468_v1 = vpop.f32.mrf.mxu1 }
  0xf4   : > { %v4301_v2 = vpop.f32.mrf.mxu0  ;;  %v4303_v37 = vpop.f32.mrf.mxu1 }
  0xf6   : > { %v3475_v3 = vpop.f32.mrf.mxu0  ;;  %v3482_v4 = vpop.f32.mrf.mxu1 }
  0xfa   : > { %v1332_v5 = vpop.f32.mrf.mxu0  ;;  %v1405_v6 = vpop.f32.mrf.mxu1 }
  0xfb   : > { %v3051_v7 = vsub.f32 %v4281_v30, %v1332_v5  ;;  %v3052_v8 = vsub.f32 %v4283_v29, %v1405_v6 }
  0xfc   : > { %v3489_v9 = vpop.f32.mrf.mxu0  ;;  %v3496_v10 = vpop.f32.mrf.mxu1 }
  0xfd   : > { %3064 = vst.msk [vmem:[%s4309_s12] sm:$0x3] %vm3063_vm2, %v3051_v7  ;;  %3065 = vst.msk [vmem:[%s4309_s12 + $0x2] sm:$0x3] %vm3063_vm2, %v3052_v8 }
 0x100   : > { %v1478_v11 = vpop.f32.mrf.mxu0  ;;  %v1551_v12 = vpop.f32.mrf.mxu1 }
 0x101   : > { %v3053_v13 = vsub.f32 %v4285_v50, %v1478_v11  ;;  %v3054_v14 = vsub.f32 %v4287_v51, %v1551_v12 }
 0x102   : > { %v3503_v15 = vpop.f32.mrf.mxu0  ;;  %v3510_v16 = vpop.f32.mrf.mxu1 }
 0x103   : > { %3066 = vst.msk [vmem:[%s4309_s12 + $0x4] sm:$0x3] %vm3063_vm2, %v3053_v13  ;;  %3067 = vst.msk [vmem:[%s4309_s12 + $0x6] sm:$0x3] %vm3063_vm2, %v3054_v14 }
 0x106   : > { %v1624_v17 = vpop.f32.mrf.mxu0  ;;  %v1697_v18 = vpop.f32.mrf.mxu1 }
 0x107   : > { %v3055_v19 = vsub.f32 %v4289_v54, %v1624_v17  ;;  %v3056_v20 = vsub.f32 %v4291_v0, %v1697_v18 }
 0x108   : > { %v3517_v21 = vpop.f32.mrf.mxu0  ;;  %v3524_v22 = vpop.f32.mrf.mxu1 }
 0x109   : > { %3068 = vst.msk [vmem:[%s4309_s12 + $0x8] sm:$0x3] %vm3063_vm2, %v3055_v19  ;;  %3069 = vst.msk [vmem:[%s4309_s12 + $0xa] sm:$0x3] %vm3063_vm2, %v3056_v20 }
 0x10c   : > { %v1770_v23 = vpop.f32.mrf.mxu0  ;;  %v1843_v24 = vpop.f32.mrf.mxu1 }
 0x10d   : > { %v3057_v25 = vsub.f32 %v4293_v57, %v1770_v23  ;;  %v3058_v26 = vsub.f32 %v4295_v58, %v1843_v24 }
 0x10e   : > { %v3531_v32 = vpop.f32.mrf.mxu0  ;;  %v3538_v34 = vpop.f32.mrf.mxu1 }
 0x10f   : > { %3070 = vst.msk [vmem:[%s4309_s12 + $0xc] sm:$0x3] %vm3063_vm2, %v3057_v25  ;;  %3071 = vst.msk [vmem:[%s4309_s12 + $0xe] sm:$0x3] %vm3063_vm2, %v3058_v26 }
 0x112   : > { %v4335_v36 = vpop.f32.mrf.mxu0  ;;  %v4337_v38 = vpop.f32.mrf.mxu1 }
 0x113   : > { %v3059_v39 = vsub.f32 %v4297_v61, %v4335_v36  ;;  %v3060_v27 = vsub.f32 %v4299_v62, %v4337_v38 }
 0x114   : > { %v3545_v40 = vpop.f32.mrf.mxu0  ;;  %v3552_v28 = vpop.f32.mrf.mxu1 }
 0x115   : > { %3072 = vst.msk [vmem:[%s4309_s12 + $0x10] sm:$0x3] %vm3063_vm2, %v3059_v39  ;;  %3073 = vst.msk [vmem:[%s4309_s12 + $0x12] sm:$0x3] %vm3063_vm2, %v3060_v27 }
 0x118   : > { %v4347_v41 = vpop.f32.mrf.mxu0  ;;  %v4349_v42 = vpop.f32.mrf.mxu1 }
 0x119   : > { %v3061_v43 = vsub.f32 %v4301_v2, %v4347_v41  ;;  %v3062_v44 = vsub.f32 %v4303_v37, %v4349_v42 }
 0x11a   : > { %v3559_v45 = vpop.f32.mrf.mxu0  ;;  %v3566_v33 = vpop.f32.mrf.mxu1 }
 0x11b   : > { %3074 = vst.msk [vmem:[%s4309_s12 + $0x14] sm:$0x3] %vm3063_vm2, %v3061_v43  ;;  %3075 = vst.msk [vmem:[%s4309_s12 + $0x16] sm:$0x3] %vm3063_vm2, %v3062_v44 }
 0x11e   : > { %v2244_v46 = vpop.f32.mrf.mxu0  ;;  %v2317_v47 = vpop.f32.mrf.mxu1 }
 0x11f   : > { %v3076_v48 = vsub.f32 %v2244_v46, %v4281_v30  ;;  %v3077_v49 = vsub.f32 %v2317_v47, %v4283_v29 }
 0x120   : > { %v3573_v31 = vpop.f32.mrf.mxu0  ;;  %v3580_v35 = vpop.f32.mrf.mxu1 }
 0x121   : > { %v3088_v52 = vsub.f32 %v3076_v48, %v1332_v5  ;;  %v3089_v53 = vsub.f32 %v3077_v49, %v1405_v6 }
 0x123   : > { %3100 = vst.msk [vmem:[%s4365_s15] sm:$0x3] %vm3063_vm2, %v3088_v52  ;;  %3101 = vst.msk [vmem:[%s4365_s15 + $0x2] sm:$0x3] %vm3063_vm2, %v3089_v53 }
 0x124   : > { %v2390_v30 = vpop.f32.mrf.mxu0  ;;  %v2463_v55 = vpop.f32.mrf.mxu1 }
 0x125   : > { %v3078_v29 = vsub.f32 %v2390_v30, %v4285_v50  ;;  %v3079_v56 = vsub.f32 %v2463_v55, %v4287_v51 }
 0x126   : > { %v3587_v59 = vpop.f32.mrf.mxu0  ;;  %v3594_v60 = vpop.f32.mrf.mxu1 }
 0x127   : > { %v3090_v63 = vsub.f32 %v3078_v29, %v1478_v11  ;;  %v3091_v1 = vsub.f32 %v3079_v56, %v1551_v12 }
 0x129   : > { %3102 = vst.msk [vmem:[%s4365_s15 + $0x4] sm:$0x3] %vm3063_vm2, %v3090_v63  ;;  %3103 = vst.msk [vmem:[%s4365_s15 + $0x6] sm:$0x3] %vm3063_vm2, %v3091_v1 }
 0x12a   : > { %v2536_v3 = vpop.f32.mrf.mxu0  ;;  %v2609_v4 = vpop.f32.mrf.mxu1 }
 0x12b   : > { %v3080_v5 = vsub.f32 %v2536_v3, %v4289_v54  ;;  %v3081_v6 = vsub.f32 %v2609_v4, %v4291_v0 }
 0x12c   : > { %v3601_v50 = vpop.f32.mrf.mxu0  ;;  %v3608_v7 = vpop.f32.mrf.mxu1 }
 0x12d   : > { %v3092_v51 = vsub.f32 %v3080_v5, %v1624_v17  ;;  %v3093_v8 = vsub.f32 %v3081_v6, %v1697_v18 }
 0x12f   : > { %3104 = vst.msk [vmem:[%s4365_s15 + $0x8] sm:$0x3] %vm3063_vm2, %v3092_v51  ;;  %3105 = vst.msk [vmem:[%s4365_s15 + $0xa] sm:$0x3] %vm3063_vm2, %v3093_v8 }
 0x130   : > { %v2682_v9 = vpop.f32.mrf.mxu0  ;;  %v2755_v10 = vpop.f32.mrf.mxu1 }
 0x131   : > { %v3082_v11 = vsub.f32 %v2682_v9, %v4293_v57  ;;  %v3083_v12 = vsub.f32 %v2755_v10, %v4295_v58 }
 0x132   : > { %v3615_v54 = vpop.f32.mrf.mxu0  ;;  %v3622_v13 = vpop.f32.mrf.mxu1 }
 0x133   : > { %v3094_v0 = vsub.f32 %v3082_v11, %v1770_v23  ;;  %v3095_v14 = vsub.f32 %v3083_v12, %v1843_v24 }
 0x135   : > { %3106 = vst.msk [vmem:[%s4365_s15 + $0xc] sm:$0x3] %vm3063_vm2, %v3094_v0  ;;  %3107 = vst.msk [vmem:[%s4365_s15 + $0xe] sm:$0x3] %vm3063_vm2, %v3095_v14 }
 0x136   : > { %v2828_v15 = vpop.f32.mrf.mxu0  ;;  %v2901_v16 = vpop.f32.mrf.mxu1 }
 0x137   : > { %v3084_v17 = vsub.f32 %v2828_v15, %v4297_v61  ;;  %v3085_v18 = vsub.f32 %v2901_v16, %v4299_v62 }
 0x138   : > { %v3629_v57 = vpop.f32.mrf.mxu0  ;;  %v3636_v19 = vpop.f32.mrf.mxu1 }
 0x139   : > { %v3096_v58 = vsub.f32 %v3084_v17, %v4335_v36  ;;  %v3097_v20 = vsub.f32 %v3085_v18, %v4337_v38 }
 0x13b   : > { %3108 = vst.msk [vmem:[%s4365_s15 + $0x10] sm:$0x3] %vm3063_vm2, %v3096_v58  ;;  %3109 = vst.msk [vmem:[%s4365_s15 + $0x12] sm:$0x3] %vm3063_vm2, %v3097_v20 }
 0x13c   : > { %v2974_v21 = vpop.f32.mrf.mxu0  ;;  %v3047_v22 = vpop.f32.mrf.mxu1 }
 0x13d   : > { %v3086_v23 = vsub.f32 %v2974_v21, %v4301_v2  ;;  %v3087_v61 = vsub.f32 %v3047_v22, %v4303_v37 }
 0x13e   : > { %v3643_v24 = vpop.f32.mrf.mxu0  ;;  %v3650_v25 = vpop.f32.mrf.mxu1 }
 0x13f   : > { %v3098_v62 = vsub.f32 %v3086_v23, %v4347_v41  ;;  %v3099_v26 = vsub.f32 %v3087_v61, %v4349_v42 }
 0x141   : > { %3110 = vst.msk [vmem:[%s4365_s15 + $0x14] sm:$0x3] %vm3063_vm2, %v3098_v62  ;;  %3111 = vst.msk [vmem:[%s4365_s15 + $0x16] sm:$0x3] %vm3063_vm2, %v3099_v26 }
 0x142 PF: > { %s16_s18 = sadd.s32 1, %s3667_s18  }
 0x143   : > { %p13_p4 = scmp.ge.s32.totalorder %s16_s18, 4  }
 0x145   :  { %15 = sbr.rel (!%p13_p4) target bundleno = 1 (0x1), region = 87 }

// kernel: dfno_forward.11
= control target key start
LH: loop header
LB: loop body
LE: loop exit
PB: predicated region body
PF: predicated region fallthrough
CT: control target
= control target key end

     0   :  { %s539_s9 = smov 0   ;;  %s619_s0 = inlined_call_operand.vmem [shape: f32[256,16], index: 0, kind: input, shape index: {}]   ;;  %s620_s1 = inlined_call_operand.vmem [shape: f32[16,16], index: 1, kind: input, shape index: {}]   ;;  %s621_s2 = inlined_call_operand.vmem [shape: f32[256,16], index: 2, kind: output, shape index: {}]  }
   0x1 LB: > { %s431_s10 = sadd.s32 4294967295, %s522_s9   ;;  %p435_p0 = scmp.ge.s32.totalorder %s522_s9, 1  ;;  %s522_s9 = sphi %s539_s9, %s12_s9  }
   0x2   : > { %p113_p1 = scmp.lt.s32.totalorder %s522_s9, 3 }
   0x4   : > { %p114_p2 = pnand %p435_p0, %p113_p1 }
   0x5   : > { %s436_s15 = sshll.u32 (!%p114_p2), %s431_s10, 4 }
   0x6   : > { %117 = sbr.rel (%p114_p2) target bundleno = 225 (0xe1), region = 28  ;;  %p136_p3 = scmp.lt.s32.totalorder (!%p114_p2), %s436_s15, 31 }
   0xb   : > { %v164_v0 = vld [vmem:[%s620_s1 + $0x8] sm:$0xff]  ;;  %v163_v1 = vld [vmem:[%s620_s1] sm:$0xff]  ;;  %s623_s15 = smov (!%p136_p3, %s436_s15), 31  ;;  %vm165_vm0 = vcmask 130048  }
   0xc   : > { %476 = vmatprep.subr.mxu0 %v164_v0  ;;  %504 = vmatprep.subr.mxu1 %v164_v0  ;;  %s437_s16 = sshll.u32 %s623_s15, 3 }
   0xd   : > { %477 = vmatpush3.msra.mxu0 %v164_v0  ;;  %506 = vmatpush3.msra.mxu1 %v164_v0  ;;  %s139_s19 = scalar_lea.vmem %s619_s0, %s437_s16  ;;  %s582_s22 = scalar_lea.vmem %s621_s2, %s437_s16 }
   0xe   : > { %478 = vmatprep.subr.mxu0 %v163_v1  ;;  %505 = vmatprep.subr.mxu1 %v163_v1  ;;  %v147_v2 = vld [vmem:[%s139_s19] sm:$0xff]  ;;  %v148_v4 = vld [vmem:[%s139_s19 + $0x8] sm:$0xff]  ;;  %v149_v6 = vld [vmem:[%s139_s19 + $0x10] sm:$0xff] }
   0xf   : > { %479 = vmatpush3.msra.mxu0 %v163_v1  ;;  %507 = vmatpush3.msra.mxu1 %v163_v1  ;;  %v155_v3 = vld [vmem:[%s139_s19 + $0x40] sm:$0xff]  ;;  %v156_v5 = vld [vmem:[%s139_s19 + $0x48] sm:$0xff]  ;;  %v157_v7 = vld [vmem:[%s139_s19 + $0x50] sm:$0xff] }
  0x10   : > { %480 = vmatprep.mubr.msk.f32.mxu0 %vm165_vm0, %v147_v2  ;;  %492 = vmatprep.mubr.msk.f32.mxu1 %vm165_vm0, %v155_v3  ;;  %v150_v8 = vld [vmem:[%s139_s19 + $0x18] sm:$0xff]  ;;  %v151_v10 = vld [vmem:[%s139_s19 + $0x20] sm:$0xff]  ;;  %v152_v12 = vld [vmem:[%s139_s19 + $0x28] sm:$0xff] }
  0x11   : > { %481 = vmatmul.mubr.msk.f32.vlgmr.msra.gmra.mxu0 %vm165_vm0, %v148_v4  ;;  %493 = vmatmul.mubr.msk.f32.vlgmr.msra.gmra.mxu1 %vm165_vm0, %v156_v5  ;;  %v158_v9 = vld [vmem:[%s139_s19 + $0x58] sm:$0xff]  ;;  %v159_v11 = vld [vmem:[%s139_s19 + $0x60] sm:$0xff]  ;;  %v160_v13 = vld [vmem:[%s139_s19 + $0x68] sm:$0xff] }
  0x12   : > { %483 = vmatprep.mubr.msk.f32.mxu0 %vm165_vm0, %v149_v6  ;;  %495 = vmatprep.mubr.msk.f32.mxu1 %vm165_vm0, %v157_v7  ;;  %v153_v14 = vld [vmem:[%s139_s19 + $0x30] sm:$0xff]  ;;  %v154_v16 = vld [vmem:[%s139_s19 + $0x38] sm:$0xff] }
  0x13   : > { %v161_v15 = vld [vmem:[%s139_s19 + $0x70] sm:$0xff]  ;;  %v162_v17 = vld [vmem:[%s139_s19 + $0x78] sm:$0xff] }
  0x15   : > { %484 = vmatmul.mubr.msk.f32.gmra.mxu0 %vm165_vm0, %v150_v8  ;;  %496 = vmatmul.mubr.msk.f32.gmra.mxu1 %vm165_vm0, %v158_v9 }
  0x16   : > { %486 = vmatprep.mubr.msk.f32.mxu0 %vm165_vm0, %v151_v10  ;;  %498 = vmatprep.mubr.msk.f32.mxu1 %vm165_vm0, %v159_v11 }
  0x19   : > { %487 = vmatmul.mubr.msk.f32.gmra.mxu0 %vm165_vm0, %v152_v12  ;;  %499 = vmatmul.mubr.msk.f32.gmra.mxu1 %vm165_vm0, %v160_v13 }
  0x1a   : > { %489 = vmatprep.mubr.msk.f32.mxu0 %vm165_vm0, %v153_v14  ;;  %501 = vmatprep.mubr.msk.f32.mxu1 %vm165_vm0, %v161_v15 }
  0x1d   : > { %490 = vmatmul.mubr.msk.f32.gmra.mxu0 %vm165_vm0, %v154_v16  ;;  %502 = vmatmul.mubr.msk.f32.gmra.mxu1 %vm165_vm0, %v162_v17 }
  0xd1   : > { %v482_v18 = vpop.f32.mrf.mxu0  ;;  %v494_v19 = vpop.f32.mrf.mxu1 }
  0xd2   : > { %360 = vst.msk [vmem:[%s582_s22 + $0x8] sm:$0xff] %vm165_vm0, %v482_v18  ;;  %368 = vst.msk [vmem:[%s582_s22 + $0x48] sm:$0xff] %vm165_vm0, %v494_v19 }
  0xd3   : > { %v280_v20 = vpop.f32.mrf.mxu0  ;;  %v320_v21 = vpop.f32.mrf.mxu1 }
  0xd4   : > { %359 = vst.msk [vmem:[%s582_s22] sm:$0xff] %vm165_vm0, %v280_v20  ;;  %367 = vst.msk [vmem:[%s582_s22 + $0x40] sm:$0xff] %vm165_vm0, %v320_v21 }
  0xd5   : > { %v485_v22 = vpop.f32.mrf.mxu0  ;;  %v497_v23 = vpop.f32.mrf.mxu1 }
  0xd6   : > { %362 = vst.msk [vmem:[%s582_s22 + $0x18] sm:$0xff] %vm165_vm0, %v485_v22  ;;  %370 = vst.msk [vmem:[%s582_s22 + $0x58] sm:$0xff] %vm165_vm0, %v497_v23 }
  0xd7   : > { %v290_v24 = vpop.f32.mrf.mxu0  ;;  %v330_v25 = vpop.f32.mrf.mxu1 }
  0xd8   : > { %361 = vst.msk [vmem:[%s582_s22 + $0x10] sm:$0xff] %vm165_vm0, %v290_v24  ;;  %369 = vst.msk [vmem:[%s582_s22 + $0x50] sm:$0xff] %vm165_vm0, %v330_v25 }
  0xd9   : > { %v488_v26 = vpop.f32.mrf.mxu0  ;;  %v500_v27 = vpop.f32.mrf.mxu1 }
  0xda   : > { %364 = vst.msk [vmem:[%s582_s22 + $0x28] sm:$0xff] %vm165_vm0, %v488_v26  ;;  %372 = vst.msk [vmem:[%s582_s22 + $0x68] sm:$0xff] %vm165_vm0, %v500_v27 }
  0xdb   : > { %v300_v28 = vpop.f32.mrf.mxu0  ;;  %v340_v29 = vpop.f32.mrf.mxu1 }
  0xdc   : > { %363 = vst.msk [vmem:[%s582_s22 + $0x20] sm:$0xff] %vm165_vm0, %v300_v28  ;;  %371 = vst.msk [vmem:[%s582_s22 + $0x60] sm:$0xff] %vm165_vm0, %v340_v29 }
  0xdd   : > { %v491_v30 = vpop.f32.mrf.mxu0  ;;  %v503_v31 = vpop.f32.mrf.mxu1 }
  0xde   : > { %366 = vst.msk [vmem:[%s582_s22 + $0x38] sm:$0xff] %vm165_vm0, %v491_v30  ;;  %374 = vst.msk [vmem:[%s582_s22 + $0x78] sm:$0xff] %vm165_vm0, %v503_v31 }
  0xdf   : > { %v310_v32 = vpop.f32.mrf.mxu0  ;;  %v350_v33 = vpop.f32.mrf.mxu1 }
  0xe0   : > { %365 = vst.msk [vmem:[%s582_s22 + $0x30] sm:$0xff] %vm165_vm0, %v310_v32  ;;  %373 = vst.msk [vmem:[%s582_s22 + $0x70] sm:$0xff] %vm165_vm0, %v350_v33 }
  0xe1 PF: > { %s12_s9 = sadd.s32 1, %s522_s9  }
  0xe2   : > { %p9_p4 = scmp.ge.s32.totalorder %s12_s9, 4  }
  0xe4   :  { %11 = sbr.rel (!%p9_p4) target bundleno = 1 (0x1), region = 58 }

// kernel: dfno_forward.13
= control target key start
LH: loop header
LB: loop body
LE: loop exit
PB: predicated region body
PF: predicated region fallthrough
CT: control target
= control target key end

     0   :  { %s842_s9 = smov 0   ;;  %s1196_s0 = inlined_call_operand.vmem [shape: f32[256,16], index: 0, kind: input, shape index: {}]   ;;  %s1197_s1 = inlined_call_operand.vmem [shape: f32[256,16], index: 1, kind: input, shape index: {}]   ;;  %s1198_s2 = inlined_call_operand.vmem [shape: f32[256,16], index: 2, kind: output, shape index: {}]  }
   0x1 LB: > { %s734_s10 = sadd.s32 4294967295, %s825_s9   ;;  %p738_p0 = scmp.ge.s32.totalorder %s825_s9, 1  ;;  %s825_s9 = sphi %s842_s9, %s12_s9  }
   0x2   : > { %p124_p1 = scmp.lt.s32.totalorder %s825_s9, 3 }
   0x4   : > { %p125_p2 = pnand %p738_p0, %p124_p1 }
   0x5   : > { %s739_s11 = sshll.u32 (!%p125_p2), %s734_s10, 4 }
   0x6   : > { %128 = sbr.rel (%p125_p2) target bundleno = 146 (0x92), region = 28  ;;  %p152_p3 = scmp.lt.s32.totalorder (!%p125_p2), %s739_s11, 31 }
   0xb   : > { %s1200_s11 = smov (!%p152_p3, %s739_s11), 31  ;;  %vm649_vm3 = vcmask 130048  }
   0xc   : > { %s850_s12 = sshll.u32 %s1200_s11, 3 }
   0xd   : > { %s856_s15 = scalar_lea.vmem %s1196_s0, %s850_s12  ;;  %s862_s18 = scalar_lea.vmem %s1197_s1, %s850_s12 }
   0xe   : > { %v169_v0 = vld [vmem:[%s856_s15] sm:$0xff]  ;;  %v170_v2 = vld [vmem:[%s856_s15 + $0x8] sm:$0xff]  ;;  %v171_v5 = vld [vmem:[%s856_s15 + $0x10] sm:$0xff]  ;;  %s1049_s21 = scalar_lea.vmem %s1198_s2, %s850_s12 }
   0xf   : > { %v185_v1 = vld [vmem:[%s862_s18] sm:$0xff]  ;;  %v186_v4 = vld [vmem:[%s862_s18 + $0x8] sm:$0xff]  ;;  %v187_v6 = vld [vmem:[%s862_s18 + $0x10] sm:$0xff] }
  0x10   : > { %v201_v3 = vadd.f32 %v185_v1, %v169_v0  ;;  %v202_v7 = vadd.f32 %v186_v4, %v170_v2  ;;  %v870_v8 = vadd.f32 %v187_v6, %v171_v5  ;;  %v172_v9 = vld [vmem:[%s856_s15 + $0x18] sm:$0xff]  ;;  %v173_v22 = vld [vmem:[%s856_s15 + $0x20] sm:$0xff]  ;;  %v174_v32 = vld [vmem:[%s856_s15 + $0x28] sm:$0xff] }
  0x11   : > { %v188_v10 = vld [vmem:[%s862_s18 + $0x18] sm:$0xff]  ;;  %v189_v31 = vld [vmem:[%s862_s18 + $0x20] sm:$0xff]  ;;  %v190_v35 = vld [vmem:[%s862_s18 + $0x28] sm:$0xff] }
  0x12   : > { %v874_v11 = vmul.f32 0.70710677, %v201_v3  ;;  %v876_v12 = vadd.f32 %v188_v10, %v172_v9  ;;  %v878_v13 = vmul.f32 0.70710677, %v202_v7  ;;  %v881_v14 = vmul.f32 0.70710677, %v870_v8 }
  0x13   : > { %v175_v36 = vld [vmem:[%s856_s15 + $0x30] sm:$0xff]  ;;  %v896_v41 = vadd.f32 %v189_v31, %v173_v22  ;;  %v898_v44 = vadd.f32 %v190_v35, %v174_v32  ;;  %v176_v46 = vld [vmem:[%s856_s15 + $0x38] sm:$0xff]  ;;  %v907_v50 = vmul.f32 0.5, %v201_v3  ;;  %v920_v59 = vmul.f32 0.5, %v202_v7  ;;  %v177_v5 = vld [vmem:[%s856_s15 + $0x40] sm:$0xff] }
  0x14   : > { %v233_v15 = vand.u32 2147483647, %v874_v11  ;;  %v885_v16 = vmul.f32 0.70710677, %v876_v12  ;;  %v234_v17 = vand.u32 2147483647, %v878_v13 }
  0x15   : > { %v235_v18 = vand.u32 2147483647, %v881_v14  ;;  %v191_v37 = vld [vmem:[%s862_s18 + $0x30] sm:$0xff]  ;;  %v192_v47 = vld [vmem:[%s862_s18 + $0x38] sm:$0xff]  ;;  %v905_v49 = vmul.f32 0.70710677, %v896_v41 }
  0x16   : > { %v249_v19 = vmul.f32 0.3275911, %v233_v15  ;;  %v457_v20 = vsub.f32 0.0, %v233_v15  ;;  %v236_v21 = vand.u32 2147483647, %v885_v16  ;;  %v458_v24 = vsub.f32 0.0, %v234_v17 }
  0x17   : > { %v250_v23 = vmul.f32 0.3275911, %v234_v17  ;;  %v251_v25 = vmul.f32 0.3275911, %v235_v18  ;;  %v459_v26 = vsub.f32 0.0, %v235_v18  ;;  %v900_v45 = vadd.f32 %v191_v37, %v175_v36  ;;  %v193_v6 = vld [vmem:[%s862_s18 + $0x40] sm:$0xff] }
  0x18   : > { %v265_v27 = vadd.f32 1.0, %v249_v19  ;;  %v473_v28 = vmul.f32 %v457_v20, %v233_v15  ;;  %v252_v29 = vmul.f32 0.3275911, %v236_v21  ;;  %v460_v30 = vsub.f32 0.0, %v236_v21  ;;  %v178_v15 = vld [vmem:[%s856_s15 + $0x48] sm:$0xff] }
  0x19   : > { %v266_v33 = vadd.f32 1.0, %v250_v23  ;;  %v474_v34 = vmul.f32 %v458_v24, %v234_v17  ;;  %v267_v38 = vadd.f32 1.0, %v251_v25  ;;  %v475_v40 = vmul.f32 %v459_v26, %v235_v18  ;;  %v194_v17 = vld [vmem:[%s862_s18 + $0x48] sm:$0xff] }
  0x1a   : > { %755 = vrcp.f32 %v265_v27  ;;  %v489_v39 = vmul.f32 1.442695, %v473_v28  ;;  %v268_v42 = vadd.f32 1.0, %v252_v29  ;;  %v476_v43 = vmul.f32 %v460_v30, %v236_v21 }
  0x1b   : > { %757 = vrcp.f32 %v266_v33  ;;  %v491_v48 = vmul.f32 1.442695, %v474_v34  ;;  %v910_v51 = vmul.f32 0.70710677, %v898_v44  ;;  %v913_v52 = vmul.f32 0.70710677, %v900_v45 }
  0x1c   : > { %759 = vrcp.f32 %v267_v38  ;;  %v493_v53 = vmul.f32 1.442695, %v475_v40  ;;  %v237_v54 = vand.u32 2147483647, %v905_v49  ;;  %v916_v55 = vadd.f32 %v192_v47, %v176_v46 }
  0x1d   : > { %761 = vpow2.f32 %v489_v39  ;;  %v495_v56 = vmul.f32 1.442695, %v476_v43  ;;  %v238_v57 = vand.u32 2147483647, %v910_v51  ;;  %v239_v58 = vand.u32 2147483647, %v913_v52 }
  0x1e   : > { %763 = vrcp.f32 %v268_v42  ;;  %v253_v60 = vmul.f32 0.3275911, %v237_v54  ;;  %v461_v61 = vsub.f32 0.0, %v237_v54  ;;  %v923_v4 = vmul.f32 0.70710677, %v916_v55 }
  0x1f   : > { %765 = vpow2.f32 %v491_v48  ;;  %v254_v62 = vmul.f32 0.3275911, %v238_v57  ;;  %v462_v63 = vsub.f32 0.0, %v238_v57  ;;  %v255_v0 = vmul.f32 0.3275911, %v239_v58 }
  0x20   : > { %v463_v1 = vsub.f32 0.0, %v239_v58  ;;  %767 = vpow2.f32 %v493_v53  ;;  %v269_v2 = vadd.f32 1.0, %v253_v60  ;;  %v477_v3 = vmul.f32 %v461_v61, %v237_v54 }
  0x21   : > { %769 = vpow2.f32 %v495_v56  ;;  %v270_v9 = vadd.f32 1.0, %v254_v62  ;;  %v478_v7 = vmul.f32 %v462_v63, %v238_v57  ;;  %v271_v19 = vadd.f32 1.0, %v255_v0 }
  0x22   : > { %v479_v10 = vmul.f32 %v463_v1, %v239_v58  ;;  %771 = vrcp.f32 %v269_v2  ;;  %v497_v18 = vmul.f32 1.442695, %v477_v3  ;;  %v240_v20 = vand.u32 2147483647, %v923_v4 }
  0x23   : > { %773 = vrcp.f32 %v270_v9  ;;  %v499_v21 = vmul.f32 1.442695, %v478_v7  ;;  %v930_v23 = vadd.f32 %v193_v6, %v177_v5  ;;  %v934_v27 = vadd.f32 %v194_v17, %v178_v15 }
  0x24   : > { %v501_v22 = vmul.f32 1.442695, %v479_v10  ;;  %775 = vpow2.f32 %v497_v18  ;;  %v256_v25 = vmul.f32 0.3275911, %v240_v20  ;;  %v464_v26 = vsub.f32 0.0, %v240_v20 }
  0x25   : > { %v940_v30 = vmul.f32 0.5, %v870_v8  ;;  %777 = vpow2.f32 %v499_v21  ;;  %v943_v31 = vmul.f32 0.70710677, %v930_v23  ;;  %v947_v36 = vmul.f32 0.5, %v876_v12 }
  0x26   : > { %779 = vrcp.f32 %v271_v19  ;;  %v272_v33 = vadd.f32 1.0, %v256_v25  ;;  %v480_v34 = vmul.f32 %v464_v26, %v240_v20  ;;  %v953_v40 = vmul.f32 0.70710677, %v934_v27 }
  0x27   : > { %v932_v24 = vpop.eup %755  ;;  %781 = vpow2.f32 %v501_v22  ;;  %v241_v37 = vand.u32 2147483647, %v943_v31  ;;  %v963_v54 = vmul.f32 0.5, %v896_v41  ;;  %vm569_vm0 = vcmp.ge.f32.partialorder %v874_v11, 0.0 }
  0x28   : > { %v936_v28 = vpop.eup %757  ;;  %v313_v29 = vmul.f32 1.0614054, %v932_v24  ;;  %783 = vrcp.f32 %v272_v33  ;;  %v503_v39 = vmul.f32 1.442695, %v480_v34  ;;  %v242_v56 = vand.u32 2147483647, %v953_v40 }
  0x29   : > { %v314_v32 = vmul.f32 1.0614054, %v936_v28  ;;  %v950_v38 = vpop.eup %759  ;;  %v257_v47 = vmul.f32 0.3275911, %v241_v37  ;;  %v465_v12 = vsub.f32 0.0, %v241_v37  ;;  %vm570_vm1 = vcmp.ge.f32.partialorder %v878_v13, 0.0 }
  0x2a   : > { %v329_v35 = vadd.f32 -1.4531521, %v313_v29  ;;  %v955_v42 = vpop.eup %761  ;;  %v315_v46 = vmul.f32 1.0614054, %v950_v38  ;;  %785 = vpow2.f32 %v503_v39  ;;  %v258_v1 = vmul.f32 0.3275911, %v242_v56 }
  0x2b   : > { %v330_v8 = vadd.f32 -1.4531521, %v314_v32  ;;  %v959_v48 = vpop.eup %763  ;;  %v481_v62 = vmul.f32 %v465_v12, %v241_v37  ;;  %v273_v0 = vadd.f32 1.0, %v257_v47  ;;  %v466_v2 = vsub.f32 0.0, %v242_v56  ;;  %v195_v39 = vld [vmem:[%s862_s18 + $0x50] sm:$0xff] }
  0x2c   : > { %v345_v43 = vmul.f32 %v932_v24, %v329_v35  ;;  %v966_v57 = vpop.eup %765  ;;  %v331_v60 = vadd.f32 -1.4531521, %v315_v46  ;;  %v316_v61 = vmul.f32 1.0614054, %v959_v48  ;;  %v274_v15 = vadd.f32 1.0, %v258_v1 }
  0x2d   : > { %v346_v53 = vmul.f32 %v936_v28, %v330_v8  ;;  %v969_v3 = vpop.eup %767  ;;  %v505_v9 = vmul.f32 1.442695, %v481_v62  ;;  %787 = vrcp.f32 %v273_v0  ;;  %v482_v17 = vmul.f32 %v466_v2, %v242_v56  ;;  %v179_v8 = vld [vmem:[%s856_s15 + $0x50] sm:$0xff] }
  0x2e   : > { %v361_v58 = vadd.f32 1.4214138, %v345_v43  ;;  %v347_v41 = vmul.f32 %v950_v38, %v331_v60  ;;  %v332_v6 = vadd.f32 -1.4531521, %v316_v61  ;;  %v973_v7 = vpop.eup %769  ;;  %v994_v12 = vmul.f32 0.5, %v898_v44 }
  0x2f   : > { %v362_v63 = vadd.f32 1.4214138, %v346_v53  ;;  %v976_v18 = vpop.eup %771  ;;  %789 = vpow2.f32 %v505_v9  ;;  %v507_v29 = vmul.f32 1.442695, %v482_v17  ;;  %v1004_v2 = vadd.f32 %v195_v39, %v179_v8 }
  0x30   : > { %v377_v5 = vmul.f32 %v932_v24, %v361_v58  ;;  %v363_v20 = vadd.f32 1.4214138, %v347_v41  ;;  %v348_v21 = vmul.f32 %v959_v48, %v332_v6  ;;  %v979_v22 = vpop.eup %773  ;;  %v317_v26 = vmul.f32 1.0614054, %v976_v18 }
  0x31   : > { %v378_v10 = vmul.f32 %v936_v28, %v362_v63  ;;  %791 = vrcp.f32 %v274_v15  ;;  %v982_v32 = vpop.eup %775  ;;  %v318_v37 = vmul.f32 1.0614054, %v979_v22  ;;  %vm571_vm2 = vcmp.ge.f32.partialorder %v881_v14, 0.0 }
  0x32   : > { %v393_v19 = vadd.f32 -0.28449672, %v377_v5  ;;  %v379_v34 = vmul.f32 %v950_v38, %v363_v20  ;;  %v364_v35 = vadd.f32 1.4214138, %v348_v21  ;;  %v989_v43 = vpop.eup %777  ;;  %v333_v47 = vadd.f32 -1.4531521, %v317_v26 }
  0x33   : > { %v394_v25 = vadd.f32 -0.28449672, %v378_v10  ;;  %793 = vpow2.f32 %v507_v29  ;;  %v996_v53 = vpop.eup %779  ;;  %v334_v61 = vadd.f32 -1.4531521, %v318_v37  ;;  %vm572_vm4 = vcmp.ge.f32.partialorder %v885_v16, 0.0 }
  0x34   : > { %v409_v33 = vmul.f32 %v932_v24, %v393_v19  ;;  %v395_v58 = vadd.f32 -0.28449672, %v379_v34  ;;  %v380_v60 = vmul.f32 %v959_v48, %v364_v35  ;;  %v1000_v62 = vpop.eup %781  ;;  %v349_v0 = vmul.f32 %v976_v18, %v333_v47 }
  0x35   : > { %v410_v46 = vmul.f32 %v936_v28, %v394_v25  ;;  %v319_v1 = vmul.f32 1.0614054, %v996_v53  ;;  %v1006_v44 = vpop.eup %783  ;;  %v350_v9 = vmul.f32 %v979_v22, %v334_v61  ;;  %vm573_vm5 = vcmp.ge.f32.partialorder %v905_v49, 0.0 }
  0x36   : > { %v425_v56 = vadd.f32 0.2548296, %v409_v33  ;;  %v411_v41 = vmul.f32 %v950_v38, %v395_v58  ;;  %v396_v6 = vadd.f32 -0.28449672, %v380_v60  ;;  %v365_v15 = vadd.f32 1.4214138, %v349_v0 }
  0x37   : > { %v426_v63 = vadd.f32 0.2548296, %v410_v46  ;;  %v335_v17 = vadd.f32 -1.4531521, %v319_v1  ;;  %v320_v19 = vmul.f32 1.0614054, %v1006_v44  ;;  %v1014_v20 = vpop.eup %785 }
  0x38   : > { %v441_v5 = vmul.f32 %v932_v24, %v425_v56  ;;  %v427_v25 = vadd.f32 0.2548296, %v411_v41  ;;  %v412_v24 = vmul.f32 %v959_v48, %v396_v6  ;;  %v366_v26 = vadd.f32 1.4214138, %v350_v9 }
  0x39   : > { %v442_v10 = vmul.f32 %v936_v28, %v426_v63  ;;  %v381_v28 = vmul.f32 %v976_v18, %v365_v15  ;;  %v351_v33 = vmul.f32 %v996_v53, %v335_v17  ;;  %v336_v34 = vadd.f32 -1.4531521, %v320_v19 }
  0x3a   : > { %v521_v21 = vmul.f32 %v955_v42, %v441_v5  ;;  %v443_v37 = vmul.f32 %v950_v38, %v427_v25  ;;  %v428_v8 = vadd.f32 0.2548296, %v412_v24  ;;  %v382_v42 = vmul.f32 %v979_v22, %v366_v26  ;;  %v1025_v58 = vpop.eup %787 }
  0x3b   : > { %v522_v29 = vmul.f32 %v966_v57, %v442_v10  ;;  %v397_v46 = vadd.f32 -0.28449672, %v381_v28  ;;  %v367_v47 = vadd.f32 1.4214138, %v351_v33  ;;  %v352_v56 = vmul.f32 %v1006_v44, %v336_v34 }
  0x3c   : > { %v537_v35 = vsub.f32 1.0, %v521_v21  ;;  %v523_v60 = vmul.f32 %v969_v3, %v443_v37  ;;  %v444_v61 = vmul.f32 %v959_v48, %v428_v8  ;;  %v398_v63 = vadd.f32 -0.28449672, %v382_v42  ;;  %v1029_v0 = vpop.eup %789 }
  0x3d   : > { %v538_v39 = vsub.f32 1.0, %v522_v29  ;;  %v413_v38 = vmul.f32 %v976_v18, %v397_v46  ;;  %v383_v5 = vmul.f32 %v996_v53, %v367_v47  ;;  %v368_v41 = vadd.f32 1.4214138, %v352_v56 }
  0x3e   : > { %v585_v57 = vsub.f32 0.0, %v537_v35  ;;  %v1033_v6 = vpop.eup %791  ;;  %v539_v10 = vsub.f32 1.0, %v523_v60  ;;  %v524_v3 = vmul.f32 %v973_v7, %v444_v61  ;;  %v414_v48 = vmul.f32 %v979_v22, %v398_v63 }
  0x3f   : > { %v586_v1 = vsub.f32 0.0, %v538_v39  ;;  %v429_v19 = vadd.f32 0.2548296, %v413_v38  ;;  %vm574_vm6 = vcmp.ge.f32.partialorder %v910_v51, 0.0  ;;  %v399_v21 = vadd.f32 -0.28449672, %v383_v5 }
  0x40   : > { %v601_v9 = vsel %vm569_vm0, %v537_v35, %v585_v57  ;;  %v1043_v25 = vpop.eup %793  ;;  %v587_v7 = vsub.f32 0.0, %v539_v10  ;;  %v540_v24 = vsub.f32 1.0, %v524_v3  ;;  %v430_v26 = vadd.f32 0.2548296, %v414_v48 }
  0x41   : > { %v617_v15 = vadd.f32 1.0, %v601_v9  ;;  %v602_v17 = vsel %vm570_vm1, %v538_v39, %v586_v1  ;;  %v445_v29 = vmul.f32 %v976_v18, %v429_v19  ;;  %v415_v28 = vmul.f32 %v996_v53, %v399_v21 }
  0x42   : > { %v618_v11 = vadd.f32 1.0, %v602_v17  ;;  %v384_v33 = vmul.f32 %v1006_v44, %v368_v41  ;;  %v603_v35 = vsel %vm571_vm2, %v539_v10, %v587_v7  ;;  %v588_v37 = vsub.f32 0.0, %v540_v24 }
  0x43   : > { %v633_v13 = vmul.f32 %v617_v15, %v907_v50  ;;  %v446_v8 = vmul.f32 %v979_v22, %v430_v26  ;;  %v619_v42 = vadd.f32 1.0, %v603_v35  ;;  %v525_v39 = vmul.f32 %v982_v32, %v445_v29  ;;  %v196_v29 = vld [vmem:[%s862_s18 + $0x58] sm:$0xff] }
  0x44   : > { %v634_v34 = vmul.f32 %v618_v11, %v920_v59  ;;  %v431_v50 = vadd.f32 0.2548296, %v415_v28  ;;  %v400_v18 = vadd.f32 -0.28449672, %v384_v33  ;;  %v604_v46 = vsel %vm572_vm4, %v540_v24, %v588_v37  ;;  %v197_v37 = vld [vmem:[%s862_s18 + $0x60] sm:$0xff] }
  0x45   : > { %650 = vst.msk [vmem:[%s1049_s21] sm:$0xff] %vm649_vm3, %v633_v13  ;;  %v526_v59 = vmul.f32 %v989_v43, %v446_v8  ;;  %v321_v14 = vmul.f32 1.0614054, %v1025_v58  ;;  %v322_v47 = vmul.f32 1.0614054, %v1033_v6  ;;  %v635_v22 = vmul.f32 %v619_v42, %v940_v30  ;;  %v180_v13 = vld [vmem:[%s856_s15 + $0x58] sm:$0xff] }
  0x46   : > { %651 = vst.msk [vmem:[%s1049_s21 + $0x8] sm:$0xff] %vm649_vm3, %v634_v34  ;;  %v620_v56 = vadd.f32 1.0, %v604_v46  ;;  %v541_v57 = vsub.f32 1.0, %v525_v39  ;;  %v447_v32 = vmul.f32 %v996_v53, %v431_v50  ;;  %v416_v61 = vmul.f32 %v1006_v44, %v400_v18  ;;  %v182_v8 = vld [vmem:[%s856_s15 + $0x68] sm:$0xff] }
  0x47   : > { %v542_v60 = vsub.f32 1.0, %v526_v59  ;;  %v337_v63 = vadd.f32 -1.4531521, %v321_v14  ;;  %v338_v1 = vadd.f32 -1.4531521, %v322_v47  ;;  %652 = vst.msk [vmem:[%s1049_s21 + $0x10] sm:$0xff] %vm649_vm3, %v635_v22 }
  0x48   : > { %v636_v16 = vmul.f32 %v620_v56, %v947_v36  ;;  %v589_v43 = vsub.f32 0.0, %v541_v57  ;;  %v527_v38 = vmul.f32 %v1000_v62, %v447_v32  ;;  %v1077_v5 = vmul.f32 0.70710677, %v1004_v2  ;;  %v198_v42 = vld [vmem:[%s862_s18 + $0x68] sm:$0xff] }
  0x49   : > { %v590_v30 = vsub.f32 0.0, %v542_v60  ;;  %v432_v41 = vadd.f32 0.2548296, %v416_v61  ;;  %v353_v9 = vmul.f32 %v1025_v58, %v337_v63  ;;  %v354_v53 = vmul.f32 %v1033_v6, %v338_v1 }
  0x4a   : > { %653 = vst.msk [vmem:[%s1049_s21 + $0x18] sm:$0xff] %vm649_vm3, %v636_v16  ;;  %v605_v10 = vsel %vm573_vm5, %v541_v57, %v589_v43  ;;  %v543_v3 = vsub.f32 1.0, %v527_v38  ;;  %vm575_vm7 = vcmp.ge.f32.partialorder %v913_v52, 0.0  ;;  %v243_v36 = vand.u32 2147483647, %v1077_v5 }
  0x4b   : > { %v621_v62 = vadd.f32 1.0, %v605_v10  ;;  %v606_v48 = vsel %vm574_vm6, %v542_v60, %v590_v30  ;;  %v448_v15 = vmul.f32 %v1006_v44, %v432_v41  ;;  %v369_v17 = vadd.f32 1.4214138, %v353_v9 }
  0x4c   : > { %v622_v19 = vadd.f32 1.0, %v606_v48  ;;  %v591_v21 = vsub.f32 0.0, %v543_v3  ;;  %v370_v11 = vadd.f32 1.4214138, %v354_v53  ;;  %v259_v49 = vmul.f32 0.3275911, %v243_v36 }
  0x4d   : > { %v637_v7 = vmul.f32 %v621_v62, %v963_v54  ;;  %v559_v24 = vmul.f32 0.5, %v900_v45  ;;  %v528_v26 = vmul.f32 %v1014_v20, %v448_v15  ;;  %v385_v51 = vmul.f32 %v1025_v58, %v369_v17  ;;  %v181_v20 = vld [vmem:[%s856_s15 + $0x60] sm:$0xff]  ;;  %v183_v15 = vld [vmem:[%s856_s15 + $0x70] sm:$0xff] }
  0x4e   : > { %v638_v44 = vmul.f32 %v622_v19, %v994_v12  ;;  %v607_v28 = vsel %vm575_vm7, %v543_v3, %v591_v21  ;;  %v386_v33 = vmul.f32 %v1033_v6, %v370_v11  ;;  %v275_v34 = vadd.f32 1.0, %v259_v49 }
  0x4f   : > { %654 = vst.msk [vmem:[%s1049_s21 + $0x20] sm:$0xff] %vm649_vm3, %v637_v7  ;;  %v623_v54 = vadd.f32 1.0, %v607_v28  ;;  %v544_v45 = vsub.f32 1.0, %v528_v26  ;;  %v401_v35 = vadd.f32 -0.28449672, %v385_v51  ;;  %vm576_vm8 = vcmp.ge.f32.partialorder %v923_v4, 0.0 }
  0x50   : > { %655 = vst.msk [vmem:[%s1049_s21 + $0x28] sm:$0xff] %vm649_vm3, %v638_v44  ;;  %v402_v12 = vadd.f32 -0.28449672, %v386_v33  ;;  %795 = vrcp.f32 %v275_v34  ;;  %v1107_v52 = vadd.f32 %v196_v29, %v180_v13  ;;  %v560_v46 = vmul.f32 0.5, %v916_v55  ;;  %v184_v51 = vld [vmem:[%s856_s15 + $0x78] sm:$0xff] }
  0x51   : > { %v639_v39 = vmul.f32 %v623_v54, %v559_v24  ;;  %v592_v50 = vsub.f32 0.0, %v544_v45  ;;  %v417_v18 = vmul.f32 %v1025_v58, %v401_v35  ;;  %v1117_v47 = vadd.f32 %v197_v37, %v181_v20  ;;  %v200_v13 = vld [vmem:[%s862_s18 + $0x78] sm:$0xff] }
  0x52   : > { %v418_v59 = vmul.f32 %v1033_v6, %v402_v12  ;;  %v1115_v14 = vmul.f32 0.70710677, %v1107_v52  ;;  %v1121_v56 = vadd.f32 %v198_v42, %v182_v8  ;;  %v467_v60 = vsub.f32 0.0, %v243_v36 }
  0x53   : > { %656 = vst.msk [vmem:[%s1049_s21 + $0x30] sm:$0xff] %vm649_vm3, %v639_v39  ;;  %v608_v4 = vsel %vm576_vm8, %v544_v45, %v592_v50  ;;  %v433_v22 = vadd.f32 0.2548296, %v417_v18  ;;  %v1126_v63 = vmul.f32 0.70710677, %v1117_v47  ;;  %vm577_vm9 = vcmp.ge.f32.partialorder %v943_v31, 0.0 }
  0x54   : > { %v624_v57 = vadd.f32 1.0, %v608_v4  ;;  %v434_v32 = vadd.f32 0.2548296, %v418_v59  ;;  %v244_v61 = vand.u32 2147483647, %v1115_v14  ;;  %v483_v53 = vmul.f32 %v467_v60, %v243_v36 }
  0x55   : > { %v449_v55 = vmul.f32 %v1025_v58, %v433_v22  ;;  %v1129_v1 = vmul.f32 0.70710677, %v1121_v56  ;;  %v245_v41 = vand.u32 2147483647, %v1126_v63  ;;  %vm578_vm10 = vcmp.ge.f32.partialorder %v953_v40, 0.0 }
  0x56   : > { %v640_v16 = vmul.f32 %v624_v57, %v560_v46  ;;  %v450_v43 = vmul.f32 %v1033_v6, %v434_v32  ;;  %v260_v38 = vmul.f32 0.3275911, %v244_v61  ;;  %v562_v36 = vmul.f32 0.5, %v934_v27 }
  0x57   : > { %v529_v30 = vmul.f32 %v1029_v0, %v449_v55  ;;  %v246_v9 = vand.u32 2147483647, %v1129_v1  ;;  %v261_v62 = vmul.f32 0.3275911, %v245_v41  ;;  %v199_v0 = vld [vmem:[%s862_s18 + $0x70] sm:$0xff]  ;;  %v468_v31 = vsub.f32 0.0, %v244_v61 }
  0x58   : > { %657 = vst.msk [vmem:[%s1049_s21 + $0x38] sm:$0xff] %vm649_vm3, %v640_v16  ;;  %v530_v58 = vmul.f32 %v1043_v25, %v450_v43  ;;  %v276_v10 = vadd.f32 1.0, %v260_v38  ;;  %v561_v25 = vmul.f32 0.5, %v930_v23  ;;  %v509_v49 = vmul.f32 1.442695, %v483_v53 }
  0x59   : > { %v545_v3 = vsub.f32 1.0, %v529_v30  ;;  %v262_v48 = vmul.f32 0.3275911, %v246_v9  ;;  %v277_v19 = vadd.f32 1.0, %v261_v62  ;;  %v1144_v26 = vadd.f32 %v199_v0, %v183_v15 }
  0x5a   : > { %v546_v6 = vsub.f32 1.0, %v530_v58  ;;  %797 = vrcp.f32 %v276_v10  ;;  %v469_v23 = vsub.f32 0.0, %v245_v41  ;;  %v1151_v54 = vadd.f32 %v200_v13, %v184_v51 }
  0x5b   : > { %v593_v17 = vsub.f32 0.0, %v545_v3  ;;  %v278_v21 = vadd.f32 1.0, %v262_v48  ;;  %799 = vrcp.f32 %v277_v19  ;;  %v1149_v27 = vmul.f32 0.70710677, %v1144_v26 }
  0x5c   : > { %v594_v11 = vsub.f32 0.0, %v546_v6  ;;  %v484_v35 = vmul.f32 %v468_v31, %v244_v61  ;;  %v470_v20 = vsub.f32 0.0, %v246_v9  ;;  %v1157_v8 = vmul.f32 0.70710677, %v1151_v54 }
  0x5d   : > { %v796_v7 = vpop.eup %795  ;;  %v609_v24 = vsel %vm577_vm9, %v545_v3, %v593_v17  ;;  %801 = vrcp.f32 %v278_v21  ;;  %v247_v37 = vand.u32 2147483647, %v1149_v27  ;;  %v485_v42 = vmul.f32 %v469_v23, %v245_v41 }
  0x5e   : > { %v625_v29 = vadd.f32 1.0, %v609_v24  ;;  %v610_v44 = vsel %vm578_vm10, %v546_v6, %v594_v11  ;;  %v323_v40 = vmul.f32 1.0614054, %v796_v7  ;;  %803 = vpow2.f32 %v509_v49 }
  0x5f   : > { %v626_v28 = vadd.f32 1.0, %v610_v44  ;;  %v263_v39 = vmul.f32 0.3275911, %v247_v37  ;;  %v248_v18 = vand.u32 2147483647, %v1157_v8  ;;  %v486_v59 = vmul.f32 %v470_v20, %v246_v9 }
  0x60   : > { %v641_v33 = vmul.f32 %v625_v29, %v561_v25  ;;  %v339_v34 = vadd.f32 -1.4531521, %v323_v40  ;;  %v511_v46 = vmul.f32 1.442695, %v484_v35  ;;  %v513_v60 = vmul.f32 1.442695, %v485_v42 }
  0x61   : > { %v642_v45 = vmul.f32 %v626_v28, %v562_v36  ;;  %v279_v4 = vadd.f32 1.0, %v263_v39  ;;  %v264_v57 = vmul.f32 0.3275911, %v248_v18  ;;  %v515_v43 = vmul.f32 1.442695, %v486_v59 }
  0x62   : > { %658 = vst.msk [vmem:[%s1049_s21 + $0x40] sm:$0xff] %vm649_vm3, %v641_v33  ;;  %v355_v12 = vmul.f32 %v796_v7, %v339_v34  ;;  %v471_v10 = vsub.f32 0.0, %v247_v37  ;;  %v472_v19 = vsub.f32 0.0, %v248_v18  ;;  %vm579_vm11 = vcmp.ge.f32.partialorder %v1077_v5, 0.0 }
  0x63   : > { %659 = vst.msk [vmem:[%s1049_s21 + $0x48] sm:$0xff] %vm649_vm3, %v642_v45  ;;  %805 = vrcp.f32 %v279_v4  ;;  %v280_v16 = vadd.f32 1.0, %v264_v57  ;;  %v563_v34 = vmul.f32 0.5, %v1004_v2  ;;  %vm580_vm12 = vcmp.ge.f32.partialorder %v1115_v14, 0.0 }
  0x64   : > { %v371_v50 = vadd.f32 1.4214138, %v355_v12  ;;  %807 = vpow2.f32 %v511_v46  ;;  %v487_v25 = vmul.f32 %v471_v10, %v247_v37  ;;  %v488_v29 = vmul.f32 %v472_v19, %v248_v18 }
  0x65   : > { %809 = vrcp.f32 %v280_v16  ;;  %vm581_vm13 = vcmp.ge.f32.partialorder %v1126_v63, 0.0  ;;  %vm582_vm14 = vcmp.ge.f32.partialorder %v1129_v1, 0.0  ;;  %vm583_vm15 = vcmp.ge.f32.partialorder %v1149_v27, 0.0 }
  0x66   : > { %v387_v22 = vmul.f32 %v796_v7, %v371_v50  ;;  %811 = vpow2.f32 %v513_v60  ;;  %v517_v40 = vmul.f32 1.442695, %v487_v25  ;;  %v519_v39 = vmul.f32 1.442695, %v488_v29 }
  0x67   : > { %v798_v32 = vpop.eup %797  ;;  %813 = vpow2.f32 %v515_v43  ;;  %vm584_vm0 = vcmp.ge.f32.partialorder %v1157_v8, 0.0 }
  0x68   : > { %v403_v61 = vadd.f32 -0.28449672, %v387_v22  ;;  %v324_v55 = vmul.f32 1.0614054, %v798_v32  ;;  %v800_v38 = vpop.eup %799  ;;  %815 = vpow2.f32 %v517_v40 }
  0x69   : > { %v325_v53 = vmul.f32 1.0614054, %v800_v38  ;;  %817 = vpow2.f32 %v519_v39 }
  0x6a   : > { %v419_v30 = vmul.f32 %v796_v7, %v403_v61  ;;  %v340_v41 = vadd.f32 -1.4531521, %v324_v55  ;;  %v802_v58 = vpop.eup %801 }
  0x6b   : > { %v326_v62 = vmul.f32 1.0614054, %v802_v58  ;;  %v804_v48 = vpop.eup %803  ;;  %v341_v6 = vadd.f32 -1.4531521, %v325_v53 }
  0x6c   : > { %v435_v3 = vadd.f32 0.2548296, %v419_v30  ;;  %v356_v9 = vmul.f32 %v798_v32, %v340_v41 }
  0x6d   : > { %v342_v17 = vadd.f32 -1.4531521, %v326_v62  ;;  %v357_v21 = vmul.f32 %v800_v38, %v341_v6 }
  0x6e   : > { %v451_v15 = vmul.f32 %v796_v7, %v435_v3  ;;  %v372_v0 = vadd.f32 1.4214138, %v356_v9 }
  0x6f   : > { %v358_v49 = vmul.f32 %v802_v58, %v342_v17  ;;  %v373_v24 = vadd.f32 1.4214138, %v357_v21 }
  0x70   : > { %v531_v36 = vmul.f32 %v804_v48, %v451_v15  ;;  %v388_v11 = vmul.f32 %v798_v32, %v372_v0  ;;  %v1163_v28 = vpop.eup %805  ;;  %v564_v0 = vmul.f32 0.5, %v1107_v52 }
  0x71   : > { %v374_v13 = vadd.f32 1.4214138, %v358_v49  ;;  %v389_v44 = vmul.f32 %v800_v38, %v373_v24  ;;  %v327_v35 = vmul.f32 1.0614054, %v1163_v28  ;;  %v808_v20 = vpop.eup %807 }
  0x72   : > { %v547_v31 = vsub.f32 1.0, %v531_v36  ;;  %v404_v51 = vadd.f32 -0.28449672, %v388_v11  ;;  %v810_v50 = vpop.eup %809  ;;  %v565_v11 = vmul.f32 0.5, %v1117_v47 }
  0x73   : > { %v390_v33 = vmul.f32 %v802_v58, %v374_v13  ;;  %v405_v45 = vadd.f32 -0.28449672, %v389_v44  ;;  %v343_v46 = vadd.f32 -1.4531521, %v327_v35  ;;  %v328_v22 = vmul.f32 1.0614054, %v810_v50  ;;  %v812_v57 = vpop.eup %811 }
  0x74   : > { %v595_v7 = vsub.f32 0.0, %v547_v31  ;;  %v420_v23 = vmul.f32 %v798_v32, %v404_v51  ;;  %v814_v55 = vpop.eup %813  ;;  %v566_v51 = vmul.f32 0.5, %v1121_v56 }
  0x75   : > { %v406_v42 = vadd.f32 -0.28449672, %v390_v33  ;;  %v421_v5 = vmul.f32 %v800_v38, %v405_v45  ;;  %v359_v61 = vmul.f32 %v1163_v28, %v343_v46  ;;  %v344_v30 = vadd.f32 -1.4531521, %v328_v22  ;;  %v816_v13 = vpop.eup %815 }
  0x76   : > { %v611_v37 = vsel %vm579_vm11, %v547_v31, %v595_v7  ;;  %v436_v12 = vadd.f32 0.2548296, %v420_v23  ;;  %v818_v33 = vpop.eup %817 }
  0x77   : > { %v627_v18 = vadd.f32 1.0, %v611_v37  ;;  %v422_v4 = vmul.f32 %v802_v58, %v406_v42  ;;  %v437_v2 = vadd.f32 0.2548296, %v421_v5  ;;  %v375_v53 = vadd.f32 1.4214138, %v359_v61 }
  0x78   : > { %v452_v59 = vmul.f32 %v798_v32, %v436_v12  ;;  %v360_v9 = vmul.f32 %v810_v50, %v344_v30  ;;  %v567_v12 = vmul.f32 0.5, %v1144_v26  ;;  %v568_v5 = vmul.f32 0.5, %v1151_v54 }
  0x79   : > { %v643_v60 = vmul.f32 %v627_v18, %v563_v34  ;;  %v438_v43 = vadd.f32 0.2548296, %v422_v4  ;;  %v453_v41 = vmul.f32 %v800_v38, %v437_v2  ;;  %v391_v62 = vmul.f32 %v1163_v28, %v375_v53 }
  0x7a   : > { %v532_v16 = vmul.f32 %v808_v20, %v452_v59  ;;  %v376_v15 = vadd.f32 1.4214138, %v360_v9 }
  0x7b   : > { %660 = vst.msk [vmem:[%s1049_s21 + $0x50] sm:$0xff] %vm649_vm3, %v643_v60  ;;  %v454_v3 = vmul.f32 %v802_v58, %v438_v43  ;;  %v533_v32 = vmul.f32 %v812_v57, %v453_v41  ;;  %v407_v19 = vadd.f32 -0.28449672, %v391_v62 }
  0x7c   : > { %v548_v10 = vsub.f32 1.0, %v532_v16  ;;  %v392_v25 = vmul.f32 %v810_v50, %v376_v15 }
  0x7d   : > { %v534_v6 = vmul.f32 %v814_v55, %v454_v3  ;;  %v549_v17 = vsub.f32 1.0, %v533_v32  ;;  %v423_v14 = vmul.f32 %v1163_v28, %v407_v19 }
  0x7e   : > { %v596_v48 = vsub.f32 0.0, %v548_v10  ;;  %v408_v24 = vadd.f32 -0.28449672, %v392_v25 }
  0x7f   : > { %v550_v38 = vsub.f32 1.0, %v534_v6  ;;  %v597_v36 = vsub.f32 0.0, %v549_v17  ;;  %v439_v63 = vadd.f32 0.2548296, %v423_v14 }
  0x80   : > { %v612_v21 = vsel %vm580_vm12, %v548_v10, %v596_v48  ;;  %v424_v40 = vmul.f32 %v810_v50, %v408_v24 }
  0x81   : > { %v628_v58 = vadd.f32 1.0, %v612_v21  ;;  %v598_v49 = vsub.f32 0.0, %v550_v38  ;;  %v613_v52 = vsel %vm581_vm13, %v549_v17, %v597_v36  ;;  %v455_v7 = vmul.f32 %v1163_v28, %v439_v63 }
  0x82   : > { %v629_v29 = vadd.f32 1.0, %v613_v52  ;;  %v440_v47 = vadd.f32 0.2548296, %v424_v40 }
  0x83   : > { %v644_v31 = vmul.f32 %v628_v58, %v564_v0  ;;  %v614_v44 = vsel %vm582_vm14, %v550_v38, %v598_v49  ;;  %v535_v45 = vmul.f32 %v816_v13, %v455_v7 }
  0x84   : > { %v630_v1 = vadd.f32 1.0, %v614_v44  ;;  %v645_v23 = vmul.f32 %v629_v29, %v565_v11  ;;  %v456_v35 = vmul.f32 %v810_v50, %v440_v47 }
  0x85   : > { %661 = vst.msk [vmem:[%s1049_s21 + $0x58] sm:$0xff] %vm649_vm3, %v644_v31  ;;  %v551_v56 = vsub.f32 1.0, %v535_v45 }
  0x86   : > { %v646_v34 = vmul.f32 %v630_v1, %v566_v51  ;;  %662 = vst.msk [vmem:[%s1049_s21 + $0x60] sm:$0xff] %vm649_vm3, %v645_v23  ;;  %v536_v20 = vmul.f32 %v818_v33, %v456_v35 }
  0x87   : > { %v599_v37 = vsub.f32 0.0, %v551_v56 }
  0x88   : > { %663 = vst.msk [vmem:[%s1049_s21 + $0x68] sm:$0xff] %vm649_vm3, %v646_v34  ;;  %v552_v28 = vsub.f32 1.0, %v536_v20 }
  0x89   : > { %v615_v42 = vsel %vm583_vm15, %v551_v56, %v599_v37 }
  0x8a   : > { %v631_v39 = vadd.f32 1.0, %v615_v42  ;;  %v600_v18 = vsub.f32 0.0, %v552_v28 }
  0x8c   : > { %v647_v50 = vmul.f32 %v631_v39, %v567_v12  ;;  %v616_v46 = vsel %vm584_vm0, %v552_v28, %v600_v18 }
  0x8d   : > { %v632_v59 = vadd.f32 1.0, %v616_v46 }
  0x8e   : > { %664 = vst.msk [vmem:[%s1049_s21 + $0x70] sm:$0xff] %vm649_vm3, %v647_v50 }
  0x8f   : > { %v648_v4 = vmul.f32 %v632_v59, %v568_v5 }
  0x91   : > { %665 = vst.msk [vmem:[%s1049_s21 + $0x78] sm:$0xff] %vm649_vm3, %v648_v4 }
  0x92 PF: > { %s12_s9 = sadd.s32 1, %s825_s9  }
  0x93   : > { %p9_p4 = scmp.ge.s32.totalorder %s12_s9, 4  }
  0x95   :  { %11 = sbr.rel (!%p9_p4) target bundleno = 1 (0x1), region = 61 }

// kernel: dfno_forward.17
= control target key start
LH: loop header
LB: loop body
LE: loop exit
PB: predicated region body
PF: predicated region fallthrough
CT: control target
= control target key end

     0   :  { %s1430_s20 = smov 0   ;;  %s1936_s0 = inlined_call_operand.vmem [shape: f32[256,16], index: 0, kind: input, shape index: {}]   ;;  %s1937_s1 = inlined_call_operand.vmem [shape: f32[16,128], index: 1, kind: input, shape index: {}]   ;;  %s1938_s2 = inlined_call_operand.vmem [shape: f32[1,128], index: 2, kind: input, shape index: {}]   ;;  %s1939_s3 = inlined_call_operand.vmem [shape: f32[128,1], index: 3, kind: input, shape index: {}]   ;;  %s1940_s4 = inlined_call_operand.<no memory space> [shape: f32[1,1], index: 4, kind: input, shape index: {}]   ;;  %s1941_s5 = inlined_call_operand.vmem [shape: f32[256,1], index: 5, kind: output, shape index: {}]  }
   0x1   :  { %v10_v0 = vstv %s1940_s4 }
   0x2   :  { %11 = vst [vmem:[#allocation2] sm:$0x1] %v10_v0 }
   0x3 LB: > { %s1122_s21 = sadd.s32 4294967295, %s1395_s20   ;;  %p1126_p0 = scmp.ge.s32.totalorder %s1395_s20, 1  ;;  %s1395_s20 = sphi %s1430_s20, %s17_s20  }
   0x4   : > { %p190_p1 = scmp.lt.s32.totalorder %s1395_s20, 3 }
   0x6   : > { %p191_p2 = pnand %p1126_p0, %p190_p1 }
   0x8   : > { %194 = sbr.rel (%p191_p2) target bundleno = 531 (0x213), region = 40 }
   0xd   : > { %v247_v1 = vld [vmem:[%s1937_s1 + $0x8] sm:$0xff]  ;;  %v246_v2 = vld [vmem:[%s1937_s1] sm:$0xff]  ;;  %s1127_s25 = sshll.u32 %s1122_s21, 4  ;;  %vm255_vm0 = vcmask 130048   ;;  %v896_v19 = vld [vmem:[%s1939_s3 + $0x78] sm:$0xff] }
   0xe   : > { %1201 = vmatprep.subr.mxu0 %v247_v1  ;;  %p219_p3 = scmp.lt.s32.totalorder %s1127_s25, 31  ;;  %1285 = vmatprep.subr.mxu1 %v896_v19  ;;  %v895_v20 = vld [vmem:[%s1939_s3 + $0x70] sm:$0xff]  ;;  %v894_v21 = vld [vmem:[%s1939_s3 + $0x68] sm:$0xff]  ;;  %v893_v22 = vld [vmem:[%s1939_s3 + $0x60] sm:$0xff] }
   0xf   : > { %1202 = vmatpush3.msra.mxu0 %v247_v1  ;;  %1301 = vmatpush3.msra.mxu1 %v896_v19  ;;  %v892_v23 = vld [vmem:[%s1939_s3 + $0x58] sm:$0xff]  ;;  %v891_v24 = vld [vmem:[%s1939_s3 + $0x50] sm:$0xff]  ;;  %v890_v25 = vld [vmem:[%s1939_s3 + $0x48] sm:$0xff] }
  0x10   : > { %1203 = vmatprep.subr.mxu0 %v246_v2  ;;  %s1983_s25 = smov (!%p219_p3, %s1127_s25), 31  ;;  %1286 = vmatprep.subr.mxu1 %v895_v20  ;;  %v889_v26 = vld [vmem:[%s1939_s3 + $0x40] sm:$0xff]  ;;  %v888_v27 = vld [vmem:[%s1939_s3 + $0x38] sm:$0xff]  ;;  %v887_v28 = vld [vmem:[%s1939_s3 + $0x30] sm:$0xff] }
  0x11   : > { %1204 = vmatpush3.msra.mxu0 %v246_v2  ;;  %s1128_s26 = sshll.u32 %s1983_s25, 3  ;;  %1302 = vmatpush3.msra.mxu1 %v895_v20  ;;  %v886_v29 = vld [vmem:[%s1939_s3 + $0x28] sm:$0xff]  ;;  %v885_v30 = vld [vmem:[%s1939_s3 + $0x20] sm:$0xff]  ;;  %v884_v31 = vld [vmem:[%s1939_s3 + $0x18] sm:$0xff] }
  0x12   : > { %s1452_s29 = scalar_lea.vmem %s1936_s0, %s1128_s26  ;;  %1229 = vmatprep.subr.mxu0 %v896_v19  ;;  %1287 = vmatprep.subr.mxu1 %v894_v21  ;;  %v883_v32 = vld [vmem:[%s1939_s3 + $0x10] sm:$0xff]  ;;  %v882_v33 = vld [vmem:[%s1939_s3 + $0x8] sm:$0xff]  ;;  %v881_v34 = vld [vmem:[%s1939_s3] sm:$0xff]  ;;  %s1899_s18 = scalar_lea.vmem %s1941_s5, %s1128_s26 }
  0x13   : > { %v230_v3 = vld [vmem:[%s1452_s29] sm:$0xff]  ;;  %v231_v4 = vld [vmem:[%s1452_s29 + $0x8] sm:$0xff]  ;;  %v232_v5 = vld [vmem:[%s1452_s29 + $0x10] sm:$0xff]  ;;  %1303 = vmatpush3.msra.mxu1 %v894_v21 }
  0x14   : > { %1205 = vmatprep.mubr.msk.f32.mxu0 %vm255_vm0, %v230_v3  ;;  %v233_v6 = vld [vmem:[%s1452_s29 + $0x18] sm:$0xff]  ;;  %v234_v7 = vld [vmem:[%s1452_s29 + $0x20] sm:$0xff]  ;;  %v235_v8 = vld [vmem:[%s1452_s29 + $0x28] sm:$0xff]  ;;  %1288 = vmatprep.subr.mxu1 %v893_v22 }
  0x15   : > { %1206 = vmatmul.mubr.msk.f32.vlgmr.msra.gmra.mxu0 %vm255_vm0, %v231_v4  ;;  %v236_v9 = vld [vmem:[%s1452_s29 + $0x30] sm:$0xff]  ;;  %v237_v10 = vld [vmem:[%s1452_s29 + $0x38] sm:$0xff]  ;;  %v238_v11 = vld [vmem:[%s1452_s29 + $0x40] sm:$0xff]  ;;  %1304 = vmatpush3.msra.mxu1 %v893_v22 }
  0x16   : > { %1208 = vmatprep.mubr.msk.f32.mxu0 %vm255_vm0, %v232_v5  ;;  %v239_v12 = vld [vmem:[%s1452_s29 + $0x48] sm:$0xff]  ;;  %v240_v13 = vld [vmem:[%s1452_s29 + $0x50] sm:$0xff]  ;;  %v241_v14 = vld [vmem:[%s1452_s29 + $0x58] sm:$0xff]  ;;  %1230 = vmatpush3.msra.mxu0 %v896_v19 }
  0x17   : > { %v242_v15 = vld [vmem:[%s1452_s29 + $0x60] sm:$0xff]  ;;  %v243_v16 = vld [vmem:[%s1452_s29 + $0x68] sm:$0xff]  ;;  %v244_v17 = vld [vmem:[%s1452_s29 + $0x70] sm:$0xff]  ;;  %1231 = vmatprep.subr.mxu0 %v895_v20  ;;  %1289 = vmatprep.subr.mxu1 %v892_v23 }
  0x18   : > { %v245_v18 = vld [vmem:[%s1452_s29 + $0x78] sm:$0xff]  ;;  %1232 = vmatpush3.msra.mxu0 %v895_v20  ;;  %1305 = vmatpush3.msra.mxu1 %v892_v23  ;;  %v1537_v35 = vld [vmem:[%s1938_s2] ss:$0 sm:$0xff] }
  0x19   : > { %1209 = vmatmul.mubr.msk.f32.gmra.mxu0 %vm255_vm0, %v233_v6  ;;  %1233 = vmatprep.subr.mxu0 %v894_v21 }
  0x1a   : > { %1211 = vmatprep.mubr.msk.f32.mxu0 %vm255_vm0, %v234_v7  ;;  %1234 = vmatpush3.msra.mxu0 %v894_v21 }
  0x1b   : > { %1235 = vmatprep.subr.mxu0 %v893_v22  ;;  %1290 = vmatprep.subr.mxu1 %v891_v24 }
  0x1c   : > { %1236 = vmatpush3.msra.mxu0 %v893_v22  ;;  %1306 = vmatpush3.msra.mxu1 %v891_v24 }
  0x1d   : > { %1212 = vmatmul.mubr.msk.f32.gmra.mxu0 %vm255_vm0, %v235_v8  ;;  %1237 = vmatprep.subr.mxu0 %v892_v23 }
  0x1e   : > { %1214 = vmatprep.mubr.msk.f32.mxu0 %vm255_vm0, %v236_v9  ;;  %1238 = vmatpush3.msra.mxu0 %v892_v23 }
  0x1f   : > { %1239 = vmatprep.subr.mxu0 %v891_v24  ;;  %1291 = vmatprep.subr.mxu1 %v890_v25 }
  0x20   : > { %1240 = vmatpush3.msra.mxu0 %v891_v24  ;;  %1307 = vmatpush3.msra.mxu1 %v890_v25 }
  0x21   : > { %1215 = vmatmul.mubr.msk.f32.gmra.mxu0 %vm255_vm0, %v237_v10  ;;  %1241 = vmatprep.subr.mxu0 %v890_v25 }
  0x22   : > { %1217 = vmatprep.mubr.msk.f32.mxu0 %vm255_vm0, %v238_v11  ;;  %1242 = vmatpush3.msra.mxu0 %v890_v25 }
  0x23   : > { %1243 = vmatprep.subr.mxu0 %v889_v26  ;;  %1292 = vmatprep.subr.mxu1 %v889_v26 }
  0x24   : > { %1244 = vmatpush3.msra.mxu0 %v889_v26  ;;  %1308 = vmatpush3.msra.mxu1 %v889_v26 }
  0x25   : > { %1218 = vmatmul.mubr.msk.f32.gmra.mxu0 %vm255_vm0, %v239_v12  ;;  %1245 = vmatprep.subr.mxu0 %v888_v27 }
  0x26   : > { %1220 = vmatprep.mubr.msk.f32.mxu0 %vm255_vm0, %v240_v13  ;;  %1293 = vmatprep.subr.mxu1 %v888_v27 }
  0x27   : > { %1246 = vmatpush3.msra.mxu0 %v888_v27  ;;  %1309 = vmatpush3.msra.mxu1 %v888_v27 }
  0x28   : > { %1247 = vmatprep.subr.mxu0 %v887_v28  ;;  %1294 = vmatprep.subr.mxu1 %v887_v28 }
  0x29   : > { %1221 = vmatmul.mubr.msk.f32.gmra.mxu0 %vm255_vm0, %v241_v14  ;;  %1310 = vmatpush3.msra.mxu1 %v887_v28 }
  0x2a   : > { %1223 = vmatprep.mubr.msk.f32.mxu0 %vm255_vm0, %v242_v15  ;;  %1248 = vmatpush3.msra.mxu0 %v887_v28 }
  0x2b   : > { %1249 = vmatprep.subr.mxu0 %v886_v29  ;;  %1295 = vmatprep.subr.mxu1 %v886_v29 }
  0x2c   : > { %1250 = vmatpush3.msra.mxu0 %v886_v29  ;;  %1311 = vmatpush3.msra.mxu1 %v886_v29 }
  0x2d   : > { %1224 = vmatmul.mubr.msk.f32.gmra.mxu0 %vm255_vm0, %v243_v16  ;;  %1251 = vmatprep.subr.mxu0 %v885_v30 }
  0x2e   : > { %1226 = vmatprep.mubr.msk.f32.mxu0 %vm255_vm0, %v244_v17  ;;  %1296 = vmatprep.subr.mxu1 %v885_v30 }
  0x2f   : > { %1252 = vmatpush3.msra.mxu0 %v885_v30  ;;  %1312 = vmatpush3.msra.mxu1 %v885_v30 }
  0x30   : > { %1253 = vmatprep.subr.mxu0 %v884_v31  ;;  %1297 = vmatprep.subr.mxu1 %v884_v31 }
  0x31   : > { %1227 = vmatmul.mubr.msk.f32.gmra.mxu0 %vm255_vm0, %v245_v18  ;;  %1313 = vmatpush3.msra.mxu1 %v884_v31 }
  0x32   : > { %1254 = vmatpush3.msra.mxu0 %v884_v31  ;;  %1298 = vmatprep.subr.mxu1 %v883_v32 }
  0x33   : > { %1255 = vmatprep.subr.mxu0 %v883_v32  ;;  %1314 = vmatpush3.msra.mxu1 %v883_v32 }
  0x34   : > { %1256 = vmatpush3.msra.mxu0 %v883_v32  ;;  %1299 = vmatprep.subr.mxu1 %v882_v33 }
  0x35   : > { %1257 = vmatprep.subr.mxu0 %v882_v33  ;;  %1315 = vmatpush3.msra.mxu1 %v882_v33 }
  0x36   : > { %1258 = vmatpush3.msra.mxu0 %v882_v33  ;;  %1300 = vmatprep.subr.mxu1 %v881_v34 }
  0x37   : > { %1259 = vmatprep.subr.mxu0 %v881_v34  ;;  %1316 = vmatpush3.msra.mxu1 %v881_v34 }
  0x38   : > { %1260 = vmatpush3.msra.mxu0 %v881_v34 }
  0xd5   : > { %v1207_v36 = vpop.f32.mrf.mxu0 }
  0xd6   : > { %v1540_v37 = vadd.f32 %v1207_v36, %v1537_v35 }
  0xd7   : > { %v370_v38 = vpop.f32.mrf.mxu0 }
  0xd8   : > { %v1543_v39 = vmul.f32 0.70710677, %v1540_v37  ;;  %v1546_v40 = vadd.f32 %v1537_v35, %v370_v38  ;;  %v1604_v34 = vmul.f32 0.5, %v1540_v37 }
  0xd9   : > { %v1210_v41 = vpop.f32.mrf.mxu0 }
  0xda   : > { %v466_v42 = vand.u32 2147483647, %v1543_v39  ;;  %v1550_v43 = vmul.f32 0.70710677, %v1546_v40  ;;  %v1553_v44 = vadd.f32 %v1210_v41, %v1537_v35  ;;  %vm802_vm1 = vcmp.ge.f32.partialorder %v1543_v39, 0.0 }
  0xdb   : > { %v380_v45 = vpop.f32.mrf.mxu0 }
  0xdc   : > { %v482_v46 = vmul.f32 0.3275911, %v466_v42  ;;  %v465_v47 = vand.u32 2147483647, %v1550_v43  ;;  %v1557_v48 = vmul.f32 0.70710677, %v1553_v44  ;;  %v1560_v49 = vadd.f32 %v1537_v35, %v380_v45 }
  0xdd   : > { %v1213_v50 = vpop.f32.mrf.mxu0  ;;  %v690_v52 = vsub.f32 0.0, %v466_v42  ;;  %vm801_vm2 = vcmp.ge.f32.partialorder %v1550_v43, 0.0 }
  0xde   : > { %v498_v51 = vadd.f32 1.0, %v482_v46  ;;  %v468_v53 = vand.u32 2147483647, %v1557_v48  ;;  %v1564_v54 = vmul.f32 0.70710677, %v1560_v49  ;;  %v689_v56 = vsub.f32 0.0, %v465_v47 }
  0xdf   : > { %v390_v55 = vpop.f32.mrf.mxu0  ;;  %v706_v58 = vmul.f32 %v690_v52, %v466_v42  ;;  %v1567_v59 = vadd.f32 %v1213_v50, %v1537_v35  ;;  %v481_v61 = vmul.f32 0.3275911, %v465_v47  ;;  %v1608_v42 = vmul.f32 0.5, %v1546_v40 }
  0xe0   : > { %1325 = vrcp.f32 %v498_v51  ;;  %v1570_v60 = vadd.f32 %v1537_v35, %v390_v55  ;;  %v692_v62 = vsub.f32 0.0, %v468_v53  ;;  %v467_v63 = vand.u32 2147483647, %v1564_v54 }
  0xe1   : > { %v1216_v57 = vpop.f32.mrf.mxu0  ;;  %v1574_v1 = vmul.f32 0.70710677, %v1567_v59  ;;  %v705_v2 = vmul.f32 %v689_v56, %v465_v47  ;;  %v723_v4 = vmul.f32 1.442695, %v706_v58  ;;  %v484_v5 = vmul.f32 0.3275911, %v468_v53 }
  0xe2   : > { %v1577_v3 = vmul.f32 0.70710677, %v1570_v60  ;;  %v497_v8 = vadd.f32 1.0, %v481_v61  ;;  %v708_v9 = vmul.f32 %v692_v62, %v468_v53  ;;  %v691_v10 = vsub.f32 0.0, %v467_v63 }
  0xe3   : > { %v400_v0 = vpop.f32.mrf.mxu0  ;;  %v470_v6 = vand.u32 2147483647, %v1574_v1  ;;  %v1581_v11 = vadd.f32 %v1216_v57, %v1537_v35  ;;  %v483_v12 = vmul.f32 0.3275911, %v467_v63  ;;  %v721_v13 = vmul.f32 1.442695, %v705_v2 }
  0xe4   : > { %v469_v14 = vand.u32 2147483647, %v1577_v3  ;;  %1327 = vpow2.f32 %v723_v4  ;;  %v500_v16 = vadd.f32 1.0, %v484_v5  ;;  %v1588_v18 = vadd.f32 %v1537_v35, %v400_v0 }
  0xe5   : > { %v1219_v7 = vpop.f32.mrf.mxu0  ;;  %v1585_v15 = vmul.f32 0.70710677, %v1581_v11  ;;  %v694_v17 = vsub.f32 0.0, %v470_v6  ;;  %1329 = vrcp.f32 %v497_v8  ;;  %v727_v20 = vmul.f32 1.442695, %v708_v9 }
  0xe6   : > { %v707_v21 = vmul.f32 %v691_v10, %v467_v63  ;;  %v499_v22 = vadd.f32 1.0, %v483_v12  ;;  %v486_v23 = vmul.f32 0.3275911, %v470_v6  ;;  %v1591_v24 = vmul.f32 0.70710677, %v1588_v18 }
  0xe7   : > { %v410_v19 = vpop.f32.mrf.mxu0  ;;  %v1594_v25 = vadd.f32 %v1219_v7, %v1537_v35  ;;  %1331 = vpow2.f32 %v721_v13  ;;  %v485_v27 = vmul.f32 0.3275911, %v469_v14  ;;  %v693_v28 = vsub.f32 0.0, %v469_v14 }
  0xe8   : > { %v472_v29 = vand.u32 2147483647, %v1585_v15  ;;  %1333 = vrcp.f32 %v500_v16  ;;  %v710_v31 = vmul.f32 %v694_v17, %v470_v6  ;;  %v725_v36 = vmul.f32 1.442695, %v707_v21 }
  0xe9   : > { %v1601_v32 = vmul.f32 0.70710677, %v1594_v25  ;;  %v1222_v33 = vpop.f32.mrf.mxu0  ;;  %1335 = vpow2.f32 %v727_v20  ;;  %v471_v38 = vand.u32 2147483647, %v1591_v24  ;;  %v502_v45 = vadd.f32 1.0, %v486_v23 }
  0xea   : > { %1337 = vrcp.f32 %v499_v22  ;;  %v501_v46 = vadd.f32 1.0, %v485_v27  ;;  %v709_v47 = vmul.f32 %v693_v28, %v469_v14  ;;  %v696_v50 = vsub.f32 0.0, %v472_v29 }
  0xeb   : > { %v1611_v51 = vadd.f32 %v1537_v35, %v410_v19  ;;  %v731_v37 = vmul.f32 1.442695, %v710_v31  ;;  %v474_v53 = vand.u32 2147483647, %v1601_v32  ;;  %v1616_v55 = vadd.f32 %v1222_v33, %v1537_v35  ;;  %v420_v56 = vpop.f32.mrf.mxu0 }
  0xec   : > { %1339 = vpow2.f32 %v725_v36  ;;  %v488_v40 = vmul.f32 0.3275911, %v472_v29  ;;  %v695_v57 = vsub.f32 0.0, %v471_v38  ;;  %v1622_v62 = vmul.f32 0.5, %v1553_v44 }
  0xed   : > { %v1596_v26 = vpop.eup %1325  ;;  %1954 = vst [vmem:[#allocation3_spill] sm:$0xff] %v1616_v55  ;;  %v1619_v58 = vmul.f32 0.70710677, %v1611_v51  ;;  %v1625_v63 = vmul.f32 0.5, %v1560_v49  ;;  %1341 = vrcp.f32 %v502_v45  ;;  %v729_v0 = vmul.f32 1.442695, %v709_v47  ;;  %v1225_v9 = vpop.f32.mrf.mxu0 }
  0xee   : > { %v546_v30 = vmul.f32 1.0614054, %v1596_v26  ;;  %1343 = vrcp.f32 %v501_v46  ;;  %v712_v2 = vmul.f32 %v696_v50, %v472_v29  ;;  %v487_v6 = vmul.f32 0.3275911, %v471_v38 }
  0xef   : > { %v473_v4 = vand.u32 2147483647, %v1619_v58  ;;  %v698_v7 = vsub.f32 0.0, %v474_v53  ;;  %v1630_v8 = vmul.f32 0.70710677, %v1616_v55  ;;  %1345 = vpow2.f32 %v731_v37 }
  0xf0   : > { %v562_v41 = vadd.f32 -1.4531521, %v546_v30  ;;  %v1633_v44 = vmul.f32 0.5, %v1567_v59  ;;  %v504_v49 = vadd.f32 1.0, %v488_v40  ;;  %v711_v12 = vmul.f32 %v695_v57, %v471_v38  ;;  %v430_v30 = vpop.f32.mrf.mxu0 }
  0xf1   : > { %v1328_v10 = vpop.eup %1327  ;;  %v697_v16 = vsub.f32 0.0, %v473_v4  ;;  %v476_v17 = vand.u32 2147483647, %v1630_v8  ;;  %v1639_v19 = vadd.f32 %v1537_v35, %v420_v56  ;;  %1347 = vpow2.f32 %v729_v0 }
  0xf2   : > { %v578_v52 = vmul.f32 %v1596_v26, %v562_v41  ;;  %v1635_v13 = vpop.eup %1329  ;;  %v735_v20 = vmul.f32 1.442695, %v712_v2  ;;  %v490_v21 = vmul.f32 0.3275911, %v474_v53  ;;  %v1642_v22 = vadd.f32 %v1225_v9, %v1537_v35  ;;  %v1228_v0 = vpop.f32.mrf.mxu0 }
  0xf3   : > { %1955 = vst [vmem:[#allocation4_spill] sm:$0xff] %v1639_v19  ;;  %v503_v27 = vadd.f32 1.0, %v487_v6  ;;  %v714_v28 = vmul.f32 %v698_v7, %v474_v53  ;;  %v1648_v29 = vmul.f32 0.70710677, %v1639_v19  ;;  %1349 = vrcp.f32 %v504_v49 }
  0xf4   : > { %v594_v61 = vadd.f32 1.4214138, %v578_v52  ;;  %1956 = vst [vmem:[#allocation5_spill] sm:$0xff] %v1642_v22  ;;  %v1644_v23 = vpop.eup %1331  ;;  %v733_v33 = vmul.f32 1.442695, %v711_v12  ;;  %v713_v46 = vmul.f32 %v697_v16, %v473_v4  ;;  %v700_v47 = vsub.f32 0.0, %v476_v17 }
  0xf5   : > { %1957 = vst [vmem:[#allocation6_spill] sm:$0xff] %v1648_v29  ;;  %v1650_v31 = vpop.eup %1333  ;;  %v489_v36 = vmul.f32 0.3275911, %v473_v4  ;;  %v1653_v38 = vmul.f32 0.70710677, %v1642_v22  ;;  %v1662_v37 = vmul.f32 0.5, %v1570_v60  ;;  %1351 = vpow2.f32 %v735_v20 }
  0xf6   : > { %v610_v5 = vmul.f32 %v1596_v26, %v594_v61  ;;  %v1655_v41 = vpop.eup %1335  ;;  %v475_v50 = vand.u32 2147483647, %v1648_v29  ;;  %v506_v53 = vadd.f32 1.0, %v490_v21  ;;  %v492_v56 = vmul.f32 0.3275911, %v476_v17 }
  0xf7   : > { %1958 = vst [vmem:[#allocation7_spill] sm:$0xff] %v1653_v38  ;;  %v1658_v52 = vpop.eup %1337  ;;  %1353 = vrcp.f32 %v503_v27  ;;  %v739_v57 = vmul.f32 1.442695, %v714_v28  ;;  %v478_v61 = vand.u32 2147483647, %v1653_v38  ;;  %v1667_v2 = vmul.f32 0.5, %v1581_v11 }
  0xf8   : > { %v626_v14 = vadd.f32 -0.28449672, %v610_v5  ;;  %1355 = vpow2.f32 %v733_v33  ;;  %v505_v4 = vadd.f32 1.0, %v489_v36  ;;  %v699_v5 = vsub.f32 0.0, %v475_v50 }
  0xf9   : > { %v1669_v6 = vpop.eup %1339  ;;  %v737_v7 = vmul.f32 1.442695, %v713_v46  ;;  %v716_v9 = vmul.f32 %v700_v47, %v476_v17  ;;  %v1672_v49 = vadd.f32 %v1537_v35, %v430_v30  ;;  %1357 = vrcp.f32 %v506_v53  ;;  %v440_v17 = vpop.f32.mrf.mxu0 }
  0xfa   : > { %v642_v59 = vmul.f32 %v1596_v26, %v626_v14  ;;  %v508_v12 = vadd.f32 1.0, %v492_v56  ;;  %v491_v14 = vmul.f32 0.3275911, %v475_v50  ;;  %v1677_v16 = vadd.f32 %v1228_v0, %v1537_v35 }
  0xfb   : > { %1959 = vst [vmem:[#allocation8_spill] sm:$0xff] %v1672_v49  ;;  %1359 = vpow2.f32 %v739_v57  ;;  %v494_v21 = vmul.f32 0.3275911, %v478_v61  ;;  %v702_v27 = vsub.f32 0.0, %v478_v61  ;;  %v743_v36 = vmul.f32 1.442695, %v716_v9 }
  0xfc   : > { %v658_v45 = vadd.f32 0.2548296, %v642_v59  ;;  %1960 = vst [vmem:[#allocation9_spill] sm:$0xff] %v1677_v16  ;;  %1361 = vrcp.f32 %v505_v4  ;;  %v715_v59 = vmul.f32 %v699_v5, %v475_v50  ;;  %v1685_v28 = vmul.f32 0.70710677, %v1677_v16 }
  0xfd   : > { %1363 = vpow2.f32 %v737_v7  ;;  %v507_v46 = vadd.f32 1.0, %v491_v14  ;;  %v1692_v53 = vadd.f32 %v1537_v35, %v440_v17  ;;  %v718_v5 = vmul.f32 %v702_v27, %v478_v61 }
  0xfe   : > { %v674_v40 = vmul.f32 %v1596_v26, %v658_v45  ;;  %v1674_v26 = vpop.eup %1341  ;;  %1962 = vst [vmem:[#allocation11_spill] sm:$0xff] %v1685_v28  ;;  %1365 = vrcp.f32 %v508_v12  ;;  %v480_v47 = vand.u32 2147483647, %v1685_v28  ;;  %v741_v4 = vmul.f32 1.442695, %v715_v59 }
  0xff   : > { %v1679_v11 = vpop.eup %1343  ;;  %1963 = vst [vmem:[#allocation12_spill] sm:$0xff] %v1692_v53  ;;  %v1699_v7 = vmul.f32 0.70710677, %v1692_v53  ;;  %v1704_v35 = vmul.f32 0.5, %v1594_v25  ;;  %1367 = vpow2.f32 %v743_v36  ;;  %v545_v14 = vmul.f32 1.0614054, %v1635_v13 }
 0x100   : > { %v754_v60 = vmul.f32 %v1328_v10, %v674_v40  ;;  %v1682_v10 = vmul.f32 0.70710677, %v1672_v49  ;;  %v1687_v30 = vpop.eup %1345  ;;  %v510_v40 = vadd.f32 1.0, %v494_v21  ;;  %1369 = vrcp.f32 %v507_v46 }
 0x101   : > { %v1694_v56 = vpop.eup %1347  ;;  %1964 = vst [vmem:[#allocation13_spill] sm:$0xff] %v1699_v7  ;;  %1965 = vst [vmem:[#allocation14_spill] sm:$0xff] %v1704_v35  ;;  %v479_v21 = vand.u32 2147483647, %v1699_v7  ;;  %v1711_v61 = vmul.f32 0.5, %v1611_v51  ;;  %vm804_vm3 = vcmp.ge.f32.partialorder %v1557_v48, 0.0 }
 0x102   : > { %v770_v20 = vsub.f32 1.0, %v754_v60  ;;  %1961 = vst [vmem:[#allocation10_spill] sm:$0xff] %v1682_v10  ;;  %v477_v45 = vand.u32 2147483647, %v1682_v10  ;;  %v496_v60 = vmul.f32 0.3275911, %v480_v47  ;;  %v1701_v9 = vpop.eup %1349  ;;  %1371 = vrcp.f32 %v510_v40 }
 0x103   : > { %v1708_v17 = vpop.eup %1351  ;;  %v561_v27 = vadd.f32 -1.4531521, %v545_v14  ;;  %1373 = vpow2.f32 %v741_v4  ;;  %v1715_v25 = vmul.f32 1.442695, %v718_v5  ;;  %v547_v51 = vmul.f32 1.0614054, %v1658_v52 }
 0x104   : > { %v818_v33 = vsub.f32 0.0, %v770_v20  ;;  %v493_v57 = vmul.f32 0.3275911, %v477_v45  ;;  %v701_v0 = vsub.f32 0.0, %v477_v45  ;;  %v512_v36 = vadd.f32 1.0, %v496_v60 }
 0x105   : > { %v548_v40 = vmul.f32 1.0614054, %v1650_v31  ;;  %v495_v16 = vmul.f32 0.3275911, %v479_v21  ;;  %v549_v4 = vmul.f32 1.0614054, %v1679_v11 }
 0x106   : > { %v834_v50 = vsel %vm802_vm1, %v770_v20, %v818_v33  ;;  %v717_v39 = vmul.f32 %v701_v0, %v477_v45  ;;  %v704_v20 = vsub.f32 0.0, %v480_v47  ;;  %v509_v59 = vadd.f32 1.0, %v493_v57  ;;  %v1713_v33 = vpop.eup %1353 }
 0x107   : > { %v850_v12 = vadd.f32 1.0, %v834_v50  ;;  %v703_v50 = vsub.f32 0.0, %v479_v21  ;;  %v1717_v46 = vpop.eup %1355  ;;  %v577_v0 = vmul.f32 %v1635_v13, %v561_v27  ;;  %v563_v53 = vadd.f32 -1.4531521, %v547_v51 }
 0x108   : > { %v745_v57 = vmul.f32 1.442695, %v717_v39  ;;  %v720_v14 = vmul.f32 %v704_v20, %v480_v47  ;;  %v1726_v5 = vpop.eup %1357  ;;  %1375 = vrcp.f32 %v509_v59  ;;  %v564_v28 = vadd.f32 -1.4531521, %v548_v40 }
 0x109   : > { %v1720_v45 = vmul.f32 %v850_v12, %v1604_v34  ;;  %v593_v60 = vadd.f32 1.4214138, %v577_v0  ;;  %v1728_v7 = vpop.eup %1359  ;;  %1377 = vrcp.f32 %v512_v36  ;;  %v719_v34 = vmul.f32 %v703_v50, %v479_v21 }
 0x10a   : > { %v565_v12 = vadd.f32 -1.4531521, %v549_v4  ;;  %v550_v27 = vmul.f32 1.0614054, %v1674_v26  ;;  %v1731_v22 = vpop.eup %1361  ;;  %v579_v39 = vmul.f32 %v1658_v52, %v563_v53  ;;  %v580_v20 = vmul.f32 %v1650_v31, %v564_v28 }
 0x10b   : > { %v609_v47 = vmul.f32 %v1635_v13, %v593_v60  ;;  %v551_v59 = vmul.f32 1.0614054, %v1713_v33  ;;  %v1737_v0 = vpop.eup %1363  ;;  %v1739_v51 = vmul.f32 1.442695, %v720_v14  ;;  %v511_v40 = vadd.f32 1.0, %v495_v16 }
 0x10c   : > { %v581_v21 = vmul.f32 %v1679_v11, %v565_v12  ;;  %v566_v36 = vadd.f32 -1.4531521, %v550_v27  ;;  %v1742_v50 = vpop.eup %1365  ;;  %1379 = vpow2.f32 %v745_v57  ;;  %v595_v38 = vadd.f32 1.4214138, %v579_v39 }
 0x10d   : > { %v625_v4 = vadd.f32 -0.28449672, %v609_v47  ;;  %v596_v60 = vadd.f32 1.4214138, %v580_v20  ;;  %v1744_v55 = vmul.f32 1.442695, %v719_v34  ;;  %v1751_v27 = vpop.eup %1367  ;;  %1381 = vrcp.f32 %v511_v40 }
 0x10e   : > { %v597_v53 = vadd.f32 1.4214138, %v581_v21  ;;  %v582_v28 = vmul.f32 %v1674_v26, %v566_v36  ;;  %v567_v35 = vadd.f32 -1.4531521, %v551_v59  ;;  %v611_v14 = vmul.f32 %v1658_v52, %v595_v38  ;;  %1966 = vst [vmem:[#allocation15_spill] sm:$0xff] %v1751_v27  ;;  %v1756_v20 = vpop.eup %1369 }
 0x10f   : > { %v641_v10 = vmul.f32 %v1635_v13, %v625_v4  ;;  %v612_v16 = vmul.f32 %v1650_v31, %v596_v60  ;;  %v552_v12 = vmul.f32 1.0614054, %v1701_v9  ;;  %v553_v39 = vmul.f32 1.0614054, %v1731_v22  ;;  %v1758_v38 = vpop.eup %1371 }
 0x110   : > { %v613_v57 = vmul.f32 %v1679_v11, %v597_v53  ;;  %v598_v47 = vadd.f32 1.4214138, %v582_v28  ;;  %v583_v34 = vmul.f32 %v1713_v33, %v567_v35  ;;  %v627_v21 = vadd.f32 -0.28449672, %v611_v14  ;;  %v1762_v28 = vpop.eup %1373 }
 0x111   : > { %v657_v59 = vadd.f32 0.2548296, %v641_v10  ;;  %v628_v36 = vadd.f32 -0.28449672, %v612_v16  ;;  %v568_v53 = vadd.f32 -1.4531521, %v552_v12  ;;  %1383 = vpow2.f32 %v1715_v25 }
 0x112   : > { %v629_v4 = vadd.f32 -0.28449672, %v613_v57  ;;  %v614_v60 = vmul.f32 %v1674_v26, %v598_v47  ;;  %v599_v49 = vadd.f32 1.4214138, %v583_v34  ;;  %1967 = vst [vmem:[#allocation16_spill] sm:$0xff] %v1762_v28  ;;  %v643_v27 = vmul.f32 %v1658_v52, %v627_v21 }
 0x113   : > { %v673_v35 = vmul.f32 %v1635_v13, %v657_v59  ;;  %v644_v40 = vmul.f32 %v1650_v31, %v628_v36  ;;  %v569_v10 = vadd.f32 -1.4531521, %v553_v39  ;;  %v584_v57 = vmul.f32 %v1701_v9, %v568_v53 }
 0x114   : > { %v645_v14 = vmul.f32 %v1679_v11, %v629_v4  ;;  %v630_v16 = vadd.f32 -0.28449672, %v614_v60  ;;  %v615_v29 = vmul.f32 %v1713_v33, %v599_v49  ;;  %v659_v34 = vadd.f32 0.2548296, %v643_v27 }
 0x115   : > { %v753_v47 = vmul.f32 %v1644_v23, %v673_v35  ;;  %v660_v12 = vadd.f32 0.2548296, %v644_v40  ;;  %v585_v28 = vmul.f32 %v1731_v22, %v569_v10  ;;  %v1772_v19 = vpop.eup %1375  ;;  %vm803_vm4 = vcmp.ge.f32.partialorder %v1564_v54, 0.0 }
 0x116   : > { %v661_v13 = vadd.f32 0.2548296, %v645_v14  ;;  %v646_v39 = vmul.f32 %v1674_v26, %v630_v16  ;;  %v631_v59 = vadd.f32 -0.28449672, %v615_v29  ;;  %v600_v21 = vadd.f32 1.4214138, %v584_v57  ;;  %v1777_v49 = vpop.eup %1377 }
 0x117   : > { %vm805_vm5 = vcmp.ge.f32.partialorder %v1577_v3, 0.0  ;;  %v769_v23 = vsub.f32 1.0, %v753_v47  ;;  %v675_v27 = vmul.f32 %v1658_v52, %v659_v34  ;;  %v676_v36 = vmul.f32 %v1650_v31, %v660_v12 }
 0x118   : > { %v601_v4 = vadd.f32 1.4214138, %v585_v28  ;;  %v677_v60 = vmul.f32 %v1679_v11, %v661_v13  ;;  %v662_v53 = vadd.f32 0.2548296, %v646_v39  ;;  %v647_v35 = vmul.f32 %v1713_v33, %v631_v59 }
 0x119   : > { %v616_v40 = vmul.f32 %v1701_v9, %v600_v21  ;;  %vm806_vm6 = vcmp.ge.f32.partialorder %v1574_v1, 0.0  ;;  %v817_v29 = vsub.f32 0.0, %v769_v23  ;;  %v755_v10 = vmul.f32 %v1669_v6, %v675_v27  ;;  %v1789_v52 = vpop.eup %1379 }
 0x11a   : > { %v756_v14 = vmul.f32 %v1655_v41, %v676_v36  ;;  %v617_v16 = vmul.f32 %v1731_v22, %v601_v4  ;;  %v757_v31 = vmul.f32 %v1694_v56, %v677_v60  ;;  %v678_v11 = vmul.f32 %v1674_v26, %v662_v53  ;;  %v1800_v36 = vpop.eup %1381 }
 0x11b   : > { %v663_v28 = vadd.f32 0.2548296, %v647_v35  ;;  %v632_v57 = vadd.f32 -0.28449672, %v616_v40  ;;  %v833_v47 = vsel %vm801_vm2, %v769_v23, %v817_v29  ;;  %v771_v34 = vsub.f32 1.0, %v755_v10 }
 0x11c   : > { %v772_v12 = vsub.f32 1.0, %v756_v14  ;;  %v633_v13 = vadd.f32 -0.28449672, %v617_v16  ;;  %v849_v39 = vadd.f32 1.0, %v833_v47  ;;  %v773_v6 = vsub.f32 1.0, %v757_v31 }
 0x11d   : > { %v758_v41 = vmul.f32 %v1687_v30, %v678_v11  ;;  %v679_v59 = vmul.f32 %v1713_v33, %v663_v28  ;;  %vm807_vm7 = vcmp.ge.f32.partialorder %v1591_v24, 0.0  ;;  %v819_v21 = vsub.f32 0.0, %v771_v34 }
 0x11e   : > { %v820_v56 = vsub.f32 0.0, %v772_v12  ;;  %v648_v26 = vmul.f32 %v1701_v9, %v632_v57  ;;  %v649_v27 = vmul.f32 %v1731_v22, %v633_v13  ;;  %v865_v43 = vmul.f32 %v849_v39, %v1608_v42 }
 0x11f   : > { %v821_v23 = vsub.f32 0.0, %v773_v6  ;;  %v774_v4 = vsub.f32 1.0, %v758_v41  ;;  %v759_v60 = vmul.f32 %v1717_v46, %v679_v59  ;;  %v835_v30 = vsel %vm803_vm4, %v771_v34, %v819_v21 }
 0x120   : > { %v836_v33 = vsel %vm804_vm3, %v772_v12, %v820_v56  ;;  %v664_v53 = vadd.f32 0.2548296, %v648_v26  ;;  %v665_v35 = vadd.f32 0.2548296, %v649_v27  ;;  %vm808_vm8 = vcmp.ge.f32.partialorder %v1585_v15, 0.0  ;;  %1261 = vmatprep.mubr.f32.mxu0 %v865_v43 }
 0x121   : > { %v851_v40 = vadd.f32 1.0, %v835_v30  ;;  %v852_v29 = vadd.f32 1.0, %v836_v33  ;;  %v837_v42 = vsel %vm805_vm5, %v773_v6, %v821_v23  ;;  %v822_v10 = vsub.f32 0.0, %v774_v4  ;;  %1262 = vmatmul.mubr.f32.vlgmr.msra.gmra.mxu0 %v1720_v45 }
 0x122   : > { %vm809_vm9 = vcmp.ge.f32.partialorder %v1619_v58, 0.0  ;;  %v853_v54 = vadd.f32 1.0, %v837_v42  ;;  %v775_v46 = vsub.f32 1.0, %v759_v60  ;;  %v680_v48 = vmul.f32 %v1701_v9, %v664_v53 }
 0x123   : > { %v681_v14 = vmul.f32 %v1731_v22, %v665_v35  ;;  %v867_v16 = vmul.f32 %v851_v40, %v1625_v63  ;;  %v868_v31 = vmul.f32 %v852_v29, %v1622_v62  ;;  %v838_v11 = vsel %vm806_vm6, %v774_v4, %v822_v10 }
 0x124   : > { %v554_v3 = vmul.f32 1.0614054, %v1726_v5  ;;  %v869_v28 = vmul.f32 %v853_v54, %v1662_v37  ;;  %v854_v57 = vadd.f32 1.0, %v838_v11  ;;  %v823_v47 = vsub.f32 0.0, %v775_v46 }
 0x125   : > { %v760_v45 = vmul.f32 %v1708_v17, %v680_v48  ;;  %1264 = vmatprep.mubr.f32.mxu0 %v867_v16  ;;  %v761_v9 = vmul.f32 %v1737_v0, %v681_v14  ;;  %v555_v22 = vmul.f32 1.0614054, %v1756_v20  ;;  %v556_v63 = vmul.f32 1.0614054, %v1742_v50 }
 0x126   : > { %v570_v34 = vadd.f32 -1.4531521, %v554_v3  ;;  %1265 = vmatmul.mubr.f32.gmra.mxu0 %v868_v31  ;;  %v791_v1 = vmul.f32 0.5, %v1588_v18  ;;  %v839_v62 = vsel %vm807_vm7, %v775_v46, %v823_v47  ;;  %v557_v37 = vmul.f32 1.0614054, %v1772_v19 }
 0x127   : > { %v776_v12 = vsub.f32 1.0, %v760_v45  ;;  %1267 = vmatprep.mubr.f32.mxu0 %v869_v28  ;;  %v855_v13 = vadd.f32 1.0, %v839_v62  ;;  %v777_v17 = vsub.f32 1.0, %v761_v9  ;;  %v571_v0 = vadd.f32 -1.4531521, %v555_v22 }
 0x128   : > { %v586_v39 = vmul.f32 %v1726_v5, %v570_v34  ;;  %v870_v6 = vmul.f32 %v854_v57, %v1633_v44  ;;  %v572_v59 = vadd.f32 -1.4531521, %v556_v63  ;;  %v573_v21 = vadd.f32 -1.4531521, %v557_v37 }
 0x129   : > { %v824_v41 = vsub.f32 0.0, %v776_v12  ;;  %v871_v56 = vmul.f32 %v855_v13, %v791_v1  ;;  %v825_v26 = vsub.f32 0.0, %v777_v17  ;;  %v587_v24 = vmul.f32 %v1756_v20, %v571_v0 }
 0x12a   : > { %v602_v18 = vadd.f32 1.4214138, %v586_v39  ;;  %1268 = vmatmul.mubr.f32.gmra.mxu0 %v870_v6  ;;  %v588_v43 = vmul.f32 %v1742_v50, %v572_v59  ;;  %v589_v23 = vmul.f32 %v1772_v19, %v573_v21  ;;  %v558_v4 = vmul.f32 1.0614054, %v1758_v38  ;;  %v1968_v6 = vld [vmem:[#allocation4_spill] sm:$0xff] }
 0x12b   : > { %v840_v27 = vsel %vm808_vm8, %v776_v12, %v824_v41  ;;  %1270 = vmatprep.mubr.f32.mxu1 %v871_v56  ;;  %v841_v60 = vsel %vm809_vm9, %v777_v17, %v825_v26  ;;  %v603_v33 = vadd.f32 1.4214138, %v587_v24  ;;  %v559_v48 = vmul.f32 1.0614054, %v1800_v36  ;;  %v1969_v56 = vld [vmem:[#allocation16_spill] sm:$0xff] }
 0x12c   : > { %v856_v44 = vadd.f32 1.0, %v840_v27  ;;  %v618_v30 = vmul.f32 %v1726_v5, %v602_v18  ;;  %v857_v53 = vadd.f32 1.0, %v841_v60  ;;  %v604_v35 = vadd.f32 1.4214138, %v588_v43 }
 0x12d   : > { %v605_v15 = vadd.f32 1.4214138, %v589_v23  ;;  %v619_v42 = vmul.f32 %v1756_v20, %v603_v33  ;;  %v574_v10 = vadd.f32 -1.4531521, %v558_v4  ;;  %v575_v3 = vadd.f32 -1.4531521, %v559_v48  ;;  %v1384_v4 = vpop.eup %1383 }
 0x12e   : > { %v872_v40 = vmul.f32 %v856_v44, %v1667_v2  ;;  %v634_v29 = vadd.f32 -0.28449672, %v618_v30  ;;  %v873_v54 = vmul.f32 %v857_v53, %v1711_v61  ;;  %v620_v46 = vmul.f32 %v1742_v50, %v604_v35  ;;  %v1972_v30 = vld [vmem:[#allocation8_spill] sm:$0xff]  ;;  %v1973_v48 = vld [vmem:[#allocation10_spill] sm:$0xff] }
 0x12f   : > { %v621_v58 = vmul.f32 %v1772_v19, %v605_v15  ;;  %v635_v14 = vadd.f32 -0.28449672, %v619_v42  ;;  %v590_v16 = vmul.f32 %v1758_v38, %v574_v10  ;;  %v560_v2 = vmul.f32 1.0614054, %v1777_v49 }
 0x130   : > { %1271 = vmatmul.mubr.f32.vlgmr.msra.gmra.mxu1 %v872_v40  ;;  %v650_v25 = vmul.f32 %v1726_v5, %v634_v29  ;;  %v636_v31 = vadd.f32 -0.28449672, %v620_v46  ;;  %vm810_vm10 = vcmp.ge.f32.partialorder %v1601_v32, 0.0  ;;  %1385 = vpow2.f32 %v1744_v55 }
 0x131   : > { %1273 = vmatprep.mubr.f32.mxu1 %v873_v54  ;;  %v637_v11 = vadd.f32 -0.28449672, %v621_v58  ;;  %v651_v61 = vmul.f32 %v1756_v20, %v635_v14  ;;  %v606_v57 = vadd.f32 1.4214138, %v590_v16  ;;  %v576_v47 = vadd.f32 -1.4531521, %v560_v2 }
 0x132   : > { %v666_v28 = vadd.f32 0.2548296, %v650_v25  ;;  %v652_v45 = vmul.f32 %v1742_v50, %v636_v31  ;;  %v591_v34 = vmul.f32 %v1800_v36, %v575_v3  ;;  %1387 = vpow2.f32 %v1739_v51  ;;  %v1974_v2 = vld [vmem:[#allocation14_spill] sm:$0xff] }
 0x133   : > { %v653_v9 = vmul.f32 %v1772_v19, %v637_v11  ;;  %v667_v63 = vadd.f32 0.2548296, %v651_v61  ;;  %v622_v1 = vmul.f32 %v1758_v38, %v606_v57  ;;  %v592_v62 = vmul.f32 %v1777_v49, %v576_v47 }
 0x134   : > { %v682_v22 = vmul.f32 %v1726_v5, %v666_v28  ;;  %v668_v12 = vadd.f32 0.2548296, %v652_v45  ;;  %v607_v13 = vadd.f32 1.4214138, %v591_v34  ;;  %vm812_vm11 = vcmp.ge.f32.partialorder %v1630_v8, 0.0  ;;  %v1975_v45 = vld [vmem:[#allocation3_spill] sm:$0xff] }
 0x135   : > { %v669_v37 = vadd.f32 0.2548296, %v653_v9  ;;  %v683_v17 = vmul.f32 %v1756_v20, %v667_v63  ;;  %v638_v39 = vadd.f32 -0.28449672, %v622_v1  ;;  %v608_v0 = vadd.f32 1.4214138, %v592_v62 }
 0x136   : > { %v762_v55 = vmul.f32 %v1728_v7, %v682_v22  ;;  %v795_v5 = vmul.f32 0.5, %v1968_v6  ;;  %v684_v41 = vmul.f32 %v1742_v50, %v668_v12  ;;  %v623_v21 = vmul.f32 %v1800_v36, %v607_v13  ;;  %v1970_v7 = vld [vmem:[#allocation6_spill] sm:$0xff]  ;;  %v1971_v20 = vld [vmem:[#allocation15_spill] sm:$0xff] }
 0x137   : > { %v685_v59 = vmul.f32 %v1772_v19, %v669_v37  ;;  %v763_v26 = vmul.f32 %v1969_v56, %v683_v17  ;;  %v654_v18 = vmul.f32 %v1758_v38, %v638_v39  ;;  %v624_v24 = vmul.f32 %v1777_v49, %v608_v0  ;;  %v1976_v37 = vld [vmem:[#allocation7_spill] sm:$0xff]  ;;  %v1977_v39 = vld [vmem:[#allocation5_spill] sm:$0xff]  ;;  %v1980_v56 = vld [vmem:[#allocation12_spill] sm:$0xff] }
 0x138   : > { %v778_v51 = vsub.f32 1.0, %v762_v55  ;;  %vm811_vm12 = vcmp.ge.f32.partialorder %v1970_v7, 0.0  ;;  %v764_v27 = vmul.f32 %v1971_v20, %v684_v41  ;;  %v639_v23 = vadd.f32 -0.28449672, %v623_v21  ;;  %v1978_v41 = vld [vmem:[#allocation13_spill] sm:$0xff]  ;;  %v1979_v21 = vld [vmem:[#allocation11_spill] sm:$0xff] }
 0x139   : > { %v765_v43 = vmul.f32 %v1789_v52, %v685_v59  ;;  %v779_v44 = vsub.f32 1.0, %v763_v26  ;;  %v670_v19 = vadd.f32 0.2548296, %v654_v18  ;;  %v640_v60 = vadd.f32 -0.28449672, %v624_v24  ;;  %v1981_v7 = vld [vmem:[#allocation9_spill] sm:$0xff] }
 0x13a   : > { %v826_v50 = vsub.f32 0.0, %v778_v51  ;;  %v797_v33 = vmul.f32 0.5, %v1972_v30  ;;  %v780_v53 = vsub.f32 1.0, %v764_v27  ;;  %v655_v15 = vmul.f32 %v1800_v36, %v639_v23 }
 0x13b   : > { %v781_v35 = vsub.f32 1.0, %v765_v43  ;;  %v827_v29 = vsub.f32 0.0, %v779_v44  ;;  %v686_v42 = vmul.f32 %v1758_v38, %v670_v19  ;;  %v656_v52 = vmul.f32 %v1777_v49, %v640_v60 }
 0x13c   : > { %v842_v40 = vsel %vm810_vm10, %v778_v51, %v826_v50  ;;  %v828_v54 = vsub.f32 0.0, %v780_v53  ;;  %v671_v58 = vadd.f32 0.2548296, %v655_v15  ;;  %vm813_vm13 = vcmp.ge.f32.partialorder %v1973_v48, 0.0 }
 0x13d   : > { %v858_v10 = vadd.f32 1.0, %v842_v40  ;;  %v829_v46 = vsub.f32 0.0, %v781_v35  ;;  %v843_v25 = vsel %vm811_vm12, %v779_v44, %v827_v29  ;;  %v766_v14 = vmul.f32 %v1384_v4, %v686_v42  ;;  %v1386_v3 = vpop.eup %1385  ;;  %v1148_v4 = vld [vmem:[#allocation2] ss:$0 sm:$0xff] }
 0x13e   : > { %v672_v16 = vadd.f32 0.2548296, %v656_v52  ;;  %v859_v32 = vadd.f32 1.0, %v843_v25  ;;  %v844_v11 = vsel %vm812_vm11, %v780_v53, %v828_v54  ;;  %v687_v47 = vmul.f32 %v1800_v36, %v671_v58 }
 0x13f   : > { %v874_v31 = vmul.f32 %v858_v10, %v1974_v2  ;;  %v845_v38 = vsel %vm813_vm13, %v781_v35, %v829_v46  ;;  %v860_v28 = vadd.f32 1.0, %v844_v11  ;;  %v782_v57 = vsub.f32 1.0, %v766_v14  ;;  %v1388_v63 = vpop.eup %1387 }
 0x140   : > { %v861_v61 = vadd.f32 1.0, %v845_v38  ;;  %v796_v9 = vmul.f32 0.5, %v1975_v45  ;;  %v875_v34 = vmul.f32 %v859_v32, %v795_v5  ;;  %v688_v22 = vmul.f32 %v1777_v49, %v672_v16 }
 0x141   : > { %1274 = vmatmul.mubr.f32.gmra.mxu1 %v874_v31  ;;  %v830_v62 = vsub.f32 0.0, %v782_v57  ;;  %v767_v12 = vmul.f32 %v1386_v3, %v687_v47  ;;  %vm814_vm14 = vcmp.ge.f32.partialorder %v1976_v37, 0.0  ;;  %v798_v0 = vmul.f32 0.5, %v1977_v39 }
 0x142   : > { %v877_v1 = vmul.f32 %v861_v61, %v797_v33  ;;  %1276 = vmatprep.mubr.f32.mxu1 %v875_v34  ;;  %v876_v8 = vmul.f32 %v860_v28, %v796_v9  ;;  %v768_v13 = vmul.f32 %v1388_v63, %v688_v22  ;;  %vm815_vm15 = vcmp.ge.f32.partialorder %v1978_v41, 0.0 }
 0x143   : > { %v846_v55 = vsel %vm814_vm14, %v782_v57, %v830_v62  ;;  %v783_v17 = vsub.f32 1.0, %v767_v12  ;;  %vm816_vm0 = vcmp.ge.f32.partialorder %v1979_v21, 0.0  ;;  %v799_v26 = vmul.f32 0.5, %v1980_v56 }
 0x144   : > { %v862_v36 = vadd.f32 1.0, %v846_v55  ;;  %v784_v6 = vsub.f32 1.0, %v768_v13  ;;  %v800_v20 = vmul.f32 0.5, %v1981_v7  ;;  %vm1049_vm1 = vcmask 7168  }
 0x145   : > { %1277 = vmatmul.mubr.f32.gmra.mxu1 %v876_v8  ;;  %v831_v5 = vsub.f32 0.0, %v783_v17 }
 0x146   : > { %1279 = vmatprep.mubr.f32.mxu1 %v877_v1  ;;  %v878_v49 = vmul.f32 %v862_v36, %v798_v0  ;;  %v832_v59 = vsub.f32 0.0, %v784_v6 }
 0x147   : > { %v847_v51 = vsel %vm815_vm15, %v783_v17, %v831_v5 }
 0x148   : > { %v863_v18 = vadd.f32 1.0, %v847_v51  ;;  %v848_v24 = vsel %vm816_vm0, %v784_v6, %v832_v59 }
 0x149   : > { %1280 = vmatmul.mubr.f32.gmra.mxu1 %v878_v49  ;;  %v864_v27 = vadd.f32 1.0, %v848_v24 }
 0x14a   : > { %v879_v43 = vmul.f32 %v863_v18, %v799_v26 }
 0x14b   : > { %v880_v23 = vmul.f32 %v864_v27, %v800_v20 }
 0x14c   : > { %1282 = vmatprep.mubr.f32.mxu1 %v879_v43 }
 0x14d   : > { %1283 = vmatmul.mubr.f32.gmra.mxu1 %v880_v23 }
 0x1e1   : > { %v1263_v50 = vpop.f32.mrf.mxu0 }
 0x1e2   : > { %v976_v44 = vadd.f32 %v1263_v50, %v1148_v4 }
 0x1e3   : > { %v970_v19 = vpop.f32.mrf.mxu0 }
 0x1e4   : > { %1051 = vst.msk [vmem:[%s1899_s18 + $0x8] sm:$0xff] %vm1049_vm1, %v976_v44  ;;  %v971_v60 = vadd.f32 %v1148_v4, %v970_v19 }
 0x1e6   : > { %v1266_v30 = vpop.f32.mrf.mxu0  ;;  %1050 = vst.msk [vmem:[%s1899_s18] sm:$0xff] %vm1049_vm1, %v971_v60 }
 0x1e7   : > { %v986_v33 = vadd.f32 %v1266_v30, %v1148_v4 }
 0x1e8   : > { %v980_v53 = vpop.f32.mrf.mxu0 }
 0x1e9   : > { %1053 = vst.msk [vmem:[%s1899_s18 + $0x18] sm:$0xff] %vm1049_vm1, %v986_v33  ;;  %v981_v35 = vadd.f32 %v1148_v4, %v980_v53 }
 0x1ea   : > { %v1269_v15 = vpop.f32.mrf.mxu0 }
 0x1eb   : > { %1052 = vst.msk [vmem:[%s1899_s18 + $0x10] sm:$0xff] %vm1049_vm1, %v981_v35  ;;  %v996_v40 = vadd.f32 %v1269_v15, %v1148_v4 }
 0x1ec   : > { %v990_v29 = vpop.f32.mrf.mxu0 }
 0x1ed   : > { %1055 = vst.msk [vmem:[%s1899_s18 + $0x28] sm:$0xff] %vm1049_vm1, %v996_v40  ;;  %v991_v42 = vadd.f32 %v1148_v4, %v990_v29 }
 0x1ef   : > { %1054 = vst.msk [vmem:[%s1899_s18 + $0x20] sm:$0xff] %vm1049_vm1, %v991_v42 }
 0x1f0   : > { %v1272_v52 = vpop.f32.mrf.mxu1 }
 0x1f1   : > { %v1006_v10 = vadd.f32 %v1272_v52, %v1148_v4 }
 0x1f2   : > { %v1000_v54 = vpop.f32.mrf.mxu1 }
 0x1f3   : > { %1057 = vst.msk [vmem:[%s1899_s18 + $0x38] sm:$0xff] %vm1049_vm1, %v1006_v10  ;;  %v1001_v46 = vadd.f32 %v1148_v4, %v1000_v54 }
 0x1f5   : > { %1056 = vst.msk [vmem:[%s1899_s18 + $0x30] sm:$0xff] %vm1049_vm1, %v1001_v46 }
 0x201   : > { %v1275_v58 = vpop.f32.mrf.mxu1 }
 0x202   : > { %v1016_v48 = vadd.f32 %v1275_v58, %v1148_v4 }
 0x203   : > { %v1010_v25 = vpop.f32.mrf.mxu1 }
 0x204   : > { %1059 = vst.msk [vmem:[%s1899_s18 + $0x48] sm:$0xff] %vm1049_vm1, %v1016_v48  ;;  %v1011_v14 = vadd.f32 %v1148_v4, %v1010_v25 }
 0x205   : > { %v1278_v16 = vpop.f32.mrf.mxu1 }
 0x206   : > { %1058 = vst.msk [vmem:[%s1899_s18 + $0x40] sm:$0xff] %vm1049_vm1, %v1011_v14  ;;  %v1026_v2 = vadd.f32 %v1278_v16, %v1148_v4 }
 0x207   : > { %v1020_v31 = vpop.f32.mrf.mxu1 }
 0x208   : > { %1061 = vst.msk [vmem:[%s1899_s18 + $0x58] sm:$0xff] %vm1049_vm1, %v1026_v2  ;;  %v1021_v32 = vadd.f32 %v1148_v4, %v1020_v31 }
 0x209   : > { %v1281_v11 = vpop.f32.mrf.mxu1 }
 0x20a   : > { %1060 = vst.msk [vmem:[%s1899_s18 + $0x50] sm:$0xff] %vm1049_vm1, %v1021_v32  ;;  %v1036_v38 = vadd.f32 %v1281_v11, %v1148_v4 }
 0x20b   : > { %v1030_v3 = vpop.f32.mrf.mxu1 }
 0x20c   : > { %1063 = vst.msk [vmem:[%s1899_s18 + $0x68] sm:$0xff] %vm1049_vm1, %v1036_v38  ;;  %v1031_v28 = vadd.f32 %v1148_v4, %v1030_v3 }
 0x20d   : > { %v1284_v61 = vpop.f32.mrf.mxu1 }
 0x20e   : > { %1062 = vst.msk [vmem:[%s1899_s18 + $0x60] sm:$0xff] %vm1049_vm1, %v1031_v28  ;;  %v1046_v57 = vadd.f32 %v1284_v61, %v1148_v4 }
 0x20f   : > { %v1040_v47 = vpop.f32.mrf.mxu1 }
 0x210   : > { %1065 = vst.msk [vmem:[%s1899_s18 + $0x78] sm:$0xff] %vm1049_vm1, %v1046_v57  ;;  %v1041_v45 = vadd.f32 %v1148_v4, %v1040_v47 }
 0x212   : > { %1064 = vst.msk [vmem:[%s1899_s18 + $0x70] sm:$0xff] %vm1049_vm1, %v1041_v45 }
 0x213 PF: > { %s17_s20 = sadd.s32 1, %s1395_s20  }
 0x214   : > { %p14_p4 = scmp.ge.s32.totalorder %s17_s20, 4  }
 0x216   :  { %16 = sbr.rel (!%p14_p4) target bundleno = 3 (0x3), region = 70 }

</bundles_post_ra>
